<compile_context>
chip_gen: v5e
topology: v5e:2x2
jax: 0.10.0
libtpu: 0.0.40
codegen_flags: <defaults>
</compile_context>

<pallas_src>
import functools

import jax
import jax.numpy as jnp
import numpy as np
from jax.experimental import pallas as pl
from jax.experimental.pallas import tpu as pltpu

EPS = 1e-5                       # nn.BatchNorm2d default eps
LANES = 128                      # TPU lane width / channel padding target
MXU_DTYPE = jnp.bfloat16         # matmul operand dtype (f32 accumulation)
VMEM_LIMIT = 32 * 1024 * 1024    # per-step footprint ~2 MiB; fits v5e/v6e/v7x


# ----------------------------------------------------------------------------
# Layout / packing helpers (wrapper-side plumbing, constant-folded under jit).
# ----------------------------------------------------------------------------
def _pad128(c):
    return ((c + LANES - 1) // LANES) * LANES


def _pad_last(a, cp):
    c = a.shape[-1]
    if c == cp:
        return a
    return jnp.pad(a, [(0, 0)] * (a.ndim - 1) + [(0, cp - c)])


def _bn_scale_shift(a, gamma, beta):
    """Training-mode BatchNorm folded to per-channel scale/shift.

    One streaming pass over `a`; biased variance like nn.BatchNorm2d forward.
    """
    m = jnp.mean(a, axis=(0, 1, 2))
    v = jnp.mean(jnp.square(a - m), axis=(0, 1, 2))
    scale = gamma * jax.lax.rsqrt(v + EPS)
    shift = beta - m * scale
    return scale, shift


def _pack_w3x3(w_hwio, cin_p, cout_p):
    """(3,3,Cin,Cout) -> (9*Cin_p, Cout_p) bf16, tap-major / Cin-fastest rows."""
    w = jnp.pad(w_hwio, ((0, 0), (0, 0),
                         (0, cin_p - w_hwio.shape[2]),
                         (0, cout_p - w_hwio.shape[3])))
    return w.reshape(9 * cin_p, cout_p).astype(MXU_DTYPE)


def _pack_w1x1(w_hwio, cin_p, cout_p):
    w = jnp.pad(w_hwio, ((0, 0), (0, 0),
                         (0, cin_p - w_hwio.shape[2]),
                         (0, cout_p - w_hwio.shape[3])))
    return w.reshape(cin_p, cout_p).astype(MXU_DTYPE)


# ----------------------------------------------------------------------------
# Kernel factory: relu(x*scale+shift) -> 3x3 s1 p1 conv (one im2col matmul),
# optionally fused with a residual ("identity" add or 1x1 "proj" matmul).
# One grid step = one batch element x one 128-wide output-channel tile.
# ----------------------------------------------------------------------------
def _make_block_kernel(H, W, Cin_p, shortcut):
    def kernel(*refs):
        if shortcut == "proj":
            x_ref, s_ref, t_ref, w_ref, xs_ref, wp_ref, out_ref, apad_ref = refs
        elif shortcut == "identity":
            x_ref, s_ref, t_ref, w_ref, sc_ref, out_ref, apad_ref = refs
        else:
            x_ref, s_ref, t_ref, w_ref, out_ref, apad_ref = refs

        # Folded BatchNorm + ReLU in f32 (VPU).
        x = x_ref[0]                                          # (H, W, Cin_p)
        act = jnp.maximum(x * s_ref[...] + t_ref[...], 0.0)

        # Zero-padded activation tile (border stays zero for the halo reads).
        apad_ref[...] = jnp.zeros_like(apad_ref)
        apad_ref[1:H + 1, 1:W + 1, :] = act

        # im2col: concat the 9 taps along lanes -> one (H*W, 9*Cin_p) operand
        # and a single MXU matmul (bf16 inputs, f32 accumulation).
        taps = []
        for kh in range(3):
            for kw in range(3):
                taps.append(
                    apad_ref[kh:kh + H, kw:kw + W, :].reshape(H * W, Cin_p))
        patch = jnp.concatenate(taps, axis=1).astype(MXU_DTYPE)
        acc = jnp.dot(patch, w_ref[...], preferred_element_type=jnp.float32)

        if shortcut == "proj":            # fused 1x1 projection residual
            xs = xs_ref[0].reshape(H * W, xs_ref.shape[-1]).astype(MXU_DTYPE)
            acc = acc + jnp.dot(xs, wp_ref[...],
                                preferred_element_type=jnp.float32)
        elif shortcut == "identity":      # fused identity residual
            acc = acc + sc_ref[0].reshape(H * W, LANES)

        out_ref[0] = acc.reshape(H, W, LANES)                 # lane-dense store

    return kernel


def _conv_block_call(kernel, H, W, Cin_p, Cout_p, inputs, in_specs, N):
    n_co = Cout_p // LANES
    return pl.pallas_call(
        kernel,
        out_shape=jax.ShapeDtypeStruct((N, H, W, Cout_p), jnp.float32),
        grid_spec=pltpu.PrefetchScalarGridSpec(
            num_scalar_prefetch=0,
            grid=(N, n_co),
            in_specs=in_specs,
            out_specs=pl.BlockSpec((1, H, W, LANES),
                                   lambda n, c: (n, 0, 0, c)),
            scratch_shapes=[pltpu.VMEM((H + 2, W + 2, Cin_p), jnp.float32)]),
        compiler_params=pltpu.CompilerParams(
            dimension_semantics=("parallel", "parallel"),
            vmem_limit_bytes=VMEM_LIMIT),
    )(*inputs)


def _call_conv1(xp, s1, t1, w1):
    N, H, W, Cin_p = xp.shape
    K9, Cout_p = w1.shape
    kernel = _make_block_kernel(H, W, Cin_p, None)
    in_specs = [
        pl.BlockSpec((1, H, W, Cin_p), lambda n, c: (n, 0, 0, 0)),
        pl.BlockSpec((1, Cin_p), lambda n, c: (0, 0)),
        pl.BlockSpec((1, Cin_p), lambda n, c: (0, 0)),
        pl.BlockSpec((K9, LANES), lambda n, c: (0, c)),
    ]
    return _conv_block_call(kernel, H, W, Cin_p, Cout_p,
                            [xp, s1, t1, w1], in_specs, N)


def _call_conv2_proj(y, s2, t2, w2, xs, wp):
    N, H, W, C_p = y.shape
    K9, Cout_p = w2.shape
    Cin_p = xs.shape[-1]
    kernel = _make_block_kernel(H, W, C_p, "proj")
    in_specs = [
        pl.BlockSpec((1, H, W, C_p), lambda n, c: (n, 0, 0, 0)),
        pl.BlockSpec((1, C_p), lambda n, c: (0, 0)),
        pl.BlockSpec((1, C_p), lambda n, c: (0, 0)),
        pl.BlockSpec((K9, LANES), lambda n, c: (0, c)),
        pl.BlockSpec((1, H, W, Cin_p), lambda n, c: (n, 0, 0, 0)),
        pl.BlockSpec((Cin_p, LANES), lambda n, c: (0, c)),
    ]
    return _conv_block_call(kernel, H, W, C_p, Cout_p,
                            [y, s2, t2, w2, xs, wp], in_specs, N)


def _call_conv2_identity(y, s2, t2, w2, sc):
    N, H, W, C_p = y.shape
    K9, Cout_p = w2.shape
    kernel = _make_block_kernel(H, W, C_p, "identity")
    in_specs = [
        pl.BlockSpec((1, H, W, C_p), lambda n, c: (n, 0, 0, 0)),
        pl.BlockSpec((1, C_p), lambda n, c: (0, 0)),
        pl.BlockSpec((1, C_p), lambda n, c: (0, 0)),
        pl.BlockSpec((K9, LANES), lambda n, c: (0, c)),
        pl.BlockSpec((1, H, W, LANES), lambda n, c: (n, 0, 0, c)),
    ]
    return _conv_block_call(kernel, H, W, C_p, Cout_p,
                            [y, s2, t2, w2, sc], in_specs, N)


# ----------------------------------------------------------------------------
# StandardBlock forward.  x is NCHW like PyTorch; output is NCHW.
# ----------------------------------------------------------------------------
@functools.partial(jax.jit, static_argnums=(2, 3))
def standard_block_forward(x_nchw, params, stride, has_proj):
    x = jnp.transpose(x_nchw, (0, 2, 3, 1)).astype(jnp.float32)     # -> NHWC
    N, H, W, Cin = x.shape
    Cout = params["w1"].shape[-1]
    Cin_p, Cout_p = _pad128(Cin), _pad128(Cout)

    # bn1: cheap streaming stats pass; folded scale/shift applied in-kernel.
    s1, t1 = _bn_scale_shift(x, params["g1"], params["b1"])
    s1p = _pad_last(s1[None, :], Cin_p)
    t1p = _pad_last(t1[None, :], Cin_p)

    xp = _pad_last(x, Cin_p)                                        # lane-dense
    w1p = _pack_w3x3(params["w1"], Cin_p, Cout_p)

    # Kernel A: relu(bn1(x)) -> conv1 (3x3, stride-1 resolution).
    c1 = _call_conv1(xp, s1p, t1p, w1p)                             # (N,H,W,Cout_p)

    # TODO(synk): apply the conv1 stride inside kernel A (strided im2col rows)
    # instead of computing full resolution and subsampling here; for stride=2
    # this still does 4x the conv1 MXU work and HBM writeback.
    y = c1[:, ::stride, ::stride, :]

    # bn2: stats over the (strided) conv1 output, real channels only.
    s2, t2 = _bn_scale_shift(y[..., :Cout], params["g2"], params["b2"])
    s2p = _pad_last(s2[None, :], Cout_p)
    t2p = _pad_last(t2[None, :], Cout_p)
    w2p = _pack_w3x3(params["w2"], Cout_p, Cout_p)

    # Kernel B: relu(bn2(y)) -> conv2, residual fused in-kernel.
    if has_proj:
        xs = xp[:, ::stride, ::stride, :]        # strided input for the 1x1 proj
        wpp = _pack_w1x1(params["wp"], Cin_p, Cout_p)
        out = _call_conv2_proj(y, s2p, t2p, w2p, xs, wpp)
    else:
        out = _call_conv2_identity(y, s2p, t2p, w2p, xp)

    out = out[..., :Cout]
    return jnp.transpose(out, (0, 3, 1, 2))                         # -> NCHW


# ----------------------------------------------------------------------------
# Deterministic parameter init (shapes from StandardBlock.__init__).
# ----------------------------------------------------------------------------
def init_params(key, cin, cout, stride):
    has_proj = (stride != 1) or (cin != cout)
    k1, k2, k3 = jax.random.split(key, 3)
    p = {
        "w1": jax.random.normal(k1, (3, 3, cin, cout), jnp.float32) / np.sqrt(9 * cin),
        "w2": jax.random.normal(k2, (3, 3, cout, cout), jnp.float32) / np.sqrt(9 * cout),
        "g1": jnp.linspace(0.8, 1.2, cin, dtype=jnp.float32),
        "b1": jnp.linspace(-0.1, 0.1, cin, dtype=jnp.float32),
        "g2": jnp.linspace(0.9, 1.1, cout, dtype=jnp.float32),
        "b2": jnp.linspace(-0.05, 0.05, cout, dtype=jnp.float32),
    }
    if has_proj:
        p["wp"] = jax.random.normal(k3, (1, 1, cin, cout), jnp.float32) / np.sqrt(cin)
    return p, has_proj


# Pure-JAX reference via lax.conv.  mxu_dtype=bf16 matches the kernels' mixed
# precision (tight check); mxu_dtype=f32 is the exact module semantics (loose).
def ref_forward(x_nchw, p, stride, has_proj, mxu_dtype):
    x = jnp.transpose(x_nchw, (0, 2, 3, 1)).astype(jnp.float32)

    def conv(a, w, s, pad):
        return jax.lax.conv_general_dilated(
            a.astype(mxu_dtype), w.astype(mxu_dtype), (s, s), pad,
            dimension_numbers=("NHWC", "HWIO", "NHWC"),
            preferred_element_type=jnp.float32)

    s1, t1 = _bn_scale_shift(x, p["g1"], p["b1"])
    act1 = jnp.maximum(x * s1 + t1, 0.0)
    c1 = conv(act1, p["w1"], stride, ((1, 1), (1, 1)))
    s2, t2 = _bn_scale_shift(c1, p["g2"], p["b2"])
    act2 = jnp.maximum(c1 * s2 + t2, 0.0)
    sc = conv(x, p["wp"], stride, ((0, 0), (0, 0))) if has_proj else x
    out = conv(act2, p["w2"], 1, ((1, 1), (1, 1))) + sc
    return jnp.transpose(out, (0, 3, 1, 2))


if __name__ == "__main__":
    key = jax.random.PRNGKey(0)
    kx, kp, kx2, kp2 = jax.random.split(key, 4)

    def check(x, params, stride, has_proj, expect_shape):
        out = jax.block_until_ready(
            standard_block_forward(x, params, stride, has_proj))
        assert out.shape == expect_shape, out.shape
        ref_bf = ref_forward(x, params, stride, has_proj, jnp.bfloat16)
        ref_f32 = ref_forward(x, params, stride, has_proj, jnp.float32)
        # Tight check vs a matched-precision (bf16-operand) reference.
        np.testing.assert_allclose(np.asarray(out), np.asarray(ref_bf),
                                   rtol=2e-3, atol=2e-3)
        # Loose check vs exact f32 module semantics (bf16 MXU rounding only).
        np.testing.assert_allclose(np.asarray(out), np.asarray(ref_f32),
                                   rtol=5e-2, atol=5e-2)

    # Config 1: projection shortcut (stride=2, in=4 -> out=8 channels).
    N, Cin, H, W, Cout, stride = 2, 4, 16, 16, 8, 2
    x = jax.random.normal(kx, (N, Cin, H, W), jnp.float32)
    params, has_proj = init_params(kp, Cin, Cout, stride)
    check(x, params, stride, has_proj, (N, Cout, H // stride, W // stride))

    # Config 2: identity shortcut (stride=1, in=out=8 channels).
    N2, C2, H2, W2 = 2, 8, 16, 16
    x2 = jax.random.normal(kx2, (N2, C2, H2, W2), jnp.float32)
    params2, has_proj2 = init_params(kp2, C2, C2, 1)
    check(x2, params2, 1, has_proj2, (N2, C2, H2, W2))

    print("KERNEL_OK")
</pallas_src>

<mosaic_0001>
module attributes {stable_mosaic.version = 11 : i64} {
  func.func @kernel(%arg0: i32, %arg1: i32, %arg2: memref<1x16x16x128xf32, #tpu.memory_space<vmem>>, %arg3: memref<1x128xf32, #tpu.memory_space<vmem>>, %arg4: memref<1x128xf32, #tpu.memory_space<vmem>>, %arg5: memref<1152x128xbf16, #tpu.memory_space<vmem>>, %arg6: memref<1x16x16x128xf32, #tpu.memory_space<vmem>>, %arg7: memref<18x18x128xf32, #tpu.memory_space<vmem>>) attributes {dimension_semantics = [#tpu.dimension_semantics<parallel>, #tpu.dimension_semantics<parallel>], iteration_bounds = array<i64: 2, 1>, scalar_prefetch = 0 : i64, scratch_operands = 1 : i64, tpu.core_type = #tpu.core_type<tc>, window_params = [{transform_indices = @transform_0, window_bounds = array<i64: 1, 16, 16, 128>}, {pipeline_mode = #tpu.pipeline_mode<synchronous>, transform_indices = @transform_1, window_bounds = array<i64: 1, 128>}, {pipeline_mode = #tpu.pipeline_mode<synchronous>, transform_indices = @transform_2, window_bounds = array<i64: 1, 128>}, {transform_indices = @transform_3, window_bounds = array<i64: 1152, 128>}, {transform_indices = @transform_4, window_bounds = array<i64: 1, 16, 16, 128>}]} {
    %c0 = arith.constant 0 : index
    %c0_0 = arith.constant 0 : index
    %c0_1 = arith.constant 0 : index
    %c0_2 = arith.constant 0 : index
    %0 = vector.load %arg2[%c0, %c0_0, %c0_1, %c0_2] : memref<1x16x16x128xf32, #tpu.memory_space<vmem>>, vector<1x16x16x128xf32>
    %1 = vector.shape_cast %0 : vector<1x16x16x128xf32> to vector<16x16x128xf32>
    %c0_3 = arith.constant 0 : index
    %c0_4 = arith.constant 0 : index
    %2 = vector.load %arg3[%c0_3, %c0_4] : memref<1x128xf32, #tpu.memory_space<vmem>>, vector<1x128xf32>
    %3 = vector.shape_cast %2 : vector<1x128xf32> to vector<1x1x128xf32>
    %4 = vector.broadcast %3 : vector<1x1x128xf32> to vector<16x16x128xf32>
    %5 = arith.mulf %1, %4 : vector<16x16x128xf32>
    %c0_5 = arith.constant 0 : index
    %c0_6 = arith.constant 0 : index
    %6 = vector.load %arg4[%c0_5, %c0_6] : memref<1x128xf32, #tpu.memory_space<vmem>>, vector<1x128xf32>
    %7 = vector.shape_cast %6 : vector<1x128xf32> to vector<1x1x128xf32>
    %8 = vector.broadcast %7 : vector<1x1x128xf32> to vector<16x16x128xf32>
    %9 = arith.addf %5, %8 : vector<16x16x128xf32>
    %cst = arith.constant 0.000000e+00 : f32
    %10 = vector.broadcast %cst : f32 to vector<16x16x128xf32>
    %11 = arith.maximumf %9, %10 : vector<16x16x128xf32>
    %cst_7 = arith.constant 0.000000e+00 : f32
    %12 = vector.broadcast %cst_7 : f32 to vector<18x18x128xf32>
    %c0_8 = arith.constant 0 : index
    %c0_9 = arith.constant 0 : index
    %c0_10 = arith.constant 0 : index
    %13 = vector.load %arg7[%c0_8, %c0_9, %c0_10] : memref<18x18x128xf32, #tpu.memory_space<vmem>>, vector<18x18x128xf32>
    tpu.vector_store %arg7[%c0_8, %c0_9, %c0_10], %12 {strides = array<i32>} : memref<18x18x128xf32, #tpu.memory_space<vmem>>, vector<18x18x128xf32>,
    %c1 = arith.constant 1 : index
    %c1_11 = arith.constant 1 : index
    %c0_12 = arith.constant 0 : index
    %14 = vector.load %arg7[%c1, %c1_11, %c0_12] : memref<18x18x128xf32, #tpu.memory_space<vmem>>, vector<16x16x128xf32>
    tpu.vector_store %arg7[%c1, %c1_11, %c0_12], %11 {strides = array<i32>} : memref<18x18x128xf32, #tpu.memory_space<vmem>>, vector<16x16x128xf32>,
    %c0_13 = arith.constant 0 : index
    %c0_14 = arith.constant 0 : index
    %c0_15 = arith.constant 0 : index
    %15 = vector.load %arg7[%c0_13, %c0_14, %c0_15] : memref<18x18x128xf32, #tpu.memory_space<vmem>>, vector<16x16x128xf32>
    %16 = vector.shape_cast %15 : vector<16x16x128xf32> to vector<256x128xf32>
    %c0_16 = arith.constant 0 : index
    %c1_17 = arith.constant 1 : index
    %c0_18 = arith.constant 0 : index
    %17 = vector.load %arg7[%c0_16, %c1_17, %c0_18] : memref<18x18x128xf32, #tpu.memory_space<vmem>>, vector<16x16x128xf32>
    %18 = vector.shape_cast %17 : vector<16x16x128xf32> to vector<256x128xf32>
    %c0_19 = arith.constant 0 : index
    %c2 = arith.constant 2 : index
    %c0_20 = arith.constant 0 : index
    %19 = vector.load %arg7[%c0_19, %c2, %c0_20] : memref<18x18x128xf32, #tpu.memory_space<vmem>>, vector<16x16x128xf32>
    %20 = vector.shape_cast %19 : vector<16x16x128xf32> to vector<256x128xf32>
    %c1_21 = arith.constant 1 : index
    %c0_22 = arith.constant 0 : index
    %c0_23 = arith.constant 0 : index
    %21 = vector.load %arg7[%c1_21, %c0_22, %c0_23] : memref<18x18x128xf32, #tpu.memory_space<vmem>>, vector<16x16x128xf32>
    %22 = vector.shape_cast %21 : vector<16x16x128xf32> to vector<256x128xf32>
    %c1_24 = arith.constant 1 : index
    %c1_25 = arith.constant 1 : index
    %c0_26 = arith.constant 0 : index
    %23 = vector.load %arg7[%c1_24, %c1_25, %c0_26] : memref<18x18x128xf32, #tpu.memory_space<vmem>>, vector<16x16x128xf32>
    %24 = vector.shape_cast %23 : vector<16x16x128xf32> to vector<256x128xf32>
    %c1_27 = arith.constant 1 : index
    %c2_28 = arith.constant 2 : index
    %c0_29 = arith.constant 0 : index
    %25 = vector.load %arg7[%c1_27, %c2_28, %c0_29] : memref<18x18x128xf32, #tpu.memory_space<vmem>>, vector<16x16x128xf32>
    %26 = vector.shape_cast %25 : vector<16x16x128xf32> to vector<256x128xf32>
    %c2_30 = arith.constant 2 : index
    %c0_31 = arith.constant 0 : index
    %c0_32 = arith.constant 0 : index
    %27 = vector.load %arg7[%c2_30, %c0_31, %c0_32] : memref<18x18x128xf32, #tpu.memory_space<vmem>>, vector<16x16x128xf32>
    %28 = vector.shape_cast %27 : vector<16x16x128xf32> to vector<256x128xf32>
    %c2_33 = arith.constant 2 : index
    %c1_34 = arith.constant 1 : index
    %c0_35 = arith.constant 0 : index
    %29 = vector.load %arg7[%c2_33, %c1_34, %c0_35] : memref<18x18x128xf32, #tpu.memory_space<vmem>>, vector<16x16x128xf32>
    %30 = vector.shape_cast %29 : vector<16x16x128xf32> to vector<256x128xf32>
    %c2_36 = arith.constant 2 : index
    %c2_37 = arith.constant 2 : index
    %c0_38 = arith.constant 0 : index
    %31 = vector.load %arg7[%c2_36, %c2_37, %c0_38] : memref<18x18x128xf32, #tpu.memory_space<vmem>>, vector<16x16x128xf32>
    %32 = vector.shape_cast %31 : vector<16x16x128xf32> to vector<256x128xf32>
    %33 = tpu.concatenate %16, %18, %20, %22, %24, %26, %28, %30, %32 in 1 : vector<256x128xf32>, vector<256x128xf32>, vector<256x128xf32>, vector<256x128xf32>, vector<256x128xf32>, vector<256x128xf32>, vector<256x128xf32>, vector<256x128xf32>, vector<256x128xf32> -> vector<256x1152xf32>
    %34 = arith.truncf %33 : vector<256x1152xf32> to vector<256x1152xbf16>
    %c0_39 = arith.constant 0 : index
    %c0_40 = arith.constant 0 : index
    %35 = vector.load %arg5[%c0_39, %c0_40] : memref<1152x128xbf16, #tpu.memory_space<vmem>>, vector<1152x128xbf16>
    %cst_41 = arith.constant dense<0.000000e+00> : vector<256x128xf32>
    %36 = tpu.matmul %34, %35, %cst_41 {dimension_numbers = #tpu.dot_dimension_numbers<[1], [0], [0], [1], [0, 0, 1, 1], [], []>} : vector<256x1152xbf16>, vector<1152x128xbf16>, vector<256x128xf32> -> vector<256x128xf32>
    %37 = vector.shape_cast %36 : vector<256x128xf32> to vector<16x16x128xf32>
    %c0_42 = arith.constant 0 : index
    %c0_43 = arith.constant 0 : index
    %c0_44 = arith.constant 0 : index
    %c0_45 = arith.constant 0 : index
    %38 = vector.load %arg6[%c0_42, %c0_43, %c0_44, %c0_45] : memref<1x16x16x128xf32, #tpu.memory_space<vmem>>, vector<1x16x16x128xf32>
    %39 = vector.shape_cast %38 : vector<1x16x16x128xf32> to vector<16x16x128xf32>
    %40 = vector.shape_cast %37 : vector<16x16x128xf32> to vector<1x16x16x128xf32>
    tpu.vector_store %arg6[%c0_42, %c0_43, %c0_44, %c0_45], %40 {strides = array<i32>} : memref<1x16x16x128xf32, #tpu.memory_space<vmem>>, vector<1x16x16x128xf32>,
    return
  }
  func.func @transform_0(%arg0: i32, %arg1: i32) -> (i32, i32, i32, i32) {
    %c0_i32 = arith.constant 0 : i32
    %c0_i32_0 = arith.constant 0 : i32
    %c0_i32_1 = arith.constant 0 : i32
    %c0_i32_2 = arith.constant 0 : i32
    return %arg0, %c0_i32, %c0_i32_0, %c0_i32_1 : i32, i32, i32, i32
  }
  func.func @transform_1(%arg0: i32, %arg1: i32) -> (i32, i32) {
    %c0_i32 = arith.constant 0 : i32
    %c0_i32_0 = arith.constant 0 : i32
    %c0_i32_1 = arith.constant 0 : i32
    return %c0_i32, %c0_i32_0 : i32, i32
  }
  func.func @transform_2(%arg0: i32, %arg1: i32) -> (i32, i32) {
    %c0_i32 = arith.constant 0 : i32
    %c0_i32_0 = arith.constant 0 : i32
    %c0_i32_1 = arith.constant 0 : i32
    return %c0_i32, %c0_i32_0 : i32, i32
  }
  func.func @transform_3(%arg0: i32, %arg1: i32) -> (i32, i32) {
    %c0_i32 = arith.constant 0 : i32
    %c0_i32_0 = arith.constant 0 : i32
    return %c0_i32, %arg1 : i32, i32
  }
  func.func @transform_4(%arg0: i32, %arg1: i32) -> (i32, i32, i32, i32) {
    %c0_i32 = arith.constant 0 : i32
    %c0_i32_0 = arith.constant 0 : i32
    %c0_i32_1 = arith.constant 0 : i32
    return %arg0, %c0_i32, %c0_i32_0, %arg1 : i32, i32, i32, i32
  }
}

module attributes {stable_mosaic.version = 11 : i64} {
  func.func @kernel(%arg0: i32, %arg1: i32, %arg2: memref<1x8x8x128xf32, #tpu.memory_space<vmem>>, %arg3: memref<1x128xf32, #tpu.memory_space<vmem>>, %arg4: memref<1x128xf32, #tpu.memory_space<vmem>>, %arg5: memref<1152x128xbf16, #tpu.memory_space<vmem>>, %arg6: memref<1x8x8x128xf32, #tpu.memory_space<vmem>>, %arg7: memref<128x128xbf16, #tpu.memory_space<vmem>>, %arg8: memref<1x8x8x128xf32, #tpu.memory_space<vmem>>, %arg9: memref<10x10x128xf32, #tpu.memory_space<vmem>>) attributes {dimension_semantics = [#tpu.dimension_semantics<parallel>, #tpu.dimension_semantics<parallel>], iteration_bounds = array<i64: 2, 1>, scalar_prefetch = 0 : i64, scratch_operands = 1 : i64, tpu.core_type = #tpu.core_type<tc>, window_params = [{transform_indices = @transform_0, window_bounds = array<i64: 1, 8, 8, 128>}, {pipeline_mode = #tpu.pipeline_mode<synchronous>, transform_indices = @transform_1, window_bounds = array<i64: 1, 128>}, {pipeline_mode = #tpu.pipeline_mode<synchronous>, transform_indices = @transform_2, window_bounds = array<i64: 1, 128>}, {transform_indices = @transform_3, window_bounds = array<i64: 1152, 128>}, {transform_indices = @transform_4, window_bounds = array<i64: 1, 8, 8, 128>}, {transform_indices = @transform_5, window_bounds = array<i64: 128, 128>}, {transform_indices = @transform_6, window_bounds = array<i64: 1, 8, 8, 128>}]} {
    %c0 = arith.constant 0 : index
    %c0_0 = arith.constant 0 : index
    %c0_1 = arith.constant 0 : index
    %c0_2 = arith.constant 0 : index
    %0 = vector.load %arg2[%c0, %c0_0, %c0_1, %c0_2] : memref<1x8x8x128xf32, #tpu.memory_space<vmem>>, vector<1x8x8x128xf32>
    %1 = vector.shape_cast %0 : vector<1x8x8x128xf32> to vector<8x8x128xf32>
    %c0_3 = arith.constant 0 : index
    %c0_4 = arith.constant 0 : index
    %2 = vector.load %arg3[%c0_3, %c0_4] : memref<1x128xf32, #tpu.memory_space<vmem>>, vector<1x128xf32>
    %3 = vector.shape_cast %2 : vector<1x128xf32> to vector<1x1x128xf32>
    %4 = vector.broadcast %3 : vector<1x1x128xf32> to vector<8x8x128xf32>
    %5 = arith.mulf %1, %4 : vector<8x8x128xf32>
    %c0_5 = arith.constant 0 : index
    %c0_6 = arith.constant 0 : index
    %6 = vector.load %arg4[%c0_5, %c0_6] : memref<1x128xf32, #tpu.memory_space<vmem>>, vector<1x128xf32>
    %7 = vector.shape_cast %6 : vector<1x128xf32> to vector<1x1x128xf32>
    %8 = vector.broadcast %7 : vector<1x1x128xf32> to vector<8x8x128xf32>
    %9 = arith.addf %5, %8 : vector<8x8x128xf32>
    %cst = arith.constant 0.000000e+00 : f32
    %10 = vector.broadcast %cst : f32 to vector<8x8x128xf32>
    %11 = arith.maximumf %9, %10 : vector<8x8x128xf32>
    %cst_7 = arith.constant 0.000000e+00 : f32
    %12 = vector.broadcast %cst_7 : f32 to vector<10x10x128xf32>
    %c0_8 = arith.constant 0 : index
    %c0_9 = arith.constant 0 : index
    %c0_10 = arith.constant 0 : index
    %13 = vector.load %arg9[%c0_8, %c0_9, %c0_10] : memref<10x10x128xf32, #tpu.memory_space<vmem>>, vector<10x10x128xf32>
    tpu.vector_store %arg9[%c0_8, %c0_9, %c0_10], %12 {strides = array<i32>} : memref<10x10x128xf32, #tpu.memory_space<vmem>>, vector<10x10x128xf32>,
    %c1 = arith.constant 1 : index
    %c1_11 = arith.constant 1 : index
    %c0_12 = arith.constant 0 : index
    %14 = vector.load %arg9[%c1, %c1_11, %c0_12] : memref<10x10x128xf32, #tpu.memory_space<vmem>>, vector<8x8x128xf32>
    tpu.vector_store %arg9[%c1, %c1_11, %c0_12], %11 {strides = array<i32>} : memref<10x10x128xf32, #tpu.memory_space<vmem>>, vector<8x8x128xf32>,
    %c0_13 = arith.constant 0 : index
    %c0_14 = arith.constant 0 : index
    %c0_15 = arith.constant 0 : index
    %15 = vector.load %arg9[%c0_13, %c0_14, %c0_15] : memref<10x10x128xf32, #tpu.memory_space<vmem>>, vector<8x8x128xf32>
    %16 = vector.shape_cast %15 : vector<8x8x128xf32> to vector<64x128xf32>
    %c0_16 = arith.constant 0 : index
    %c1_17 = arith.constant 1 : index
    %c0_18 = arith.constant 0 : index
    %17 = vector.load %arg9[%c0_16, %c1_17, %c0_18] : memref<10x10x128xf32, #tpu.memory_space<vmem>>, vector<8x8x128xf32>
    %18 = vector.shape_cast %17 : vector<8x8x128xf32> to vector<64x128xf32>
    %c0_19 = arith.constant 0 : index
    %c2 = arith.constant 2 : index
    %c0_20 = arith.constant 0 : index
    %19 = vector.load %arg9[%c0_19, %c2, %c0_20] : memref<10x10x128xf32, #tpu.memory_space<vmem>>, vector<8x8x128xf32>
    %20 = vector.shape_cast %19 : vector<8x8x128xf32> to vector<64x128xf32>
    %c1_21 = arith.constant 1 : index
    %c0_22 = arith.constant 0 : index
    %c0_23 = arith.constant 0 : index
    %21 = vector.load %arg9[%c1_21, %c0_22, %c0_23] : memref<10x10x128xf32, #tpu.memory_space<vmem>>, vector<8x8x128xf32>
    %22 = vector.shape_cast %21 : vector<8x8x128xf32> to vector<64x128xf32>
    %c1_24 = arith.constant 1 : index
    %c1_25 = arith.constant 1 : index
    %c0_26 = arith.constant 0 : index
    %23 = vector.load %arg9[%c1_24, %c1_25, %c0_26] : memref<10x10x128xf32, #tpu.memory_space<vmem>>, vector<8x8x128xf32>
    %24 = vector.shape_cast %23 : vector<8x8x128xf32> to vector<64x128xf32>
    %c1_27 = arith.constant 1 : index
    %c2_28 = arith.constant 2 : index
    %c0_29 = arith.constant 0 : index
    %25 = vector.load %arg9[%c1_27, %c2_28, %c0_29] : memref<10x10x128xf32, #tpu.memory_space<vmem>>, vector<8x8x128xf32>
    %26 = vector.shape_cast %25 : vector<8x8x128xf32> to vector<64x128xf32>
    %c2_30 = arith.constant 2 : index
    %c0_31 = arith.constant 0 : index
    %c0_32 = arith.constant 0 : index
    %27 = vector.load %arg9[%c2_30, %c0_31, %c0_32] : memref<10x10x128xf32, #tpu.memory_space<vmem>>, vector<8x8x128xf32>
    %28 = vector.shape_cast %27 : vector<8x8x128xf32> to vector<64x128xf32>
    %c2_33 = arith.constant 2 : index
    %c1_34 = arith.constant 1 : index
    %c0_35 = arith.constant 0 : index
    %29 = vector.load %arg9[%c2_33, %c1_34, %c0_35] : memref<10x10x128xf32, #tpu.memory_space<vmem>>, vector<8x8x128xf32>
    %30 = vector.shape_cast %29 : vector<8x8x128xf32> to vector<64x128xf32>
    %c2_36 = arith.constant 2 : index
    %c2_37 = arith.constant 2 : index
    %c0_38 = arith.constant 0 : index
    %31 = vector.load %arg9[%c2_36, %c2_37, %c0_38] : memref<10x10x128xf32, #tpu.memory_space<vmem>>, vector<8x8x128xf32>
    %32 = vector.shape_cast %31 : vector<8x8x128xf32> to vector<64x128xf32>
    %33 = tpu.concatenate %16, %18, %20, %22, %24, %26, %28, %30, %32 in 1 : vector<64x128xf32>, vector<64x128xf32>, vector<64x128xf32>, vector<64x128xf32>, vector<64x128xf32>, vector<64x128xf32>, vector<64x128xf32>, vector<64x128xf32>, vector<64x128xf32> -> vector<64x1152xf32>
    %34 = arith.truncf %33 : vector<64x1152xf32> to vector<64x1152xbf16>
    %c0_39 = arith.constant 0 : index
    %c0_40 = arith.constant 0 : index
    %35 = vector.load %arg5[%c0_39, %c0_40] : memref<1152x128xbf16, #tpu.memory_space<vmem>>, vector<1152x128xbf16>
    %cst_41 = arith.constant dense<0.000000e+00> : vector<64x128xf32>
    %36 = tpu.matmul %34, %35, %cst_41 {dimension_numbers = #tpu.dot_dimension_numbers<[1], [0], [0], [1], [0, 0, 1, 1], [], []>} : vector<64x1152xbf16>, vector<1152x128xbf16>, vector<64x128xf32> -> vector<64x128xf32>
    %c0_42 = arith.constant 0 : index
    %c0_43 = arith.constant 0 : index
    %c0_44 = arith.constant 0 : index
    %c0_45 = arith.constant 0 : index
    %37 = vector.load %arg6[%c0_42, %c0_43, %c0_44, %c0_45] : memref<1x8x8x128xf32, #tpu.memory_space<vmem>>, vector<1x8x8x128xf32>
    %38 = vector.shape_cast %37 : vector<1x8x8x128xf32> to vector<8x8x128xf32>
    %39 = vector.shape_cast %38 : vector<8x8x128xf32> to vector<64x128xf32>
    %40 = arith.truncf %39 : vector<64x128xf32> to vector<64x128xbf16>
    %c0_46 = arith.constant 0 : index
    %c0_47 = arith.constant 0 : index
    %41 = vector.load %arg7[%c0_46, %c0_47] : memref<128x128xbf16, #tpu.memory_space<vmem>>, vector<128x128xbf16>
    %cst_48 = arith.constant dense<0.000000e+00> : vector<64x128xf32>
    %42 = tpu.matmul %40, %41, %cst_48 {dimension_numbers = #tpu.dot_dimension_numbers<[1], [0], [0], [1], [0, 0, 1, 1], [], []>} : vector<64x128xbf16>, vector<128x128xbf16>, vector<64x128xf32> -> vector<64x128xf32>
    %43 = arith.addf %36, %42 : vector<64x128xf32>
    %44 = vector.shape_cast %43 : vector<64x128xf32> to vector<8x8x128xf32>
    %c0_49 = arith.constant 0 : index
    %c0_50 = arith.constant 0 : index
    %c0_51 = arith.constant 0 : index
    %c0_52 = arith.constant 0 : index
    %45 = vector.load %arg8[%c0_49, %c0_50, %c0_51, %c0_52] : memref<1x8x8x128xf32, #tpu.memory_space<vmem>>, vector<1x8x8x128xf32>
    %46 = vector.shape_cast %45 : vector<1x8x8x128xf32> to vector<8x8x128xf32>
    %47 = vector.shape_cast %44 : vector<8x8x128xf32> to vector<1x8x8x128xf32>
    tpu.vector_store %arg8[%c0_49, %c0_50, %c0_51, %c0_52], %47 {strides = array<i32>} : memref<1x8x8x128xf32, #tpu.memory_space<vmem>>, vector<1x8x8x128xf32>,
    return
  }
  func.func @transform_0(%arg0: i32, %arg1: i32) -> (i32, i32, i32, i32) {
    %c0_i32 = arith.constant 0 : i32
    %c0_i32_0 = arith.constant 0 : i32
    %c0_i32_1 = arith.constant 0 : i32
    %c0_i32_2 = arith.constant 0 : i32
    return %arg0, %c0_i32, %c0_i32_0, %c0_i32_1 : i32, i32, i32, i32
  }
  func.func @transform_1(%arg0: i32, %arg1: i32) -> (i32, i32) {
    %c0_i32 = arith.constant 0 : i32
    %c0_i32_0 = arith.constant 0 : i32
    %c0_i32_1 = arith.constant 0 : i32
    return %c0_i32, %c0_i32_0 : i32, i32
  }
  func.func @transform_2(%arg0: i32, %arg1: i32) -> (i32, i32) {
    %c0_i32 = arith.constant 0 : i32
    %c0_i32_0 = arith.constant 0 : i32
    %c0_i32_1 = arith.constant 0 : i32
    return %c0_i32, %c0_i32_0 : i32, i32
  }
  func.func @transform_3(%arg0: i32, %arg1: i32) -> (i32, i32) {
    %c0_i32 = arith.constant 0 : i32
    %c0_i32_0 = arith.constant 0 : i32
    return %c0_i32, %arg1 : i32, i32
  }
  func.func @transform_4(%arg0: i32, %arg1: i32) -> (i32, i32, i32, i32) {
    %c0_i32 = arith.constant 0 : i32
    %c0_i32_0 = arith.constant 0 : i32
    %c0_i32_1 = arith.constant 0 : i32
    %c0_i32_2 = arith.constant 0 : i32
    return %arg0, %c0_i32, %c0_i32_0, %c0_i32_1 : i32, i32, i32, i32
  }
  func.func @transform_5(%arg0: i32, %arg1: i32) -> (i32, i32) {
    %c0_i32 = arith.constant 0 : i32
    %c0_i32_0 = arith.constant 0 : i32
    return %c0_i32, %arg1 : i32, i32
  }
  func.func @transform_6(%arg0: i32, %arg1: i32) -> (i32, i32, i32, i32) {
    %c0_i32 = arith.constant 0 : i32
    %c0_i32_0 = arith.constant 0 : i32
    %c0_i32_1 = arith.constant 0 : i32
    return %arg0, %c0_i32, %c0_i32_0, %arg1 : i32, i32, i32, i32
  }
}

</mosaic_0001>

<bundles_post_ra>
// kernel: standard_block_forward.2
= control target key start
LH: loop header
LB: loop body
LE: loop exit
PB: predicated region body
PF: predicated region fallthrough
CT: control target
= control target key end

     0   :  { %s2872_s15 = smov 0   ;;  %s2874_s16 = smov 0   ;;  %s3815_s0 = inlined_call_operand.vmem [shape: f32[2,16,16,128], index: 0, kind: input, shape index: {}]   ;;  %s3816_s1 = inlined_call_operand.vmem [shape: f32[1,128], index: 1, kind: input, shape index: {}]   ;;  %s3817_s2 = inlined_call_operand.vmem [shape: f32[1,128], index: 2, kind: input, shape index: {}]   ;;  %s3818_s3 = inlined_call_operand.vmem [shape: bf16[1152,128], index: 3, kind: input, shape index: {}]   ;;  %s3819_s4 = inlined_call_operand.vmem [shape: f32[2,16,16,128], index: 4, kind: output, shape index: {}]  }
   0x1   :  { %s2876_s17 = smov 0  }
   0x2 LB: > { %s26_s18 = sadd.s32 1, %s2839_s16  ;;  %p2398_p0 = scmp.ge.s32.totalorder %s2843_s17, 1  ;;  %s2843_s17 = sphi %s2876_s17, %s14_s17   ;;  %s2839_s16 = sphi %s2874_s16, %s3861_s16   ;;  %s2835_s15 = sphi %s2872_s15, %s3860_s15  }
   0x3   : > { %p28_p1 = scmp.ge.s32.totalorder %s26_s18, 2  ;;  %p185_p2 = scmp.lt.s32.totalorder %s2843_s17, 3 }
   0x5   : > { %s3863_s18 = smov (%p28_p1, %s26_s18), 0  ;;  %p186_p3 = pnand %p2398_p0, %p185_p2 }
   0x7   : > { %189 = sbr.rel (%p186_p3) target bundleno = 787 (0x313), region = 36 }
   0xc   : > { %v2702_v0 = vld [vmem:[%s3818_s3 + $0x38] sm:$0xff]  ;;  %p218_p4 = scmp.lt.s32.totalorder %s2835_s15, 1  ;;  %v2845_v1 = vmov 0.0   ;;  %v2701_v2 = vld [vmem:[%s3818_s3 + $0x30] sm:$0xff]  ;;  %v2903_v3 = vld [vmem:[%s3816_s1] ss:$0 sm:$0xff] }
   0xd   : > { %383 = vst [vmem:[#allocation2 + $0x60] sm:$0xff] %v2845_v1  ;;  %2767 = vmatpush.bf16.msra.mxu1 %v2702_v0  ;;  %2768 = vmatpush.bf16.msra.mxu2 %v2702_v0  ;;  %v2917_v4 = vld [vmem:[%s3817_s2] ss:$0 sm:$0xff]  ;;  %v2700_v5 = vld [vmem:[%s3818_s3 + $0x28] sm:$0xff]  ;;  %v2698_v15 = vld [vmem:[%s3818_s3 + $0x18] sm:$0xff]  ;;  %v2846_v26 = vmov 0.0|0.0  }
   0xe   : > { %s3865_s15 = smov (!%p218_p4, %s2835_s15), 1  ;;  %384 = vst [vmem:[#allocation2 + $0x68] sm:$0xff] %v2845_v1  ;;  %2769 = vmatpush.bf16.msra.mxu3 %v2702_v0  ;;  %1467 = vmatpush.bf16.msra.mxu0 %v2702_v0  ;;  %v2699_v12 = vld [vmem:[%s3818_s3 + $0x20] sm:$0xff]  ;;  %v2697_v16 = vld [vmem:[%s3818_s3 + $0x10] sm:$0xff]  ;;  %v2696_v17 = vld [vmem:[%s3818_s3 + $0x8] sm:$0xff] }
   0xf   : > { %s2693_s25 = sshll.u32 %s3865_s15, 8  ;;  %385 = vst [vmem:[#allocation2 + $0x70] sm:$0x3] %v2845_v1  ;;  %v2695_v18 = vld [vmem:[%s3818_s3] sm:$0xff]  ;;  %v2718_v22 = vld [vmem:[%s3818_s3 + $0xb8] sm:$0xff]  ;;  %v2717_v27 = vld [vmem:[%s3818_s3 + $0xb0] sm:$0xff] }
  0x10   : > { %s2912_s28 = scalar_lea.vmem %s3815_s0, %s2693_s25  ;;  %371 = vst [vmem:[#allocation2] sm:$0xff] %v2845_v1  ;;  %v2726_v23 = vld [vmem:[%s3818_s3 + $0xf8] sm:$0xff]  ;;  %v2725_v28 = vld [vmem:[%s3818_s3 + $0xf0] sm:$0xff]  ;;  %v2716_v61 = vld [vmem:[%s3818_s3 + $0xa8] sm:$0xff]  ;;  %s3721_s10 = scalar_lea.vmem %s3819_s4, %s2693_s25 }
  0x11   : > { %2770 = vmatpush.bf16.msra.mxu1 %v2701_v2  ;;  %2771 = vmatpush.bf16.msra.mxu2 %v2701_v2  ;;  %v241_v6 = vld [vmem:[%s2912_s28 + $0x30] sm:$0xff]  ;;  %v242_v7 = vld [vmem:[%s2912_s28 + $0x38] sm:$0xff]  ;;  %372 = vst [vmem:[#allocation2 + $0x8] sm:$0xff] %v2845_v1  ;;  %v243_v36 = vld [vmem:[%s2912_s28 + $0x40] sm:$0xff] }
  0x12   : > { %2772 = vmatpush.bf16.msra.mxu3 %v2701_v2  ;;  %1468 = vmatpush.bf16.msra.mxu0 %v2701_v2  ;;  %v277_v8 = vmul.f32 %v2903_v3, %v241_v6  ;;  %v278_v9 = vmul.f32 %v2903_v3, %v242_v7  ;;  %373 = vst [vmem:[#allocation2 + $0x10] sm:$0x3] %v2845_v1  ;;  %v2710_v24 = vld [vmem:[%s3818_s3 + $0x78] sm:$0xff]  ;;  %v2709_v29 = vld [vmem:[%s3818_s3 + $0x70] sm:$0xff]  ;;  %v244_v38 = vld [vmem:[%s2912_s28 + $0x48] sm:$0xff] }
  0x13   : > { %374 = vst [vmem:[#allocation2 + $0x18] sm:$0xff] %v2845_v1  ;;  %v2734_v25 = vld [vmem:[%s3818_s3 + $0x138] sm:$0xff]  ;;  %v249_v30 = vld [vmem:[%s2912_s28 + $0x70] sm:$0xff]  ;;  %v251_v40 = vld [vmem:[%s2912_s28 + $0x80] sm:$0xff]  ;;  %v279_v42 = vmul.f32 %v2903_v3, %v243_v36  ;;  %v280_v45 = vmul.f32 %v2903_v3, %v244_v38 }
  0x14   : > { %v2931_v10 = vadd.f32 %v2917_v4, %v277_v8  ;;  %v2934_v11 = vadd.f32 %v2917_v4, %v278_v9  ;;  %375 = vst [vmem:[#allocation2 + $0x20] sm:$0xff] %v2845_v1  ;;  %v250_v31 = vld [vmem:[%s2912_s28 + $0x78] sm:$0xff]  ;;  %v257_v32 = vld [vmem:[%s2912_s28 + $0xb0] sm:$0xff]  ;;  %v285_v33 = vmul.f32 %v2903_v3, %v249_v30  ;;  %v252_v43 = vld [vmem:[%s2912_s28 + $0x88] sm:$0xff]  ;;  %v287_v48 = vmul.f32 %v2903_v3, %v251_v40 }
  0x15   : > { %2773 = vmatpush.bf16.msra.mxu1 %v2700_v5  ;;  %2774 = vmatpush.bf16.msra.mxu2 %v2700_v5  ;;  %376 = vst [vmem:[#allocation2 + $0x28] sm:$0x3] %v2845_v1  ;;  %v258_v34 = vld [vmem:[%s2912_s28 + $0xb8] sm:$0xff]  ;;  %v286_v35 = vmul.f32 %v2903_v3, %v250_v31  ;;  %v293_v37 = vmul.f32 %v2903_v3, %v257_v32  ;;  %v259_v46 = vld [vmem:[%s2912_s28 + $0xc0] sm:$0xff]  ;;  %v260_v49 = vld [vmem:[%s2912_s28 + $0xc8] sm:$0xff] }
  0x16   : > { %2775 = vmatpush.bf16.msra.mxu3 %v2700_v5  ;;  %1469 = vmatpush.bf16.msra.mxu0 %v2700_v5  ;;  %v345_v13 = vmax.f32 %v2931_v10, 0.0  ;;  %v346_v14 = vmax.f32 %v2934_v11, 0.0  ;;  %377 = vst [vmem:[#allocation2 + $0x30] sm:$0xff] %v2845_v1  ;;  %v294_v39 = vmul.f32 %v2903_v3, %v258_v34  ;;  %v321_v41 = vadd.f32 %v2917_v4, %v285_v33  ;;  %v235_v52 = vld [vmem:[%s2912_s28] sm:$0xff]  ;;  %v236_v56 = vld [vmem:[%s2912_s28 + $0x8] sm:$0xff]  ;;  %v245_v57 = vld [vmem:[%s2912_s28 + $0x50] sm:$0xff] }
  0x17   : > { %378 = vst [vmem:[#allocation2 + $0x38] sm:$0xff] %v2845_v1  ;;  %v322_v44 = vadd.f32 %v2917_v4, %v286_v35  ;;  %v329_v47 = vadd.f32 %v2917_v4, %v293_v37  ;;  %v288_v51 = vmul.f32 %v2903_v3, %v252_v43  ;;  %v3049_v54 = vadd.f32 %v2917_v4, %v279_v42  ;;  %v2724_v62 = vld [vmem:[%s3818_s3 + $0xe8] sm:$0xff]  ;;  %v2733_v63 = vld [vmem:[%s3818_s3 + $0x130] sm:$0xff]  ;;  %v246_v7 = vld [vmem:[%s2912_s28 + $0x58] sm:$0xff] }
  0x18   : > { %432 = vst [vmem:[#allocation2 + $0x61] sm:$0xff] %v345_v13  ;;  %v330_v50 = vadd.f32 %v2917_v4, %v294_v39  ;;  %v353_v53 = vmax.f32 %v321_v41, 0.0  ;;  %v295_v55 = vmul.f32 %v2903_v3, %v259_v46  ;;  %v3056_v59 = vadd.f32 %v2917_v4, %v280_v45  ;;  %v2708_v6 = vld [vmem:[%s3818_s3 + $0x68] sm:$0xff]  ;;  %v262_v31 = vld [vmem:[%s2912_s28 + $0xd8] sm:$0xff]  ;;  %v237_v35 = vld [vmem:[%s2912_s28 + $0x10] sm:$0xff] }
  0x19   : > { %2776 = vmatpush.bf16.msra.mxu1 %v2699_v12  ;;  %2777 = vmatpush.bf16.msra.mxu2 %v2699_v12  ;;  %433 = vst [vmem:[#allocation2 + $0x69] sm:$0xff] %v346_v14  ;;  %v354_v58 = vmax.f32 %v322_v44, 0.0  ;;  %v296_v60 = vmul.f32 %v2903_v3, %v260_v49  ;;  %v361_v0 = vmax.f32 %v329_v47, 0.0  ;;  %v3070_v2 = vadd.f32 %v2917_v4, %v287_v48  ;;  %v238_v39 = vld [vmem:[%s2912_s28 + $0x18] sm:$0xff] }
  0x1a   : > { %2778 = vmatpush.bf16.msra.mxu3 %v2699_v12  ;;  %1470 = vmatpush.bf16.msra.mxu0 %v2699_v12  ;;  %379 = vst [vmem:[#allocation2 + $0x40] sm:$0x3] %v2845_v1  ;;  %v271_v5 = vmul.f32 %v2903_v3, %v235_v52  ;;  %v362_v8 = vmax.f32 %v330_v50, 0.0  ;;  %v3079_v9 = vadd.f32 %v2917_v4, %v288_v51 }
  0x1b   : > { %380 = vst [vmem:[#allocation2 + $0x48] sm:$0xff] %v2845_v1  ;;  %v272_v12 = vmul.f32 %v2903_v3, %v236_v56  ;;  %v298_v42 = vmul.f32 %v2903_v3, %v262_v31  ;;  %v273_v45 = vmul.f32 %v2903_v3, %v237_v35  ;;  %v274_v49 = vmul.f32 %v2903_v3, %v238_v39  ;;  %v2730_v35 = vld [vmem:[%s3818_s3 + $0x118] sm:$0xff] }
  0x1c   : > { %381 = vst [vmem:[#allocation2 + $0x50] sm:$0xff] %v2845_v1  ;;  %v356_v32 = vmax.f32 %v3079_v9, 0.0 }
  0x1d   : > { %2779 = vmatpush.bf16.msra.mxu1 %v2698_v15  ;;  %2780 = vmatpush.bf16.msra.mxu2 %v2698_v15  ;;  %382 = vst [vmem:[#allocation2 + $0x58] sm:$0x3] %v2845_v1  ;;  %v3111_v33 = vadd.f32 %v2917_v4, %v272_v12  ;;  %v248_v12 = vld [vmem:[%s2912_s28 + $0x68] sm:$0xff] }
  0x1e   : > { %2781 = vmatpush.bf16.msra.mxu3 %v2698_v15  ;;  %1471 = vmatpush.bf16.msra.mxu0 %v2698_v15  ;;  %386 = vst [vmem:[#allocation2 + $0x78] sm:$0xff] %v2845_v1  ;;  %v2715_v15 = vld [vmem:[%s3818_s3 + $0xa0] sm:$0xff] }
  0x1f   : > { %387 = vst [vmem:[#allocation2 + $0x80] sm:$0xff] %v2845_v1  ;;  %v466_v19 = vld [vmem:[#allocation2 + $0x60] sm:$0xff]  ;;  %v340_v47 = vmax.f32 %v3111_v33, 0.0  ;;  %v2741_v33 = vld [vmem:[%s3818_s3 + $0x170] sm:$0xff] }
  0x20   : > { %388 = vst [vmem:[#allocation2 + $0x88] sm:$0x3] %v2845_v1  ;;  %v467_v20 = vld [vmem:[#allocation2 + $0x68] sm:$0xff] }
  0x21   : > { %2782 = vmatpush.bf16.msra.mxu1 %v2697_v16  ;;  %2783 = vmatpush.bf16.msra.mxu2 %v2697_v16  ;;  %389 = vst [vmem:[#allocation2 + $0x90] sm:$0xff] %v2845_v1  ;;  %v2975_v21 = vpack.c.bf16 %v467_v20, %v466_v19  ;;  %v2732_v19 = vld [vmem:[%s3818_s3 + $0x128] sm:$0xff]  ;;  %v2707_v20 = vld [vmem:[%s3818_s3 + $0x60] sm:$0xff] }
  0x22   : > { %2784 = vmatpush.bf16.msra.mxu3 %v2697_v16  ;;  %1472 = vmatpush.bf16.msra.mxu0 %v2697_v16  ;;  %390 = vst [vmem:[#allocation2 + $0x98] sm:$0xff] %v2845_v1  ;;  %v2723_v16 = vld [vmem:[%s3818_s3 + $0xe0] sm:$0xff] }
  0x23   : > { %391 = vst [vmem:[#allocation2 + $0xa0] sm:$0x3] %v2845_v1 }
  0x24   : > { %392 = vst [vmem:[#allocation2 + $0xa8] sm:$0xff] %v2845_v1 }
  0x25   : > { %2785 = vmatpush.bf16.msra.mxu1 %v2696_v17  ;;  %2786 = vmatpush.bf16.msra.mxu2 %v2696_v17  ;;  %393 = vst [vmem:[#allocation2 + $0xb0] sm:$0xff] %v2845_v1 }
  0x26   : > { %2787 = vmatpush.bf16.msra.mxu3 %v2696_v17  ;;  %1473 = vmatpush.bf16.msra.mxu0 %v2696_v17  ;;  %394 = vst [vmem:[#allocation2 + $0xb8] sm:$0x3] %v2845_v1  ;;  %v253_v17 = vld [vmem:[%s2912_s28 + $0x90] sm:$0xff] }
  0x27   : > { %395 = vst [vmem:[#allocation2 + $0xc0] sm:$0xff] %v2845_v1  ;;  %v289_v30 = vmul.f32 %v2903_v3, %v253_v17  ;;  %v2714_v17 = vld [vmem:[%s3818_s3 + $0x98] sm:$0xff] }
  0x28   : > { %396 = vst [vmem:[#allocation2 + $0xc8] sm:$0xff] %v2845_v1 }
  0x29   : > { %2788 = vmatpush.bf16.msra.mxu1 %v2695_v18  ;;  %2789 = vmatpush.bf16.msra.mxu2 %v2695_v18  ;;  %397 = vst [vmem:[#allocation2 + $0xd0] sm:$0x3] %v2845_v1  ;;  %v3132_v44 = vadd.f32 %v2917_v4, %v289_v30 }
  0x2a   : > { %2790 = vmatpush.bf16.msra.mxu3 %v2695_v18  ;;  %1474 = vmatpush.bf16.msra.mxu0 %v2695_v18  ;;  %398 = vst [vmem:[#allocation2 + $0xd8] sm:$0xff] %v2845_v1  ;;  %v331_v18 = vadd.f32 %v2917_v4, %v295_v55 }
  0x2b   : > { %399 = vst [vmem:[#allocation2 + $0xe0] sm:$0xff] %v2845_v1 }
  0x2c   : > { %1495 = vmatmul.bf16.vlgmr.msra.gmra.mxu1 %v2975_v21  ;;  %400 = vst [vmem:[#allocation2 + $0xe8] sm:$0x3] %v2845_v1  ;;  %v363_v36 = vmax.f32 %v331_v18, 0.0  ;;  %v2722_v18 = vld [vmem:[%s3818_s3 + $0xd8] sm:$0xff] }
  0x2d   : > { %401 = vst [vmem:[#allocation2 + $0xf0] sm:$0xff] %v2845_v1  ;;  %1645 = vmatpush.bf16.msrb.mxu2 %v2718_v22  ;;  %1475 = vmatmul.bf16.vlgmr.msra.gmra.mxu0 %v2846_v26  ;;  %v281_v22 = vmul.f32 %v2903_v3, %v245_v57  ;;  %v282_v26 = vmul.f32 %v2903_v3, %v246_v7 }
  0x2e   : > { %402 = vst [vmem:[#allocation2 + $0xf8] sm:$0xff] %v2845_v1  ;;  %1734 = vmatpush.bf16.msrb.mxu3 %v2726_v23  ;;  %1556 = vmatpush.bf16.msrb.mxu1 %v2710_v24  ;;  %v254_v23 = vld [vmem:[%s2912_s28 + $0x98] sm:$0xff]  ;;  %v348_v24 = vmax.f32 %v3056_v59, 0.0  ;;  %v334_v57 = vadd.f32 %v2917_v4, %v298_v42  ;;  %v255_v42 = vld [vmem:[%s2912_s28 + $0xa0] sm:$0xff] }
  0x2f   : > { %403 = vst [vmem:[#allocation2 + $0x100] sm:$0x3] %v2845_v1  ;;  %1823 = vmatpush.bf16.msrb.mxu0 %v2734_v25  ;;  %v332_v25 = vadd.f32 %v2917_v4, %v296_v60  ;;  %v290_v34 = vmul.f32 %v2903_v3, %v254_v23  ;;  %v3118_v37 = vadd.f32 %v2917_v4, %v281_v22  ;;  %v357_v60 = vmax.f32 %v3132_v44, 0.0  ;;  %v2731_v23 = vld [vmem:[%s3818_s3 + $0x120] sm:$0xff] }
  0x30   : > { %404 = vst [vmem:[#allocation2 + $0x108] sm:$0xff] %v2845_v1  ;;  %v3125_v41 = vadd.f32 %v2917_v4, %v282_v26  ;;  %v2755_v59 = vld [vmem:[%s3818_s3 + $0x1e0] sm:$0xff] }
  0x31   : > { %405 = vst [vmem:[#allocation2 + $0x110] sm:$0xff] %v2845_v1  ;;  %1646 = vmatpush.bf16.msrb.mxu2 %v2717_v27  ;;  %v261_v27 = vld [vmem:[%s2912_s28 + $0xd0] sm:$0xff]  ;;  %v364_v40 = vmax.f32 %v332_v25, 0.0  ;;  %v3139_v48 = vadd.f32 %v2917_v4, %v290_v34  ;;  %v349_v51 = vmax.f32 %v3118_v37, 0.0  ;;  %v2706_v25 = vld [vmem:[%s3818_s3 + $0x58] sm:$0xff] }
  0x32   : > { %406 = vst [vmem:[#allocation2 + $0x118] sm:$0x3] %v2845_v1  ;;  %1735 = vmatpush.bf16.msrb.mxu3 %v2725_v28  ;;  %1557 = vmatpush.bf16.msrb.mxu1 %v2709_v29  ;;  %v355_v28 = vmax.f32 %v3070_v2, 0.0  ;;  %v3105_v29 = vadd.f32 %v2917_v4, %v271_v5  ;;  %v297_v38 = vmul.f32 %v2903_v3, %v261_v27  ;;  %v350_v56 = vmax.f32 %v3125_v41, 0.0  ;;  %v2713_v27 = vld [vmem:[%s3818_s3 + $0x90] sm:$0xff] }
  0x33   : > { %407 = vst [vmem:[#allocation2 + $0x120] sm:$0xff] %v2845_v1  ;;  %1824 = vmatpush.bf16.msrb.mxu0 %v2733_v63  ;;  %v3156_v5 = vadd.f32 %v2917_v4, %v274_v49  ;;  %v2721_v34 = vld [vmem:[%s3818_s3 + $0xd0] sm:$0xff]  ;;  %v291_v49 = vmul.f32 %v2903_v3, %v255_v42 }
  0x34   : > { %408 = vst [vmem:[#allocation2 + $0x128] sm:$0xff] %v2845_v1  ;;  %v339_v43 = vmax.f32 %v3105_v29, 0.0  ;;  %v333_v52 = vadd.f32 %v2917_v4, %v297_v38  ;;  %v2757_v29 = vld [vmem:[%s3818_s3 + $0x1f0] sm:$0xff] }
  0x35   : > { %409 = vst [vmem:[#allocation2 + $0x130] sm:$0x3] %v2845_v1  ;;  %1647 = vmatpush.bf16.msrb.mxu2 %v2716_v61  ;;  %v3150_v61 = vadd.f32 %v2917_v4, %v273_v45  ;;  %v342_v26 = vmax.f32 %v3156_v5, 0.0  ;;  %v256_v45 = vld [vmem:[%s2912_s28 + $0xa8] sm:$0xff] }
  0x36   : > { %410 = vst [vmem:[#allocation2 + $0x138] sm:$0xff] %v2845_v1  ;;  %1736 = vmatpush.bf16.msrb.mxu3 %v2724_v62  ;;  %1558 = vmatpush.bf16.msrb.mxu1 %v2708_v6  ;;  %v365_v7 = vmax.f32 %v333_v52, 0.0  ;;  %v263_v52 = vld [vmem:[%s2912_s28 + $0xe0] sm:$0xff] }
  0x37   : > { %411 = vst [vmem:[#allocation2 + $0x140] sm:$0xff] %v2845_v1  ;;  %1825 = vmatpush.bf16.msrb.mxu0 %v2732_v19  ;;  %v341_v22 = vmax.f32 %v3150_v61, 0.0  ;;  %v2749_v61 = vld [vmem:[%s3818_s3 + $0x1b0] sm:$0xff] }
  0x38   : > { %412 = vst [vmem:[#allocation2 + $0x148] sm:$0x3] %v2845_v1 }
  0x39   : > { %413 = vst [vmem:[#allocation2 + $0x150] sm:$0xff] %v2845_v1  ;;  %1648 = vmatpush.bf16.msrb.mxu2 %v2715_v15 }
  0x3a   : > { %414 = vst [vmem:[#allocation2 + $0x158] sm:$0xff] %v2845_v1  ;;  %1737 = vmatpush.bf16.msrb.mxu3 %v2723_v16  ;;  %1559 = vmatpush.bf16.msrb.mxu1 %v2707_v20  ;;  %v366_v16 = vmax.f32 %v334_v57, 0.0  ;;  %v284_v20 = vmul.f32 %v2903_v3, %v248_v12  ;;  %v299_v57 = vmul.f32 %v2903_v3, %v263_v52 }
  0x3b   : > { %415 = vst [vmem:[#allocation2 + $0x160] sm:$0x3] %v2845_v1  ;;  %1826 = vmatpush.bf16.msrb.mxu0 %v2731_v23 }
  0x3c   : > { %416 = vst [vmem:[#allocation2 + $0x168] sm:$0xff] %v2845_v1  ;;  %v3194_v31 = vadd.f32 %v2917_v4, %v284_v20 }
  0x3d   : > { %417 = vst [vmem:[#allocation2 + $0x170] sm:$0xff] %v2845_v1  ;;  %1649 = vmatpush.bf16.msrb.mxu2 %v2714_v17  ;;  %v335_v17 = vadd.f32 %v2917_v4, %v299_v57  ;;  %v2729_v57 = vld [vmem:[%s3818_s3 + $0x110] sm:$0xff] }
  0x3e   : > { %418 = vst [vmem:[#allocation2 + $0x178] sm:$0x3] %v2845_v1  ;;  %1738 = vmatpush.bf16.msrb.mxu3 %v2722_v18  ;;  %1560 = vmatpush.bf16.msrb.mxu1 %v2706_v25 }
  0x3f   : > { %419 = vst [vmem:[#allocation2 + $0x180] sm:$0xff] %v2845_v1  ;;  %1827 = vmatpush.bf16.msrb.mxu0 %v2730_v35 }
  0x40   : > { %420 = vst [vmem:[#allocation2 + $0x188] sm:$0xff] %v2845_v1 }
  0x41   : > { %421 = vst [vmem:[#allocation2 + $0x190] sm:$0x3] %v2845_v1  ;;  %1650 = vmatpush.bf16.msrb.mxu2 %v2713_v27 }
  0x42   : > { %422 = vst [vmem:[#allocation2 + $0x198] sm:$0xff] %v2845_v1  ;;  %1739 = vmatpush.bf16.msrb.mxu3 %v2721_v34 }
  0x43   : > { %423 = vst [vmem:[#allocation2 + $0x1a0] sm:$0xff] %v2845_v1  ;;  %1828 = vmatpush.bf16.msrb.mxu0 %v2729_v57  ;;  %v2750_v57 = vld [vmem:[%s3818_s3 + $0x1b8] sm:$0xff] }
  0x44   : > { %424 = vst [vmem:[#allocation2 + $0x1a8] sm:$0x3] %v2845_v1  ;;  %v347_v1 = vmax.f32 %v3049_v54, 0.0  ;;  %v2747_v54 = vld [vmem:[%s3818_s3 + $0x1a0] sm:$0xff] }
  0x45   : > { %440 = vst [vmem:[#allocation2 + $0xc1] sm:$0xff] %v353_v53 }
  0x46   : > { %441 = vst [vmem:[#allocation2 + $0xc9] sm:$0xff] %v354_v58  ;;  %v787_v10 = vpack.c.bf16 %v348_v24, %v347_v1 }
  0x47   : > { %448 = vst [vmem:[#allocation2 + $0x121] sm:$0xff] %v361_v0  ;;  %v358_v0 = vmax.f32 %v3139_v48, 0.0 }
  0x48   : > { %449 = vst [vmem:[#allocation2 + $0x129] sm:$0xff] %v362_v8  ;;  %v247_v8 = vld [vmem:[%s2912_s28 + $0x60] sm:$0xff] }
  0x49   : > { %434 = vst [vmem:[#allocation2 + $0x79] sm:$0xff] %v347_v1  ;;  %v283_v19 = vmul.f32 %v2903_v3, %v247_v8  ;;  %v3226_v8 = vadd.f32 %v2917_v4, %v291_v49 }
  0x4a   : > { %435 = vst [vmem:[#allocation2 + $0x81] sm:$0xff] %v348_v24 }
  0x4b   : > { %442 = vst [vmem:[#allocation2 + $0xd9] sm:$0xff] %v355_v28  ;;  %v3191_v30 = vadd.f32 %v2917_v4, %v283_v19  ;;  %v359_v23 = vmax.f32 %v3226_v8, 0.0 }
  0x4c   : > { %v474_v46 = vld [vmem:[#allocation2 + $0xc0] sm:$0xff]  ;;  %443 = vst [vmem:[#allocation2 + $0xe1] sm:$0xff] %v356_v32 }
  0x4d   : > { %v475_v50 = vld [vmem:[#allocation2 + $0xc8] sm:$0xff]  ;;  %450 = vst [vmem:[#allocation2 + $0x139] sm:$0xff] %v363_v36  ;;  %v2705_v36 = vld [vmem:[%s3818_s3 + $0x50] sm:$0xff]  ;;  %v351_v39 = vmax.f32 %v3191_v30, 0.0 }
  0x4e   : > { %v819_v53 = vpack.c.bf16 %v475_v50, %v474_v46  ;;  %v482_v55 = vld [vmem:[#allocation2 + $0x120] sm:$0xff]  ;;  %451 = vst [vmem:[#allocation2 + $0x141] sm:$0xff] %v364_v40  ;;  %v352_v40 = vmax.f32 %v3194_v31, 0.0  ;;  %v292_v50 = vmul.f32 %v2903_v3, %v256_v45  ;;  %1561 = vmatpush.bf16.msrb.mxu1 %v2705_v36  ;;  %v367_v36 = vmax.f32 %v335_v17, 0.0  ;;  %v2746_v31 = vld [vmem:[%s3818_s3 + $0x198] sm:$0xff] }
  0x4f   : > { %v483_v58 = vld [vmem:[#allocation2 + $0x128] sm:$0xff]  ;;  %426 = vst [vmem:[#allocation2 + $0x19] sm:$0xff] %v339_v43 }
  0x50   : > { %1515 = vmatmul.bf16.vlgmr.msra.gmra.mxu2 %v819_v53  ;;  %v855_v62 = vpack.c.bf16 %v483_v58, %v482_v55  ;;  %v468_v63 = vld [vmem:[#allocation2 + $0x78] sm:$0xff]  ;;  %427 = vst [vmem:[#allocation2 + $0x21] sm:$0xff] %v340_v47  ;;  %v264_v53 = vld [vmem:[%s2912_s28 + $0xe8] sm:$0xff]  ;;  %v3229_v12 = vadd.f32 %v2917_v4, %v292_v50 }
  0x51   : > { %v469_v6 = vld [vmem:[#allocation2 + $0x80] sm:$0xff]  ;;  %436 = vst [vmem:[#allocation2 + $0x91] sm:$0xff] %v349_v51  ;;  %v300_v58 = vmul.f32 %v2903_v3, %v264_v53  ;;  %v2720_v53 = vld [vmem:[%s3818_s3 + $0xc8] sm:$0xff] }
  0x52   : > { %1535 = vmatmul.bf16.vlgmr.msra.gmra.mxu3 %v855_v62  ;;  %v3162_v15 = vpack.c.bf16 %v469_v6, %v468_v63  ;;  %437 = vst [vmem:[#allocation2 + $0x99] sm:$0xff] %v350_v56  ;;  %v239_v62 = vld [vmem:[%s2912_s28 + $0x20] sm:$0xff]  ;;  %v240_v63 = vld [vmem:[%s2912_s28 + $0x28] sm:$0xff]  ;;  %v476_v6 = vld [vmem:[#allocation2 + $0xd8] sm:$0xff]  ;;  %v3820_v25 = vmax.f32 %v3229_v12, 0.0 }
  0x53   : > { %444 = vst [vmem:[#allocation2 + $0xf1] sm:$0xff] %v357_v60  ;;  %v336_v18 = vadd.f32 %v2917_v4, %v300_v58  ;;  %v276_v27 = vmul.f32 %v2903_v3, %v240_v63  ;;  %v2704_v63 = vld [vmem:[%s3818_s3 + $0x48] sm:$0xff]  ;;  %1740 = vmatpush.bf16.msrb.mxu3 %v2720_v53 }
  0x54   : > { %1500 = vmatmul.bf16.gmra.mxu1 %v3162_v15  ;;  %445 = vst [vmem:[#allocation2 + $0xf9] sm:$0xff] %v358_v0  ;;  %v484_v19 = vld [vmem:[#allocation2 + $0x138] sm:$0xff] }
  0x55   : > { %452 = vst [vmem:[#allocation2 + $0x151] sm:$0xff] %v365_v7  ;;  %v477_v7 = vld [vmem:[#allocation2 + $0xe0] sm:$0xff]  ;;  %1562 = vmatpush.bf16.msrb.mxu1 %v2704_v63 }
  0x56   : > { %v460_v38 = vld [vmem:[#allocation2 + $0x18] sm:$0xff]  ;;  %453 = vst [vmem:[#allocation2 + $0x159] sm:$0xff] %v366_v16  ;;  %v275_v16 = vmul.f32 %v2903_v3, %v239_v62  ;;  %v485_v20 = vld [vmem:[#allocation2 + $0x140] sm:$0xff]  ;;  %v3243_v35 = vpack.c.bf16 %v477_v7, %v476_v6 }
  0x57   : > { %v461_v46 = vld [vmem:[#allocation2 + $0x20] sm:$0xff]  ;;  %428 = vst [vmem:[#allocation2 + $0x31] sm:$0xff] %v341_v22  ;;  %v864_v50 = vpack.c.bf16 %v485_v20, %v484_v19 }
  0x58   : > { %v3215_v55 = vpack.c.bf16 %v461_v46, %v460_v38  ;;  %429 = vst [vmem:[#allocation2 + $0x39] sm:$0xff] %v342_v26  ;;  %v3241_v34 = vadd.f32 %v2917_v4, %v275_v16  ;;  %v368_v38 = vmax.f32 %v336_v18, 0.0  ;;  %v470_v42 = vld [vmem:[#allocation2 + $0x90] sm:$0xff]  ;;  %v3248_v46 = vadd.f32 %v2917_v4, %v276_v27  ;;  %v2712_v4 = vld [vmem:[%s3818_s3 + $0x88] sm:$0xff]  ;;  %v2711_v6 = vld [vmem:[%s3818_s3 + $0x80] sm:$0xff] }
  0x59   : > { %438 = vst [vmem:[#allocation2 + $0xa9] sm:$0xff] %v351_v39  ;;  %v471_v45 = vld [vmem:[#allocation2 + $0x98] sm:$0xff]  ;;  %1651 = vmatpush.bf16.msrb.mxu2 %v2712_v4  ;;  %v2719_v7 = vld [vmem:[%s3818_s3 + $0xc0] sm:$0xff]  ;;  %v2728_v16 = vld [vmem:[%s3818_s3 + $0x108] sm:$0xff] }
  0x5a   : > { %1480 = vmatmul.bf16.gmra.mxu0 %v3215_v55  ;;  %439 = vst [vmem:[#allocation2 + $0xb1] sm:$0xff] %v352_v40  ;;  %v343_v49 = vmax.f32 %v3241_v34, 0.0  ;;  %v344_v3 = vmax.f32 %v3248_v46, 0.0  ;;  %v3255_v52 = vpack.c.bf16 %v471_v45, %v470_v42  ;;  %v2703_v18 = vld [vmem:[%s3818_s3 + $0x40] sm:$0xff]  ;;  %v478_v19 = vld [vmem:[#allocation2 + $0xf0] sm:$0xff]  ;;  %1741 = vmatpush.bf16.msrb.mxu3 %v2719_v7  ;;  %v2766_v7 = vld [vmem:[%s3818_s3 + $0x238] sm:$0xff] }
  0x5b   : > { %446 = vst [vmem:[#allocation2 + $0x109] sm:$0xff] %v359_v23  ;;  %v479_v20 = vld [vmem:[#allocation2 + $0xf8] sm:$0xff]  ;;  %1829 = vmatpush.bf16.msrb.mxu0 %v2728_v16  ;;  %v2727_v27 = vld [vmem:[%s3818_s3 + $0x100] sm:$0xff]  ;;  %1563 = vmatpush.bf16.msrb.mxu1 %v2703_v18 }
  0x5c   : > { %447 = vst [vmem:[#allocation2 + $0x111] sm:$0xff] %v3820_v25  ;;  %v3292_v42 = vpack.c.bf16 %v479_v20, %v478_v19  ;;  %v769_v5 = vpack.c.bf16 %v344_v3, %v343_v49 }
  0x5d   : > { %454 = vst [vmem:[#allocation2 + $0x169] sm:$0xff] %v367_v36  ;;  %1652 = vmatpush.bf16.msrb.mxu2 %v2711_v6  ;;  %v486_v36 = vld [vmem:[#allocation2 + $0x150] sm:$0xff] }
  0x5e   : > { %455 = vst [vmem:[#allocation2 + $0x171] sm:$0xff] %v368_v38  ;;  %v462_v58 = vld [vmem:[#allocation2 + $0x30] sm:$0xff]  ;;  %v487_v38 = vld [vmem:[#allocation2 + $0x158] sm:$0xff] }
  0x5f   : > { %430 = vst [vmem:[#allocation2 + $0x49] sm:$0xff] %v343_v49  ;;  %v463_v62 = vld [vmem:[#allocation2 + $0x38] sm:$0xff]  ;;  %1830 = vmatpush.bf16.msrb.mxu0 %v2727_v27  ;;  %v873_v4 = vpack.c.bf16 %v487_v38, %v486_v36  ;;  %v490_v38 = vld [vmem:[#allocation2 + $0x1] sm:$0xff] }
  0x60   : > { %1520 = vmatmul.bf16.gmra.mxu2 %v3243_v35  ;;  %431 = vst [vmem:[#allocation2 + $0x51] sm:$0xff] %v344_v3  ;;  %v3283_v17 = vpack.c.bf16 %v463_v62, %v462_v58  ;;  %v472_v45 = vld [vmem:[#allocation2 + $0xa8] sm:$0xff]  ;;  %v2758_v58 = vld [vmem:[%s3818_s3 + $0x1f8] sm:$0xff] }
  0x61   : > { %v2742_v62 = vld [vmem:[%s3818_s3 + $0x178] sm:$0xff]  ;;  %2001 = vmatpush.bf16.msra.mxu2 %v2750_v57  ;;  %2090 = vmatpush.bf16.msra.mxu3 %v2758_v58  ;;  %v760_v57 = vpack.c.bf16 %v342_v26, %v341_v22  ;;  %v751_v58 = vpack.c.bf16 %v340_v47, %v339_v43  ;;  %v2765_v43 = vld [vmem:[%s3818_s3 + $0x230] sm:$0xff]  ;;  %v525_v22 = vld [vmem:[#allocation2 + $0x22] sm:$0xff] }
  0x62   : > { %1540 = vmatmul.bf16.gmra.mxu3 %v864_v50  ;;  %v473_v50 = vld [vmem:[#allocation2 + $0xb0] sm:$0xff]  ;;  %1912 = vmatpush.bf16.msra.mxu1 %v2742_v62  ;;  %v480_v18 = vld [vmem:[#allocation2 + $0x108] sm:$0xff]  ;;  %v524_v47 = vld [vmem:[#allocation2 + $0x1a] sm:$0xff] }
  0x63   : > { %v3295_v53 = vpack.c.bf16 %v473_v50, %v472_v45  ;;  %2179 = vmatpush.bf16.msra.mxu0 %v2766_v7  ;;  %v481_v19 = vld [vmem:[#allocation2 + $0x110] sm:$0xff]  ;;  %v522_v62 = vld [vmem:[#allocation2 + $0x2] sm:$0xff]  ;;  %v3338_v26 = vpack.c.bf16 %v525_v22, %v524_v47  ;;  %v527_v34 = vld [vmem:[#allocation2 + $0x3a] sm:$0xff] }
  0x64   : > { %1505 = vmatmul.bf16.gmra.mxu1 %v3255_v52  ;;  %v488_v20 = vld [vmem:[#allocation2 + $0x168] sm:$0xff]  ;;  %v3310_v36 = vpack.c.bf16 %v481_v19, %v480_v18  ;;  %v534_v47 = vld [vmem:[#allocation2 + $0x92] sm:$0xff]  ;;  %v535_v22 = vld [vmem:[#allocation2 + $0x9a] sm:$0xff] }
  0x65   : > { %v489_v27 = vld [vmem:[#allocation2 + $0x170] sm:$0xff]  ;;  %2002 = vmatpush.bf16.msra.mxu2 %v2749_v61  ;;  %2091 = vmatpush.bf16.msra.mxu3 %v2757_v29  ;;  %v2748_v49 = vld [vmem:[%s3818_s3 + $0x1a8] sm:$0xff] }
  0x66   : > { %v464_v63 = vld [vmem:[#allocation2 + $0x48] sm:$0xff]  ;;  %v882_v50 = vpack.c.bf16 %v489_v27, %v488_v20  ;;  %1913 = vmatpush.bf16.msra.mxu1 %v2741_v33 }
  0x67   : > { %v465_v6 = vld [vmem:[#allocation2 + $0x50] sm:$0xff]  ;;  %2180 = vmatpush.bf16.msra.mxu0 %v2765_v43  ;;  %v2756_v3 = vld [vmem:[%s3818_s3 + $0x1e8] sm:$0xff] }
  0x68   : > { %v774_v16 = vpack.c.bf16 %v465_v6, %v464_v63  ;;  %v491_v45 = vld [vmem:[#allocation2 + $0x9] sm:$0xff]  ;;  %v529_v19 = vld [vmem:[#allocation2 + $0x52] sm:$0xff] }
  0x69   : > { %v523_v63 = vld [vmem:[#allocation2 + $0xa] sm:$0xff]  ;;  %2003 = vmatpush.bf16.msra.mxu2 %v2748_v49  ;;  %2092 = vmatpush.bf16.msra.mxu3 %v2756_v3 }
  0x6a   : > { %1485 = vmatmul.bf16.gmra.mxu0 %v3283_v17  ;;  %v749_v6 = vpack.c.bf16 %v523_v63, %v522_v62  ;;  %v2764_v7 = vld [vmem:[%s3818_s3 + $0x228] sm:$0xff]  ;;  %v532_v62 = vld [vmem:[#allocation2 + $0x7a] sm:$0xff] }
  0x6b   : > { %2181 = vmatpush.bf16.msra.mxu0 %v2764_v7  ;;  %v528_v18 = vld [vmem:[#allocation2 + $0x4a] sm:$0xff]  ;;  %v533_v63 = vld [vmem:[#allocation2 + $0x82] sm:$0xff] }
  0x6c   : > { %v3361_v20 = vpack.c.bf16 %v529_v19, %v528_v18  ;;  %v601_v7 = vld [vmem:[#allocation2 + $0xc9] sm:$0xff]  ;;  %v2762_v19 = vld [vmem:[%s3818_s3 + $0x218] sm:$0xff] }
  0x6d   : > { %2004 = vmatpush.bf16.msra.mxu2 %v2747_v54  ;;  %2093 = vmatpush.bf16.msra.mxu3 %v2755_v59 }
  0x70   : > { %1525 = vmatmul.bf16.gmra.mxu2 %v3292_v42 }
  0x71   : > { %2005 = vmatpush.bf16.msra.mxu2 %v2746_v31 }
  0x72   : > { %1545 = vmatmul.bf16.gmra.mxu3 %v873_v4  ;;  %v748_v4 = vpack.c.bf16 %v491_v45, %v490_v38 }
  0x74   : > { %1510 = vmatmul.bf16.gmra.mxu1 %v3295_v53 }
  0x7a   : > { %1490 = vmatmul.bf16.gmra.mxu0 %v774_v16 }
  0x80   : > { %1530 = vmatmul.bf16.gmra.mxu2 %v3310_v36 }
  0x82   : > { %1550 = vmatmul.bf16.gmra.mxu3 %v882_v50 }
  0x84   : > { %1564 = vmatmul.bf16.vlgmr.msrb.gmra.mxu1 %v748_v4  ;;  %v2739_v4 = vld [vmem:[%s3818_s3 + $0x160] sm:$0xff] }
  0x8a   : > { %1831 = vmatmul.bf16.vlgmr.msrb.gmra.mxu0 %v751_v58 }
  0x90   : > { %1653 = vmatmul.bf16.vlgmr.msrb.gmra.mxu2 %v749_v6 }
  0x92   : > { %1742 = vmatmul.bf16.vlgmr.msrb.gmra.mxu3 %v3215_v55  ;;  %v526_v55 = vld [vmem:[#allocation2 + $0x32] sm:$0xff] }
  0x93   : > { %v3342_v46 = vpack.c.bf16 %v527_v34, %v526_v55 }
  0x94   : > { %1569 = vmatmul.bf16.gmra.mxu1 %v751_v58 }
  0x9a   : > { %1836 = vmatmul.bf16.gmra.mxu0 %v760_v57 }
  0xa0   : > { %1658 = vmatmul.bf16.gmra.mxu2 %v3338_v26 }
  0xa2   : > { %1747 = vmatmul.bf16.gmra.mxu3 %v3283_v17  ;;  %v2740_v17 = vld [vmem:[%s3818_s3 + $0x168] sm:$0xff] }
  0xa3   : > { %1914 = vmatpush.bf16.msra.mxu1 %v2740_v17  ;;  %v600_v17 = vld [vmem:[#allocation2 + $0xc1] sm:$0xff] }
  0xa4   : > { %1574 = vmatmul.bf16.gmra.mxu1 %v760_v57  ;;  %v796_v57 = vpack.c.bf16 %v350_v56, %v349_v51  ;;  %v805_v56 = vpack.c.bf16 %v352_v40, %v351_v39  ;;  %v2754_v39 = vld [vmem:[%s3818_s3 + $0x1d8] sm:$0xff]  ;;  %v814_v18 = vpack.c.bf16 %v601_v7, %v600_v17  ;;  %v538_v7 = vld [vmem:[#allocation2 + $0xc2] sm:$0xff] }
  0xa5   : > { %2094 = vmatpush.bf16.msra.mxu3 %v2754_v39  ;;  %v823_v39 = vpack.c.bf16 %v356_v32, %v355_v28 }
  0xa7   : > { %1915 = vmatpush.bf16.msra.mxu1 %v2739_v4  ;;  %v568_v4 = vld [vmem:[#allocation2 + $0xc0] sm:$0xff] }
  0xa9   : > { %v3363_v27 = vpop.f32.mrf.mxu1 }
  0xaa   : > { %1841 = vmatmul.bf16.gmra.mxu0 %v769_v5  ;;  %v3367_v38 = vpop.f32.mrf.mxu0 }
  0xb0   : > { %1663 = vmatmul.bf16.gmra.mxu2 %v3342_v46 }
  0xb1   : > { %v3373_v11 = vpop.f32.mrf.mxu1 }
  0xb2   : > { %1752 = vmatmul.bf16.gmra.mxu3 %v774_v16  ;;  %v778_v16 = vpack.c.bf16 %v346_v14, %v345_v13  ;;  %v530_v13 = vld [vmem:[#allocation2 + $0x62] sm:$0xff]  ;;  %v531_v14 = vld [vmem:[#allocation2 + $0x6a] sm:$0xff]  ;;  %v3377_v50 = vpop.f32.mrf.mxu0 }
  0xb3   : > { %v3375_v45 = vpack.c.bf16 %v531_v14, %v530_v13  ;;  %v536_v13 = vld [vmem:[#allocation2 + $0xaa] sm:$0xff]  ;;  %v537_v14 = vld [vmem:[#allocation2 + $0xb2] sm:$0xff] }
  0xb4   : > { %1579 = vmatmul.bf16.gmra.mxu1 %v769_v5  ;;  %v3409_v5 = vpack.c.bf16 %v533_v63, %v532_v62 }
  0xba   : > { %1846 = vmatmul.bf16.gmra.mxu0 %v778_v16 }
  0xc0   : > { %1668 = vmatmul.bf16.gmra.mxu2 %v3361_v20 }
  0xc2   : > { %1757 = vmatmul.bf16.gmra.mxu3 %v2975_v21 }
  0xc4   : > { %1584 = vmatmul.bf16.gmra.mxu1 %v778_v16 }
  0xca   : > { %1851 = vmatmul.bf16.gmra.mxu0 %v787_v10 }
  0xd0   : > { %1673 = vmatmul.bf16.gmra.mxu2 %v3375_v45 }
  0xd1   : > { %v3380_v21 = vpop.f32.mrf.mxu1 }
  0xd2   : > { %1762 = vmatmul.bf16.gmra.mxu3 %v3162_v15  ;;  %v2763_v15 = vld [vmem:[%s3818_s3 + $0x220] sm:$0xff] }
  0xd3   : > { %v3389_v1 = vpop.f32.mrf.mxu2  ;;  %2182 = vmatpush.bf16.msra.mxu0 %v2763_v15  ;;  %v569_v15 = vld [vmem:[#allocation2 + $0xc8] sm:$0xff] }
  0xd4   : > { %1589 = vmatmul.bf16.gmra.mxu1 %v787_v10  ;;  %v813_v63 = vpack.c.bf16 %v569_v15, %v568_v4 }
  0xd5   : > { %v3391_v24 = vpop.f32.mrf.mxu3 }
  0xd7   : > { %v3403_v58 = vpop.f32.mrf.mxu0  ;;  %2183 = vmatpush.bf16.msra.mxu0 %v2762_v19 }
  0xd9   : > { %v3405_v6 = vpop.f32.mrf.mxu1 }
  0xda   : > { %1856 = vmatmul.bf16.gmra.mxu0 %v796_v57 }
  0xdb   : > { %v3407_v61 = vpop.f32.mrf.mxu2 }
  0xdd   : > { %v3411_v29 = vpop.f32.mrf.mxu3 }
  0xdf   : > { %v3413_v33 = vpop.f32.mrf.mxu0 }
  0xe0   : > { %1678 = vmatmul.bf16.gmra.mxu2 %v3409_v5 }
  0xe1   : > { %v3416_v37 = vpop.f32.mrf.mxu1 }
  0xe2   : > { %1767 = vmatmul.bf16.gmra.mxu3 %v3255_v52  ;;  %v3433_v52 = vpack.c.bf16 %v535_v22, %v534_v47 }
  0xe3   : > { %v3419_v41 = vpop.f32.mrf.mxu2 }
  0xe4   : > { %1594 = vmatmul.bf16.gmra.mxu1 %v796_v57  ;;  %v3465_v57 = vpack.c.bf16 %v537_v14, %v536_v13 }
  0xe5   : > { %v3421_v51 = vpop.f32.mrf.mxu3 }
  0xe7   : > { %v3427_v43 = vpop.f32.mrf.mxu0 }
  0xe9   : > { %v3429_v55 = vpop.f32.mrf.mxu1 }
  0xea   : > { %1861 = vmatmul.bf16.gmra.mxu0 %v805_v56 }
  0xeb   : > { %v3431_v34 = vpop.f32.mrf.mxu2 }
  0xed   : > { %v3435_v49 = vpop.f32.mrf.mxu3 }
  0xef   : > { %v3437_v3 = vpop.f32.mrf.mxu0 }
  0xf0   : > { %1683 = vmatmul.bf16.gmra.mxu2 %v3433_v52 }
  0xf1   : > { %v3440_v30 = vpop.f32.mrf.mxu1 }
  0xf2   : > { %1772 = vmatmul.bf16.gmra.mxu3 %v3295_v53  ;;  %v2738_v53 = vld [vmem:[%s3818_s3 + $0x158] sm:$0xff] }
  0xf3   : > { %v3449_v40 = vpop.f32.mrf.mxu2  ;;  %1916 = vmatpush.bf16.msra.mxu1 %v2738_v53  ;;  %v539_v53 = vld [vmem:[#allocation2 + $0xca] sm:$0xff] }
  0xf4   : > { %1599 = vmatmul.bf16.gmra.mxu1 %v805_v56  ;;  %v3483_v4 = vpack.c.bf16 %v539_v53, %v538_v7 }
  0xf5   : > { %v3451_v16 = vpop.f32.mrf.mxu3 }
  0xf7   : > { %v3459_v10 = vpop.f32.mrf.mxu0 }
  0xf9   : > { %v3461_v54 = vpop.f32.mrf.mxu1 }
  0xfa   : > { %1866 = vmatmul.bf16.gmra.mxu0 %v814_v18 }
  0xfb   : > { %v3463_v59 = vpop.f32.mrf.mxu2 }
  0xfd   : > { %v3467_v62 = vpop.f32.mrf.mxu3 }
  0xff   : > { %v3469_v56 = vpop.f32.mrf.mxu0 }
 0x100   : > { %1688 = vmatmul.bf16.gmra.mxu2 %v3465_v57 }
 0x101   : > { %v1565_v47 = vpop.f32.mrf.mxu1 }
 0x102   : > { %1777 = vmatmul.bf16.gmra.mxu3 %v813_v63  ;;  %v509_v63 = vld [vmem:[#allocation2 + $0xe1] sm:$0xff]  ;;  %v1566_v28 = vadd.f32 %v1565_v47, %v3367_v38  ;;  %v2761_v47 = vld [vmem:[%s3818_s3 + $0x210] sm:$0xff] }
 0x103   : > { %v3472_v22 = vpop.f32.mrf.mxu2  ;;  %2184 = vmatpush.bf16.msra.mxu0 %v2761_v47 }
 0x104   : > { %1604 = vmatmul.bf16.gmra.mxu1 %v814_v18  ;;  %v508_v18 = vld [vmem:[#allocation2 + $0xd9] sm:$0xff] }
 0x105   : > { %v3474_v31 = vpop.f32.mrf.mxu3  ;;  %v3488_v2 = vpack.c.bf16 %v509_v63, %v508_v18 }
 0x107   : > { %v1832_v17 = vpop.f32.mrf.mxu0 }
 0x109   : > { %v1567_v19 = vpop.f32.mrf.mxu1 }
 0x10a   : > { %1871 = vmatmul.bf16.gmra.mxu0 %v823_v39  ;;  %v1568_v13 = vadd.f32 %v1567_v19, %v3377_v50  ;;  %v2745_v50 = vld [vmem:[%s3818_s3 + $0x190] sm:$0xff] }
 0x10b   : > { %v3481_v14 = vpop.f32.mrf.mxu2  ;;  %v2753_v39 = vld [vmem:[%s3818_s3 + $0x1d0] sm:$0xff]  ;;  %2006 = vmatpush.bf16.msra.mxu2 %v2745_v50 }
 0x10c   : > { %2095 = vmatpush.bf16.msra.mxu3 %v2753_v39 }
 0x10d   : > { %v3485_v15 = vpop.f32.mrf.mxu3 }
 0x10f   : > { %v1834_v25 = vpop.f32.mrf.mxu0 }
 0x110   : > { %1693 = vmatmul.bf16.gmra.mxu2 %v3483_v4 }
 0x111   : > { %v1570_v9 = vpop.f32.mrf.mxu1 }
 0x112   : > { %1782 = vmatmul.bf16.gmra.mxu3 %v3243_v35  ;;  %v1571_v32 = vadd.f32 %v1570_v9, %v3403_v58  ;;  %v832_v35 = vpack.c.bf16 %v358_v0, %v357_v60  ;;  %v2737_v58 = vld [vmem:[%s3818_s3 + $0x150] sm:$0xff]  ;;  %v540_v9 = vld [vmem:[#allocation2 + $0xda] sm:$0xff] }
 0x113   : > { %v1654_v7 = vpop.f32.mrf.mxu2  ;;  %1917 = vmatpush.bf16.msra.mxu1 %v2737_v58 }
 0x114   : > { %v1655_v53 = vadd.f32 %v1654_v7, %v1566_v28  ;;  %1609 = vmatmul.bf16.gmra.mxu1 %v3488_v2  ;;  %v541_v28 = vld [vmem:[#allocation2 + $0xe2] sm:$0xff] }
 0x115   : > { %v1743_v19 = vpop.f32.mrf.mxu3  ;;  %v3513_v0 = vpack.c.bf16 %v541_v28, %v540_v9 }
 0x116   : > { %v1744_v38 = vadd.f32 %v1743_v19, %v1655_v53 }
 0x117   : > { %v1837_v18 = vpop.f32.mrf.mxu0 }
 0x118   : > { %v3510_v63 = vadd.f32 %v1832_v17, %v1744_v38 }
 0x119   : > { %v1572_v50 = vpop.f32.mrf.mxu1 }
 0x11a   : > { %1876 = vmatmul.bf16.gmra.mxu0 %v832_v35  ;;  %v1573_v44 = vadd.f32 %v1572_v50, %v3413_v33 }
 0x11b   : > { %v1656_v48 = vpop.f32.mrf.mxu2 }
 0x11c   : > { %v1657_v60 = vadd.f32 %v1656_v48, %v1568_v13  ;;  %v3827_v13 = vmax.f32 %v3229_v12, 0.0 }
 0x11d   : > { %v1745_v39 = vpop.f32.mrf.mxu3 }
 0x11e   : > { %v1746_v7 = vadd.f32 %v1745_v39, %v1657_v60  ;;  %v841_v9 = vpack.c.bf16 %v3827_v13, %v359_v23  ;;  %v543_v60 = vld [vmem:[#allocation2 + $0xfa] sm:$0xff] }
 0x11f   : > { %v1839_v53 = vpop.f32.mrf.mxu0 }
 0x120   : > { %1698 = vmatmul.bf16.gmra.mxu2 %v3513_v0  ;;  %v3516_v19 = vadd.f32 %v1834_v25, %v1746_v7  ;;  %v542_v25 = vld [vmem:[#allocation2 + $0xf2] sm:$0xff] }
 0x121   : > { %v1575_v58 = vpop.f32.mrf.mxu1 }
 0x122   : > { %1787 = vmatmul.bf16.gmra.mxu3 %v3292_v42  ;;  %v1576_v17 = vadd.f32 %v1575_v58, %v3427_v43 }
 0x123   : > { %v1659_v38 = vpop.f32.mrf.mxu2 }
 0x124   : > { %v1660_v47 = vadd.f32 %v1659_v38, %v1571_v32  ;;  %1614 = vmatmul.bf16.gmra.mxu1 %v832_v35  ;;  %v3527_v32 = vpack.c.bf16 %v543_v60, %v542_v25  ;;  %v2760_v25 = vld [vmem:[%s3818_s3 + $0x208] sm:$0xff] }
 0x125   : > { %v1748_v33 = vpop.f32.mrf.mxu3  ;;  %2185 = vmatpush.bf16.msra.mxu0 %v2760_v25 }
 0x126   : > { %v1749_v50 = vadd.f32 %v1748_v33, %v1660_v47  ;;  %v608_v47 = vld [vmem:[#allocation2 + $0x121] sm:$0xff]  ;;  %v609_v33 = vld [vmem:[#allocation2 + $0x129] sm:$0xff] }
 0x127   : > { %v1842_v28 = vpop.f32.mrf.mxu0 }
 0x128   : > { %v3524_v48 = vadd.f32 %v1837_v18, %v1749_v50  ;;  %v2752_v18 = vld [vmem:[%s3818_s3 + $0x1c8] sm:$0xff] }
 0x129   : > { %v1577_v39 = vpop.f32.mrf.mxu1  ;;  %2096 = vmatpush.bf16.msra.mxu3 %v2752_v18 }
 0x12a   : > { %1881 = vmatmul.bf16.gmra.mxu0 %v841_v9  ;;  %v1578_v42 = vadd.f32 %v1577_v39, %v3437_v3  ;;  %v2744_v3 = vld [vmem:[%s3818_s3 + $0x188] sm:$0xff] }
 0x12b   : > { %v1661_v43 = vpop.f32.mrf.mxu2  ;;  %2007 = vmatpush.bf16.msra.mxu2 %v2744_v3 }
 0x12c   : > { %v1662_v7 = vadd.f32 %v1661_v43, %v1573_v44 }
 0x12d   : > { %v1750_v35 = vpop.f32.mrf.mxu3 }
 0x12e   : > { %v1751_v58 = vadd.f32 %v1750_v35, %v1662_v7 }
 0x12f   : > { %v1844_v38 = vpop.f32.mrf.mxu0 }
 0x130   : > { %1703 = vmatmul.bf16.gmra.mxu2 %v3527_v32  ;;  %v3530_v8 = vadd.f32 %v1839_v53, %v1751_v58  ;;  %v576_v58 = vld [vmem:[#allocation2 + $0x120] sm:$0xff] }
 0x131   : > { %v1580_v12 = vpop.f32.mrf.mxu1 }
 0x132   : > { %1792 = vmatmul.bf16.gmra.mxu3 %v3310_v36  ;;  %v1581_v23 = vadd.f32 %v1580_v12, %v3459_v10  ;;  %v3540_v36 = vpack.c.bf16 %v609_v33, %v608_v47  ;;  %v2736_v10 = vld [vmem:[%s3818_s3 + $0x148] sm:$0xff] }
 0x133   : > { %v1664_v44 = vpop.f32.mrf.mxu2  ;;  %1918 = vmatpush.bf16.msra.mxu1 %v2736_v10  ;;  %v577_v12 = vld [vmem:[#allocation2 + $0x128] sm:$0xff] }
 0x134   : > { %v1665_v50 = vadd.f32 %v1664_v44, %v1576_v17  ;;  %1619 = vmatmul.bf16.gmra.mxu1 %v841_v9  ;;  %3828 = vst [vmem:[#allocation3_spill] sm:$0xff] %v3540_v36  ;;  %v544_v17 = vld [vmem:[#allocation2 + $0x10a] sm:$0xff]  ;;  %v545_v9 = vld [vmem:[#allocation2 + $0x112] sm:$0xff]  ;;  %v3554_v33 = vpack.c.bf16 %v577_v12, %v576_v58  ;;  %v611_v10 = vld [vmem:[#allocation2 + $0x141] sm:$0xff] }
 0x135   : > { %v1753_v53 = vpop.f32.mrf.mxu3  ;;  %v3552_v18 = vpack.c.bf16 %v545_v9, %v544_v17  ;;  %v546_v58 = vld [vmem:[#allocation2 + $0x122] sm:$0xff] }
 0x136   : > { %v1754_v13 = vadd.f32 %v1753_v53, %v1665_v50  ;;  %3830 = vst [vmem:[#allocation5_spill] sm:$0xff] %v3554_v33 }
 0x137   : > { %v1847_v60 = vpop.f32.mrf.mxu0 }
 0x138   : > { %v3548_v39 = vadd.f32 %v1842_v28, %v1754_v13 }
 0x139   : > { %v1582_v43 = vpop.f32.mrf.mxu1 }
 0x13a   : > { %3829 = vst [vmem:[#allocation4_spill] sm:$0xff] %v3548_v39  ;;  %1886 = vmatmul.bf16.gmra.mxu0 %v3540_v36  ;;  %v1583_v7 = vadd.f32 %v1582_v43, %v3469_v56  ;;  %v610_v56 = vld [vmem:[#allocation2 + $0x139] sm:$0xff]  ;;  %v614_v39 = vld [vmem:[#allocation2 + $0x169] sm:$0xff] }
 0x13b   : > { %v1666_v35 = vpop.f32.mrf.mxu2  ;;  %v3561_v9 = vpack.c.bf16 %v611_v10, %v610_v56 }
 0x13c   : > { %v1667_v3 = vadd.f32 %v1666_v35, %v1578_v42 }
 0x13d   : > { %v1755_v44 = vpop.f32.mrf.mxu3  ;;  %3832 = vst [vmem:[#allocation7_spill] sm:$0xff] %v3561_v9 }
 0x13e   : > { %v1756_v47 = vadd.f32 %v1755_v44, %v1667_v3  ;;  %v578_v44 = vld [vmem:[#allocation2 + $0x138] sm:$0xff] }
 0x13f   : > { %v1849_v50 = vpop.f32.mrf.mxu0 }
 0x140   : > { %1708 = vmatmul.bf16.gmra.mxu2 %v3552_v18  ;;  %v3557_v28 = vadd.f32 %v1844_v38, %v1756_v47  ;;  %v547_v38 = vld [vmem:[#allocation2 + $0x12a] sm:$0xff]  ;;  %v579_v47 = vld [vmem:[#allocation2 + $0x140] sm:$0xff] }
 0x141   : > { %v1585_v53 = vpop.f32.mrf.mxu1  ;;  %v3568_v56 = vpack.c.bf16 %v579_v47, %v578_v44  ;;  %v612_v44 = vld [vmem:[#allocation2 + $0x151] sm:$0xff]  ;;  %v613_v47 = vld [vmem:[#allocation2 + $0x159] sm:$0xff] }
 0x142   : > { %3831 = vst [vmem:[#allocation6_spill] sm:$0xff] %v3557_v28  ;;  %1797 = vmatmul.bf16.gmra.mxu3 %v3554_v33  ;;  %v615_v33 = vld [vmem:[#allocation2 + $0x171] sm:$0xff] }
 0x143   : > { %v1669_v13 = vpop.f32.mrf.mxu2  ;;  %3834 = vst [vmem:[#allocation9_spill] sm:$0xff] %v3568_v56 }
 0x144   : > { %v1670_v25 = vadd.f32 %v1669_v13, %v1581_v23  ;;  %1624 = vmatmul.bf16.gmra.mxu1 %v3540_v36  ;;  %v3566_v13 = vpack.c.bf16 %v547_v38, %v546_v58  ;;  %v266_v58 = vld [vmem:[%s2912_s28 + $0xf8] sm:$0xff] }
 0x145   : > { %v1758_v42 = vpop.f32.mrf.mxu3 }
 0x146   : > { %v1759_v17 = vadd.f32 %v1758_v42, %v1670_v25 }
 0x147   : > { %v1852_v43 = vpop.f32.mrf.mxu0 }
 0x148   : > { %v3563_v35 = vadd.f32 %v1847_v60, %v1759_v17  ;;  %v265_v17 = vld [vmem:[%s2912_s28 + $0xf0] sm:$0xff] }
 0x149   : > { %v1587_v12 = vpop.f32.mrf.mxu1 }
 0x14a   : > { %3833 = vst [vmem:[#allocation8_spill] sm:$0xff] %v3563_v35  ;;  %1891 = vmatmul.bf16.gmra.mxu0 %v3561_v9  ;;  %v1586_v35 = vadd.f32 %v1585_v53, %v3363_v27 }
 0x14b   : > { %v1671_v3 = vpop.f32.mrf.mxu2 }
 0x14c   : > { %v1672_v23 = vadd.f32 %v1671_v3, %v1583_v7  ;;  %v2743_v7 = vld [vmem:[%s3818_s3 + $0x180] sm:$0xff] }
 0x14d   : > { %v1760_v28 = vpop.f32.mrf.mxu3  ;;  %2008 = vmatpush.bf16.msra.mxu2 %v2743_v7  ;;  %v2759_v7 = vld [vmem:[%s3818_s3 + $0x200] sm:$0xff] }
 0x14e   : > { %v1761_v25 = vadd.f32 %v1760_v28, %v1672_v23  ;;  %v2751_v28 = vld [vmem:[%s3818_s3 + $0x1c0] sm:$0xff]  ;;  %2186 = vmatpush.bf16.msra.mxu0 %v2759_v7 }
 0x14f   : > { %v1854_v10 = vpop.f32.mrf.mxu0  ;;  %v2819_v23 = vld [vmem:[%s3817_s2] ss:$0 sm:$0xff]  ;;  %2097 = vmatpush.bf16.msra.mxu3 %v2751_v28 }
 0x150   : > { %1713 = vmatmul.bf16.gmra.mxu2 %v3566_v13  ;;  %v3571_v60 = vadd.f32 %v1849_v50, %v1761_v25  ;;  %v2818_v50 = vld [vmem:[%s3816_s1] ss:$0 sm:$0xff] }
 0x151   : > { %v1590_v42 = vpop.f32.mrf.mxu1  ;;  %v301_v38 = vmul.f32 %v2818_v50, %v265_v17  ;;  %v302_v27 = vmul.f32 %v2818_v50, %v266_v58  ;;  %v3594_v17 = vpack.c.bf16 %v613_v47, %v612_v44  ;;  %v1588_v47 = vadd.f32 %v1587_v12, %v3373_v11 }
 0x152   : > { %3835 = vst [vmem:[#allocation10_spill] sm:$0xff] %v3571_v60  ;;  %1802 = vmatmul.bf16.gmra.mxu3 %v3568_v56  ;;  %v1591_v11 = vadd.f32 %v1590_v42, %v3380_v21 }
 0x153   : > { %v1674_v3 = vpop.f32.mrf.mxu2  ;;  %v3590_v25 = vadd.f32 %v2819_v23, %v301_v38  ;;  %v3592_v56 = vadd.f32 %v2819_v23, %v302_v27  ;;  %3836 = vst [vmem:[#allocation11_spill] sm:$0xff] %v3594_v17  ;;  %v581_v23 = vld [vmem:[#allocation2 + $0x158] sm:$0xff] }
 0x154   : > { %v1675_v53 = vadd.f32 %v1674_v3, %v1586_v35  ;;  %1629 = vmatmul.bf16.gmra.mxu1 %v3561_v9  ;;  %v2735_v35 = vld [vmem:[%s3818_s3 + $0x140] sm:$0xff] }
 0x155   : > { %v1763_v60 = vpop.f32.mrf.mxu3  ;;  %v369_v58 = vmax.f32 %v3590_v25, 0.0  ;;  %v370_v38 = vmax.f32 %v3592_v56, 0.0  ;;  %1919 = vmatpush.bf16.msra.mxu1 %v2735_v35  ;;  %v549_v3 = vld [vmem:[#allocation2 + $0x142] sm:$0xff] }
 0x156   : > { %v1764_v36 = vadd.f32 %v1763_v60, %v1675_v53  ;;  %v548_v60 = vld [vmem:[#allocation2 + $0x13a] sm:$0xff]  ;;  %v580_v53 = vld [vmem:[#allocation2 + $0x150] sm:$0xff] }
 0x157   : > { %v1857_v50 = vpop.f32.mrf.mxu0  ;;  %456 = vst [vmem:[#allocation2 + $0x181] sm:$0xff] %v369_v58  ;;  %v3608_v9 = vpack.c.bf16 %v549_v3, %v548_v60  ;;  %v3610_v7 = vpack.c.bf16 %v581_v23, %v580_v53 }
 0x158   : > { %v3604_v28 = vadd.f32 %v1852_v43, %v1764_v36  ;;  %457 = vst [vmem:[#allocation2 + $0x189] sm:$0xff] %v370_v38 }
 0x159   : > { %v1592_v44 = vpop.f32.mrf.mxu1 }
 0x15a   : > { %3837 = vst [vmem:[#allocation12_spill] sm:$0xff] %v3604_v28  ;;  %1896 = vmatmul.bf16.gmra.mxu0 %v3594_v17  ;;  %v1593_v21 = vadd.f32 %v1592_v44, %v3405_v6 }
 0x15b   : > { %v1676_v27 = vpop.f32.mrf.mxu2 }
 0x15c   : > { %v1677_v25 = vadd.f32 %v1676_v27, %v1588_v47  ;;  %v3618_v27 = vpack.c.bf16 %v615_v33, %v614_v39 }
 0x15d   : > { %v1765_v56 = vpop.f32.mrf.mxu3 }
 0x15e   : > { %v1766_v35 = vadd.f32 %v1765_v56, %v1677_v25  ;;  %v551_v25 = vld [vmem:[#allocation2 + $0x15a] sm:$0xff] }
 0x15f   : > { %v1859_v36 = vpop.f32.mrf.mxu0 }
 0x160   : > { %1718 = vmatmul.bf16.gmra.mxu2 %v3608_v9  ;;  %v3613_v43 = vadd.f32 %v1854_v10, %v1766_v35  ;;  %v550_v10 = vld [vmem:[#allocation2 + $0x152] sm:$0xff]  ;;  %v582_v35 = vld [vmem:[#allocation2 + $0x168] sm:$0xff] }
 0x161   : > { %v1595_v28 = vpop.f32.mrf.mxu1 }
 0x162   : > { %3838 = vst [vmem:[#allocation13_spill] sm:$0xff] %v3613_v43  ;;  %1807 = vmatmul.bf16.gmra.mxu3 %v3610_v7  ;;  %v583_v43 = vld [vmem:[#allocation2 + $0x170] sm:$0xff]  ;;  %v1596_v6 = vadd.f32 %v1595_v28, %v3416_v37  ;;  %v584_v28 = vld [vmem:[#allocation2 + $0x180] sm:$0xff] }
 0x163   : > { %v1679_v12 = vpop.f32.mrf.mxu2  ;;  %v3626_v39 = vpack.c.bf16 %v583_v43, %v582_v35  ;;  %v553_v35 = vld [vmem:[#allocation2 + $0x172] sm:$0xff] }
 0x164   : > { %v1680_v47 = vadd.f32 %v1679_v12, %v1591_v11  ;;  %1634 = vmatmul.bf16.gmra.mxu1 %v3594_v17  ;;  %v3624_v12 = vpack.c.bf16 %v551_v25, %v550_v10 }
 0x165   : > { %v1768_v60 = vpop.f32.mrf.mxu3 }
 0x166   : > { %v1769_v3 = vadd.f32 %v1768_v60, %v1680_v47 }
 0x167   : > { %v1862_v53 = vpop.f32.mrf.mxu0 }
 0x168   : > { %v3620_v23 = vadd.f32 %v1857_v50, %v1769_v3 }
 0x169   : > { %v1597_v56 = vpop.f32.mrf.mxu1 }
 0x16a   : > { %1901 = vmatmul.bf16.gmra.mxu0 %v3618_v27 }
 0x16b   : > { %v1681_v42 = vpop.f32.mrf.mxu2 }
 0x16c   : > { %v1682_v11 = vadd.f32 %v1681_v42, %v1593_v21  ;;  %v3634_v21 = vpack.c.bf16 %v370_v38, %v369_v58  ;;  %v552_v42 = vld [vmem:[#allocation2 + $0x16a] sm:$0xff] }
 0x16d   : > { %v1770_v17 = vpop.f32.mrf.mxu3 }
 0x16e   : > { %v1771_v47 = vadd.f32 %v1770_v17, %v1682_v11  ;;  %3840 = vst [vmem:[#allocation15_spill] sm:$0xff] %v3634_v21  ;;  %v1598_v11 = vadd.f32 %v1597_v56, %v3429_v55 }
 0x16f   : > { %v1864_v33 = vpop.f32.mrf.mxu0 }
 0x170   : > { %1723 = vmatmul.bf16.gmra.mxu2 %v3624_v12  ;;  %v3629_v50 = vadd.f32 %v1859_v36, %v1771_v47  ;;  %v585_v47 = vld [vmem:[#allocation2 + $0x188] sm:$0xff] }
 0x171   : > { %v1600_v60 = vpop.f32.mrf.mxu1  ;;  %v3642_v58 = vpack.c.bf16 %v585_v47, %v584_v28  ;;  %v652_v28 = vld [vmem:[#allocation2 + $0x38] sm:$0xff] }
 0x172   : > { %3839 = vst [vmem:[#allocation14_spill] sm:$0xff] %v3629_v50  ;;  %1812 = vmatmul.bf16.gmra.mxu3 %v3626_v39  ;;  %v1601_v55 = vadd.f32 %v1600_v60, %v3440_v30  ;;  %v683_v30 = vld [vmem:[#allocation2 + $0x31] sm:$0xff]  ;;  %v684_v60 = vld [vmem:[#allocation2 + $0x39] sm:$0xff] }
 0x173   : > { %v1684_v44 = vpop.f32.mrf.mxu2 }
 0x174   : > { %v1685_v3 = vadd.f32 %v1684_v44, %v1596_v6  ;;  %1639 = vmatmul.bf16.gmra.mxu1 %v3618_v27  ;;  %v3640_v44 = vpack.c.bf16 %v553_v35, %v552_v42 }
 0x175   : > { %v1773_v10 = vpop.f32.mrf.mxu3 }
 0x176   : > { %v1774_v25 = vadd.f32 %v1773_v10, %v1685_v3 }
 0x177   : > { %v1867_v17 = vpop.f32.mrf.mxu0 }
 0x178   : > { %v3636_v43 = vadd.f32 %v1862_v53, %v1774_v25 }
 0x179   : > { %v1602_v36 = vpop.f32.mrf.mxu1 }
 0x17a   : > { %3841 = vst [vmem:[#allocation16_spill] sm:$0xff] %v3636_v43  ;;  %1906 = vmatmul.bf16.gmra.mxu0 %v3634_v21 }
 0x17b   : > { %v1686_v37 = vpop.f32.mrf.mxu2 }
 0x17c   : > { %v1687_v6 = vadd.f32 %v1686_v37, %v1598_v11  ;;  %v651_v37 = vld [vmem:[#allocation2 + $0x30] sm:$0xff] }
 0x17d   : > { %v1775_v50 = vpop.f32.mrf.mxu3 }
 0x17e   : > { %v1776_v3 = vadd.f32 %v1775_v50, %v1687_v6 }
 0x17f   : > { %v1869_v38 = vpop.f32.mrf.mxu0 }
 0x180   : > { %1728 = vmatmul.bf16.gmra.mxu2 %v3640_v44  ;;  %v3645_v53 = vadd.f32 %v1864_v33, %v1776_v3  ;;  %v1603_v33 = vadd.f32 %v1602_v36, %v3461_v54 }
 0x181   : > { %v1605_v10 = vpop.f32.mrf.mxu1 }
 0x182   : > { %3842 = vst [vmem:[#allocation17_spill] sm:$0xff] %v3645_v53  ;;  %1817 = vmatmul.bf16.gmra.mxu3 %v3642_v58  ;;  %v753_v53 = vpack.c.bf16 %v652_v28, %v651_v37  ;;  %v1606_v54 = vadd.f32 %v1605_v10, %v3389_v1 }
 0x183   : > { %v1689_v56 = vpop.f32.mrf.mxu2 }
 0x184   : > { %v1690_v25 = vadd.f32 %v1689_v56, %v1601_v55  ;;  %1920 = vmatmul.bf16.vlgmr.msra.gmra.mxu1 %v3338_v26  ;;  %v620_v56 = vld [vmem:[#allocation2 + $0x32] sm:$0xff]  ;;  %v621_v26 = vld [vmem:[#allocation2 + $0x3a] sm:$0xff] }
 0x185   : > { %v1778_v42 = vpop.f32.mrf.mxu3 }
 0x186   : > { %v1779_v35 = vadd.f32 %v1778_v42, %v1690_v25  ;;  %v754_v25 = vpack.c.bf16 %v684_v60, %v683_v30  ;;  %v686_v60 = vld [vmem:[#allocation2 + $0x51] sm:$0xff] }
 0x187   : > { %v1872_v11 = vpop.f32.mrf.mxu0 }
 0x188   : > { %v3650_v50 = vadd.f32 %v1867_v17, %v1779_v35  ;;  %v761_v17 = vpack.c.bf16 %v621_v26, %v620_v56  ;;  %v622_v56 = vld [vmem:[#allocation2 + $0x4a] sm:$0xff]  ;;  %v623_v26 = vld [vmem:[#allocation2 + $0x52] sm:$0xff] }
 0x189   : > { %v1607_v47 = vpop.f32.mrf.mxu1 }
 0x18a   : > { %3843 = vst [vmem:[#allocation18_spill] sm:$0xff] %v3650_v50  ;;  %2187 = vmatmul.bf16.vlgmr.msra.gmra.mxu0 %v3342_v46 }
 0x18b   : > { %v1691_v6 = vpop.f32.mrf.mxu2 }
 0x18c   : > { %v1692_v3 = vadd.f32 %v1691_v6, %v1603_v33  ;;  %v653_v6 = vld [vmem:[#allocation2 + $0x48] sm:$0xff] }
 0x18d   : > { %v1780_v55 = vpop.f32.mrf.mxu3 }
 0x18e   : > { %v1781_v21 = vadd.f32 %v1780_v55, %v1692_v3  ;;  %v654_v3 = vld [vmem:[#allocation2 + $0x50] sm:$0xff] }
 0x18f   : > { %v1874_v42 = vpop.f32.mrf.mxu0  ;;  %v762_v10 = vpack.c.bf16 %v654_v3, %v653_v6 }
 0x190   : > { %2009 = vmatmul.bf16.vlgmr.msra.gmra.mxu2 %v753_v53  ;;  %v3654_v35 = vadd.f32 %v1869_v38, %v1781_v21  ;;  %v1608_v53 = vadd.f32 %v1607_v47, %v3407_v61  ;;  %v685_v38 = vld [vmem:[#allocation2 + $0x49] sm:$0xff] }
 0x191   : > { %v1610_v50 = vpop.f32.mrf.mxu1 }
 0x192   : > { %2098 = vmatmul.bf16.vlgmr.msra.gmra.mxu3 %v754_v25  ;;  %v1611_v61 = vadd.f32 %v1610_v50, %v3419_v41 }
 0x193   : > { %v1694_v46 = vpop.f32.mrf.mxu2 }
 0x194   : > { %v1695_v36 = vadd.f32 %v1694_v46, %v1606_v54  ;;  %1925 = vmatmul.bf16.gmra.mxu1 %v761_v17 }
 0x195   : > { %v1783_v43 = vpop.f32.mrf.mxu3 }
 0x196   : > { %v1784_v33 = vadd.f32 %v1783_v43, %v1695_v36  ;;  %v763_v43 = vpack.c.bf16 %v686_v60, %v685_v38 }
 0x197   : > { %v1877_v37 = vpop.f32.mrf.mxu0 }
 0x198   : > { %v3657_v28 = vadd.f32 %v1872_v11, %v1784_v33  ;;  %v770_v11 = vpack.c.bf16 %v623_v26, %v622_v56  ;;  %v624_v56 = vld [vmem:[#allocation2 + $0x62] sm:$0xff]  ;;  %v625_v26 = vld [vmem:[#allocation2 + $0x6a] sm:$0xff] }
 0x199   : > { %v1612_v30 = vpop.f32.mrf.mxu1 }
 0x19a   : > { %2192 = vmatmul.bf16.gmra.mxu0 %v3361_v20  ;;  %v1613_v60 = vadd.f32 %v1612_v30, %v3431_v34 }
 0x19b   : > { %v1696_v21 = vpop.f32.mrf.mxu2 }
 0x19c   : > { %v1697_v1 = vadd.f32 %v1696_v21, %v1608_v53  ;;  %v655_v53 = vld [vmem:[#allocation2 + $0x60] sm:$0xff]  ;;  %v656_v21 = vld [vmem:[#allocation2 + $0x68] sm:$0xff] }
 0x19d   : > { %v1785_v55 = vpop.f32.mrf.mxu3  ;;  %v771_v50 = vpack.c.bf16 %v656_v21, %v655_v53  ;;  %v657_v21 = vld [vmem:[#allocation2 + $0x78] sm:$0xff] }
 0x19e   : > { %v1786_v25 = vadd.f32 %v1785_v55, %v1697_v1  ;;  %v687_v1 = vld [vmem:[#allocation2 + $0x61] sm:$0xff] }
 0x19f   : > { %v1879_v17 = vpop.f32.mrf.mxu0 }
 0x1a0   : > { %2014 = vmatmul.bf16.gmra.mxu2 %v762_v10  ;;  %v3661_v54 = vadd.f32 %v1874_v42, %v1786_v25  ;;  %v688_v10 = vld [vmem:[#allocation2 + $0x69] sm:$0xff] }
 0x1a1   : > { %v1615_v46 = vpop.f32.mrf.mxu1 }
 0x1a2   : > { %2103 = vmatmul.bf16.gmra.mxu3 %v763_v43  ;;  %v772_v43 = vpack.c.bf16 %v688_v10, %v687_v1  ;;  %v1616_v34 = vadd.f32 %v1615_v46, %v3449_v40  ;;  %v689_v10 = vld [vmem:[#allocation2 + $0x79] sm:$0xff] }
 0x1a3   : > { %v1699_v20 = vpop.f32.mrf.mxu2 }
 0x1a4   : > { %v1700_v47 = vadd.f32 %v1699_v20, %v1611_v61  ;;  %1930 = vmatmul.bf16.gmra.mxu1 %v770_v11 }
 0x1a5   : > { %v1788_v36 = vpop.f32.mrf.mxu3 }
 0x1a6   : > { %v1789_v33 = vadd.f32 %v1788_v36, %v1700_v47 }
 0x1a7   : > { %v1882_v6 = vpop.f32.mrf.mxu0 }
 0x1a8   : > { %v3664_v3 = vadd.f32 %v1877_v37, %v1789_v33  ;;  %v779_v37 = vpack.c.bf16 %v625_v26, %v624_v56  ;;  %v627_v56 = vld [vmem:[#allocation2 + $0x82] sm:$0xff] }
 0x1a9   : > { %v1617_v38 = vpop.f32.mrf.mxu1 }
 0x1aa   : > { %2197 = vmatmul.bf16.gmra.mxu0 %v3375_v45  ;;  %v1618_v1 = vadd.f32 %v1617_v38, %v3463_v59 }
 0x1ab   : > { %v1701_v42 = vpop.f32.mrf.mxu2 }
 0x1ac   : > { %v1702_v41 = vadd.f32 %v1701_v42, %v1613_v60  ;;  %v658_v60 = vld [vmem:[#allocation2 + $0x80] sm:$0xff] }
 0x1ad   : > { %v1790_v55 = vpop.f32.mrf.mxu3  ;;  %v780_v46 = vpack.c.bf16 %v658_v60, %v657_v21  ;;  %v659_v21 = vld [vmem:[#allocation2 + $0x90] sm:$0xff]  ;;  %v660_v60 = vld [vmem:[#allocation2 + $0x98] sm:$0xff] }
 0x1ae   : > { %v1791_v25 = vadd.f32 %v1790_v55, %v1702_v41  ;;  %v690_v41 = vld [vmem:[#allocation2 + $0x81] sm:$0xff] }
 0x1af   : > { %v1884_v11 = vpop.f32.mrf.mxu0  ;;  %v626_v55 = vld [vmem:[#allocation2 + $0x7a] sm:$0xff] }
 0x1b0   : > { %2019 = vmatmul.bf16.gmra.mxu2 %v771_v50  ;;  %v3668_v61 = vadd.f32 %v1879_v17, %v1791_v25  ;;  %v781_v25 = vpack.c.bf16 %v690_v41, %v689_v10  ;;  %v691_v10 = vld [vmem:[#allocation2 + $0x91] sm:$0xff]  ;;  %v692_v41 = vld [vmem:[#allocation2 + $0x99] sm:$0xff] }
 0x1b1   : > { %v1620_v20 = vpop.f32.mrf.mxu1 }
 0x1b2   : > { %2108 = vmatmul.bf16.gmra.mxu3 %v772_v43  ;;  %v1621_v59 = vadd.f32 %v1620_v20, %v3472_v22  ;;  %v789_v20 = vpack.c.bf16 %v660_v60, %v659_v21  ;;  %v662_v21 = vld [vmem:[#allocation2 + $0xb0] sm:$0xff] }
 0x1b3   : > { %v1704_v45 = vpop.f32.mrf.mxu2 }
 0x1b4   : > { %v1705_v30 = vadd.f32 %v1704_v45, %v1616_v34  ;;  %1935 = vmatmul.bf16.gmra.mxu1 %v779_v37 }
 0x1b5   : > { %v1793_v47 = vpop.f32.mrf.mxu3 }
 0x1b6   : > { %v1794_v36 = vadd.f32 %v1793_v47, %v1705_v30 }
 0x1b7   : > { %v1887_v33 = vpop.f32.mrf.mxu0 }
 0x1b8   : > { %v3671_v53 = vadd.f32 %v1882_v6, %v1794_v36  ;;  %v788_v6 = vpack.c.bf16 %v627_v56, %v626_v55  ;;  %v790_v56 = vpack.c.bf16 %v692_v41, %v691_v10  ;;  %v694_v10 = vld [vmem:[#allocation2 + $0xb1] sm:$0xff] }
 0x1b9   : > { %v1622_v42 = vpop.f32.mrf.mxu1 }
 0x1ba   : > { %2202 = vmatmul.bf16.gmra.mxu0 %v3409_v5 }
 0x1bb   : > { %v1706_v17 = vpop.f32.mrf.mxu2 }
 0x1bc   : > { %v1707_v40 = vadd.f32 %v1706_v17, %v1618_v1  ;;  %v1623_v17 = vadd.f32 %v1622_v42, %v3481_v14 }
 0x1bd   : > { %v1795_v50 = vpop.f32.mrf.mxu3 }
 0x1be   : > { %v1796_v26 = vadd.f32 %v1795_v50, %v1707_v40  ;;  %v629_v50 = vld [vmem:[#allocation2 + $0x9a] sm:$0xff] }
 0x1bf   : > { %v1889_v43 = vpop.f32.mrf.mxu0 }
 0x1c0   : > { %2024 = vmatmul.bf16.gmra.mxu2 %v780_v46  ;;  %v3675_v37 = vadd.f32 %v1884_v11, %v1796_v26  ;;  %v628_v46 = vld [vmem:[#allocation2 + $0x92] sm:$0xff] }
 0x1c1   : > { %v1625_v34 = vpop.f32.mrf.mxu1 }
 0x1c2   : > { %2113 = vmatmul.bf16.gmra.mxu3 %v781_v25  ;;  %v1626_v14 = vadd.f32 %v1625_v34, %v3391_v24 }
 0x1c3   : > { %v1709_v5 = vpop.f32.mrf.mxu2 }
 0x1c4   : > { %v1710_v38 = vadd.f32 %v1709_v5, %v1621_v59  ;;  %1940 = vmatmul.bf16.gmra.mxu1 %v788_v6 }
 0x1c5   : > { %v1798_v45 = vpop.f32.mrf.mxu3 }
 0x1c6   : > { %v1799_v30 = vadd.f32 %v1798_v45, %v1710_v38 }
 0x1c7   : > { %v1892_v47 = vpop.f32.mrf.mxu0 }
 0x1c8   : > { %v3678_v36 = vadd.f32 %v1887_v33, %v1799_v30  ;;  %v797_v33 = vpack.c.bf16 %v629_v50, %v628_v46  ;;  %v661_v30 = vld [vmem:[#allocation2 + $0xa8] sm:$0xff] }
 0x1c9   : > { %v1627_v1 = vpop.f32.mrf.mxu1  ;;  %v798_v34 = vpack.c.bf16 %v662_v21, %v661_v30 }
 0x1ca   : > { %2207 = vmatmul.bf16.gmra.mxu0 %v3433_v52 }
 0x1cb   : > { %v1711_v11 = vpop.f32.mrf.mxu2 }
 0x1cc   : > { %v1712_v22 = vadd.f32 %v1711_v11, %v1623_v17  ;;  %v1628_v17 = vadd.f32 %v1627_v1, %v3411_v29  ;;  %v693_v11 = vld [vmem:[#allocation2 + $0xa9] sm:$0xff] }
 0x1cd   : > { %v1800_v40 = vpop.f32.mrf.mxu3  ;;  %v799_v46 = vpack.c.bf16 %v694_v10, %v693_v11  ;;  %v632_v10 = vld [vmem:[#allocation2 + $0xc2] sm:$0xff] }
 0x1ce   : > { %v1801_v55 = vadd.f32 %v1800_v40, %v1712_v22  ;;  %v630_v22 = vld [vmem:[#allocation2 + $0xaa] sm:$0xff] }
 0x1cf   : > { %v1894_v26 = vpop.f32.mrf.mxu0 }
 0x1d0   : > { %2029 = vmatmul.bf16.gmra.mxu2 %v789_v20  ;;  %v3682_v25 = vadd.f32 %v1889_v43, %v1801_v55  ;;  %v631_v20 = vld [vmem:[#allocation2 + $0xb2] sm:$0xff] }
 0x1d1   : > { %v1630_v6 = vpop.f32.mrf.mxu1 }
 0x1d2   : > { %2118 = vmatmul.bf16.gmra.mxu3 %v790_v56  ;;  %v1631_v29 = vadd.f32 %v1630_v6, %v3421_v51 }
 0x1d3   : > { %v1714_v52 = vpop.f32.mrf.mxu2 }
 0x1d4   : > { %v1715_v42 = vadd.f32 %v1714_v52, %v1626_v14  ;;  %1945 = vmatmul.bf16.gmra.mxu1 %v797_v33 }
 0x1d5   : > { %v1803_v59 = vpop.f32.mrf.mxu3 }
 0x1d6   : > { %v1804_v5 = vadd.f32 %v1803_v59, %v1715_v42  ;;  %v663_v59 = vld [vmem:[#allocation2 + $0xc0] sm:$0xff] }
 0x1d7   : > { %v1897_v38 = vpop.f32.mrf.mxu0 }
 0x1d8   : > { %v3685_v45 = vadd.f32 %v1892_v47, %v1804_v5  ;;  %v806_v47 = vpack.c.bf16 %v631_v20, %v630_v22  ;;  %v664_v5 = vld [vmem:[#allocation2 + $0xc8] sm:$0xff] }
 0x1d9   : > { %v1632_v60 = vpop.f32.mrf.mxu1  ;;  %v807_v6 = vpack.c.bf16 %v664_v5, %v663_v59 }
 0x1da   : > { %2212 = vmatmul.bf16.gmra.mxu0 %v3465_v57  ;;  %v1633_v21 = vadd.f32 %v1632_v60, %v3435_v49 }
 0x1db   : > { %v1716_v43 = vpop.f32.mrf.mxu2 }
 0x1dc   : > { %v1717_v24 = vadd.f32 %v1716_v43, %v1628_v17  ;;  %v695_v17 = vld [vmem:[#allocation2 + $0xc1] sm:$0xff]  ;;  %v696_v43 = vld [vmem:[#allocation2 + $0xc9] sm:$0xff] }
 0x1dd   : > { %v1805_v41 = vpop.f32.mrf.mxu3 }
 0x1de   : > { %v1806_v40 = vadd.f32 %v1805_v41, %v1717_v24  ;;  %v633_v24 = vld [vmem:[#allocation2 + $0xca] sm:$0xff]  ;;  %v808_v41 = vpack.c.bf16 %v696_v43, %v695_v17 }
 0x1df   : > { %v1899_v50 = vpop.f32.mrf.mxu0 }
 0x1e0   : > { %2034 = vmatmul.bf16.gmra.mxu2 %v798_v34  ;;  %v3689_v55 = vadd.f32 %v1894_v26, %v1806_v40 }
 0x1e1   : > { %v1635_v56 = vpop.f32.mrf.mxu1 }
 0x1e2   : > { %2123 = vmatmul.bf16.gmra.mxu3 %v799_v46  ;;  %v1636_v49 = vadd.f32 %v1635_v56, %v3451_v16 }
 0x1e3   : > { %v1719_v57 = vpop.f32.mrf.mxu2 }
 0x1e4   : > { %v1720_v1 = vadd.f32 %v1719_v57, %v1631_v29  ;;  %1950 = vmatmul.bf16.gmra.mxu1 %v806_v47 }
 0x1e5   : > { %v1808_v33 = vpop.f32.mrf.mxu3 }
 0x1e6   : > { %v1809_v14 = vadd.f32 %v1808_v33, %v1720_v1  ;;  %v665_v1 = vld [vmem:[#allocation2 + $0xd8] sm:$0xff]  ;;  %v666_v33 = vld [vmem:[#allocation2 + $0xe0] sm:$0xff] }
 0x1e7   : > { %v1902_v52 = vpop.f32.mrf.mxu0 }
 0x1e8   : > { %v3692_v42 = vadd.f32 %v1897_v38, %v1809_v14  ;;  %v815_v38 = vpack.c.bf16 %v633_v24, %v632_v10  ;;  %v667_v24 = vld [vmem:[#allocation2 + $0xf0] sm:$0xff] }
 0x1e9   : > { %v1637_v30 = vpop.f32.mrf.mxu1 }
 0x1ea   : > { %2217 = vmatmul.bf16.gmra.mxu0 %v3483_v4  ;;  %v1638_v59 = vadd.f32 %v1637_v30, %v3467_v62 }
 0x1eb   : > { %v1721_v26 = vpop.f32.mrf.mxu2 }
 0x1ec   : > { %v1722_v51 = vadd.f32 %v1721_v26, %v1633_v21  ;;  %v816_v21 = vpack.c.bf16 %v666_v33, %v665_v1 }
 0x1ed   : > { %v1810_v11 = vpop.f32.mrf.mxu3 }
 0x1ee   : > { %v1811_v34 = vadd.f32 %v1810_v11, %v1722_v51 }
 0x1ef   : > { %v1904_v22 = vpop.f32.mrf.mxu0 }
 0x1f0   : > { %2039 = vmatmul.bf16.gmra.mxu2 %v807_v6  ;;  %v3696_v20 = vadd.f32 %v1899_v50, %v1811_v34  ;;  %v668_v34 = vld [vmem:[#allocation2 + $0xf8] sm:$0xff] }
 0x1f1   : > { %v1640_v40 = vpop.f32.mrf.mxu1 }
 0x1f2   : > { %2128 = vmatmul.bf16.gmra.mxu3 %v808_v41 }
 0x1f3   : > { %v1724_v4 = vpop.f32.mrf.mxu2 }
 0x1f4   : > { %v1725_v60 = vadd.f32 %v1724_v4, %v1636_v49  ;;  %1955 = vmatmul.bf16.gmra.mxu1 %v815_v38  ;;  %v825_v49 = vpack.c.bf16 %v668_v34, %v667_v24 }
 0x1f5   : > { %v1813_v46 = vpop.f32.mrf.mxu3 }
 0x1f6   : > { %v1814_v47 = vadd.f32 %v1813_v46, %v1725_v60 }
 0x1f7   : > { %v1907_v29 = vpop.f32.mrf.mxu0 }
 0x1f8   : > { %v3699_v57 = vadd.f32 %v1902_v52, %v1814_v47  ;;  %v1641_v52 = vadd.f32 %v1640_v40, %v3474_v31  ;;  %v699_v31 = vld [vmem:[#allocation2 + $0xf1] sm:$0xff]  ;;  %v700_v40 = vld [vmem:[#allocation2 + $0xf9] sm:$0xff] }
 0x1f9   : > { %v1642_v14 = vpop.f32.mrf.mxu1  ;;  %v826_v60 = vpack.c.bf16 %v700_v40, %v699_v31 }
 0x1fa   : > { %2222 = vmatmul.bf16.gmra.mxu0 %v3513_v0 }
 0x1fb   : > { %v1726_v50 = vpop.f32.mrf.mxu2 }
 0x1fc   : > { %v1727_v5 = vadd.f32 %v1726_v50, %v1638_v59 }
 0x1fd   : > { %v1815_v16 = vpop.f32.mrf.mxu3 }
 0x1fe   : > { %v1816_v56 = vadd.f32 %v1815_v16, %v1727_v5  ;;  %v670_v16 = vld [vmem:[#allocation2 + $0x110] sm:$0xff] }
 0x1ff   : > { %v1909_v26 = vpop.f32.mrf.mxu0 }
 0x200   : > { %2044 = vmatmul.bf16.gmra.mxu2 %v816_v21  ;;  %v3703_v17 = vadd.f32 %v1904_v22, %v1816_v56  ;;  %v1643_v22 = vadd.f32 %v1642_v14, %v3485_v15  ;;  %v669_v21 = vld [vmem:[#allocation2 + $0x108] sm:$0xff] }
 0x201   : > { %v1921_v43 = vpop.f32.mrf.mxu1 }
 0x202   : > { %2133 = vmatmul.bf16.gmra.mxu3 %v3488_v2  ;;  %v1922_v1 = vadd.f32 %v1921_v43, %v3510_v63  ;;  %v702_v43 = vld [vmem:[#allocation2 + $0x111] sm:$0xff] }
 0x203   : > { %v1729_v51 = vpop.f32.mrf.mxu2 }
 0x204   : > { %v1730_v6 = vadd.f32 %v1729_v51, %v1641_v52  ;;  %1960 = vmatmul.bf16.gmra.mxu1 %v3513_v0  ;;  %v834_v51 = vpack.c.bf16 %v670_v16, %v669_v21 }
 0x205   : > { %v1818_v62 = vpop.f32.mrf.mxu3 }
 0x206   : > { %v1819_v30 = vadd.f32 %v1818_v62, %v1730_v6 }
 0x207   : > { %v2188_v11 = vpop.f32.mrf.mxu0 }
 0x208   : > { %v3708_v10 = vadd.f32 %v1907_v29, %v1819_v30 }
 0x209   : > { %v1923_v41 = vpop.f32.mrf.mxu1 }
 0x20a   : > { %2227 = vmatmul.bf16.gmra.mxu0 %v3527_v32  ;;  %v1924_v63 = vadd.f32 %v1923_v41, %v3516_v19 }
 0x20b   : > { %v1731_v38 = vpop.f32.mrf.mxu2 }
 0x20c   : > { %v1732_v2 = vadd.f32 %v1731_v38, %v1643_v22 }
 0x20d   : > { %v1820_v4 = vpop.f32.mrf.mxu3 }
 0x20e   : > { %v1821_v0 = vadd.f32 %v1820_v4, %v1732_v2 }
 0x20f   : > { %v2190_v46 = vpop.f32.mrf.mxu0 }
 0x210   : > { %2049 = vmatmul.bf16.gmra.mxu2 %v825_v49  ;;  %v3712_v47 = vadd.f32 %v1909_v26, %v1821_v0  ;;  %v701_v26 = vld [vmem:[#allocation2 + $0x109] sm:$0xff] }
 0x211   : > { %v1926_v29 = vpop.f32.mrf.mxu1  ;;  %v835_v30 = vpack.c.bf16 %v702_v43, %v701_v26 }
 0x212   : > { %2138 = vmatmul.bf16.gmra.mxu3 %v826_v60  ;;  %v1927_v22 = vadd.f32 %v1926_v29, %v3524_v48 }
 0x213   : > { %v2010_v15 = vpop.f32.mrf.mxu2 }
 0x214   : > { %v2011_v33 = vadd.f32 %v2010_v15, %v1922_v1  ;;  %1965 = vmatmul.bf16.gmra.mxu1 %v3527_v32  ;;  %v3844_v15 = vld [vmem:[#allocation5_spill] sm:$0xff] }
 0x215   : > { %v2099_v14 = vpop.f32.mrf.mxu3 }
 0x216   : > { %v2100_v59 = vadd.f32 %v2099_v14, %v2011_v33  ;;  %v3845_v33 = vld [vmem:[#allocation4_spill] sm:$0xff] }
 0x217   : > { %v2193_v50 = vpop.f32.mrf.mxu0 }
 0x218   : > { %v2189_v5 = vadd.f32 %v2188_v11, %v2100_v59  ;;  %v3846_v59 = vld [vmem:[#allocation3_spill] sm:$0xff] }
 0x219   : > { %v1928_v56 = vpop.f32.mrf.mxu1 }
 0x21a   : > { %2268 = vst [vmem:[%s3721_s10] sm:$0xff] %v2189_v5  ;;  %2232 = vmatmul.bf16.gmra.mxu0 %v3552_v18  ;;  %v1929_v4 = vadd.f32 %v1928_v56, %v3530_v8 }
 0x21b   : > { %v2012_v32 = vpop.f32.mrf.mxu2 }
 0x21c   : > { %v2013_v52 = vadd.f32 %v2012_v32, %v1924_v63  ;;  %v3847_v32 = vld [vmem:[#allocation6_spill] sm:$0xff] }
 0x21d   : > { %v2101_v6 = vpop.f32.mrf.mxu3 }
 0x21e   : > { %v2102_v62 = vadd.f32 %v2101_v6, %v2013_v52 }
 0x21f   : > { %v2195_v24 = vpop.f32.mrf.mxu0 }
 0x220   : > { %v2191_v11 = vadd.f32 %v2190_v46, %v2102_v62  ;;  %2054 = vmatmul.bf16.gmra.mxu2 %v834_v51 }
 0x221   : > { %v1931_v34 = vpop.f32.mrf.mxu1 }
 0x222   : > { %2269 = vst [vmem:[%s3721_s10 + $0x8] sm:$0xff] %v2191_v11  ;;  %2143 = vmatmul.bf16.gmra.mxu3 %v835_v30  ;;  %v1932_v14 = vadd.f32 %v1931_v34, %v3845_v33  ;;  %v3849_v11 = vld [vmem:[#allocation8_spill] sm:$0xff] }
 0x223   : > { %v2015_v19 = vpop.f32.mrf.mxu2 }
 0x224   : > { %v2016_v41 = vadd.f32 %v2015_v19, %v1927_v22  ;;  %1970 = vmatmul.bf16.gmra.mxu1 %v3552_v18  ;;  %v3850_v22 = vld [vmem:[#allocation7_spill] sm:$0xff] }
 0x225   : > { %v2104_v38 = vpop.f32.mrf.mxu3 }
 0x226   : > { %v2105_v31 = vadd.f32 %v2104_v38, %v2016_v41 }
 0x227   : > { %v2198_v40 = vpop.f32.mrf.mxu0 }
 0x228   : > { %v2194_v2 = vadd.f32 %v2193_v50, %v2105_v31 }
 0x229   : > { %v1933_v49 = vpop.f32.mrf.mxu1 }
 0x22a   : > { %2270 = vst [vmem:[%s3721_s10 + $0x10] sm:$0xff] %v2194_v2  ;;  %2237 = vmatmul.bf16.gmra.mxu0 %v3566_v13  ;;  %v1934_v26 = vadd.f32 %v1933_v49, %v3847_v32 }
 0x22b   : > { %v2017_v0 = vpop.f32.mrf.mxu2 }
 0x22c   : > { %v2018_v60 = vadd.f32 %v2017_v0, %v1929_v4  ;;  %v3851_v4 = vld [vmem:[#allocation10_spill] sm:$0xff] }
 0x22d   : > { %v2106_v46 = vpop.f32.mrf.mxu3 }
 0x22e   : > { %v2107_v48 = vadd.f32 %v2106_v46, %v2018_v60 }
 0x22f   : > { %v2200_v29 = vpop.f32.mrf.mxu0 }
 0x230   : > { %v2196_v1 = vadd.f32 %v2195_v24, %v2107_v48  ;;  %2059 = vmatmul.bf16.gmra.mxu2 %v3844_v15  ;;  %v3848_v24 = vld [vmem:[#allocation9_spill] sm:$0xff] }
 0x231   : > { %v1936_v18 = vpop.f32.mrf.mxu1 }
 0x232   : > { %2271 = vst [vmem:[%s3721_s10 + $0x18] sm:$0xff] %v2196_v1  ;;  %2148 = vmatmul.bf16.gmra.mxu3 %v3846_v59  ;;  %v1937_v34 = vadd.f32 %v1936_v18, %v3849_v11  ;;  %v3852_v18 = vld [vmem:[#allocation12_spill] sm:$0xff] }
 0x233   : > { %v2020_v50 = vpop.f32.mrf.mxu2 }
 0x234   : > { %v2021_v5 = vadd.f32 %v2020_v50, %v1932_v14  ;;  %1975 = vmatmul.bf16.gmra.mxu1 %v3566_v13  ;;  %v3853_v14 = vld [vmem:[#allocation11_spill] sm:$0xff] }
 0x235   : > { %v2109_v8 = vpop.f32.mrf.mxu3 }
 0x236   : > { %v2110_v21 = vadd.f32 %v2109_v8, %v2021_v5 }
 0x237   : > { %v2203_v16 = vpop.f32.mrf.mxu0 }
 0x238   : > { %v2199_v56 = vadd.f32 %v2198_v40, %v2110_v21 }
 0x239   : > { %v1938_v63 = vpop.f32.mrf.mxu1 }
 0x23a   : > { %2272 = vst [vmem:[%s3721_s10 + $0x20] sm:$0xff] %v2199_v56  ;;  %2242 = vmatmul.bf16.gmra.mxu0 %v3608_v9  ;;  %v1939_v0 = vadd.f32 %v1938_v63, %v3851_v4  ;;  %v3854_v63 = vld [vmem:[#allocation13_spill] sm:$0xff] }
 0x23b   : > { %v2022_v43 = vpop.f32.mrf.mxu2 }
 0x23c   : > { %v2023_v52 = vadd.f32 %v2022_v43, %v1934_v26 }
 0x23d   : > { %v2111_v51 = vpop.f32.mrf.mxu3 }
 0x23e   : > { %v2112_v6 = vadd.f32 %v2111_v51, %v2023_v52 }
 0x23f   : > { %v2205_v62 = vpop.f32.mrf.mxu0 }
 0x240   : > { %v2201_v30 = vadd.f32 %v2200_v29, %v2112_v6  ;;  %2064 = vmatmul.bf16.gmra.mxu2 %v3848_v24  ;;  %v743_v24 = vld [vmem:[#allocation2 + $0x182] sm:$0xff] }
 0x241   : > { %v1941_v13 = vpop.f32.mrf.mxu1 }
 0x242   : > { %2273 = vst [vmem:[%s3721_s10 + $0x28] sm:$0xff] %v2201_v30  ;;  %2153 = vmatmul.bf16.gmra.mxu3 %v3850_v22  ;;  %v1942_v33 = vadd.f32 %v1941_v13, %v3852_v18  ;;  %v744_v13 = vld [vmem:[#allocation2 + $0x18a] sm:$0xff] }
 0x243   : > { %v2025_v19 = vpop.f32.mrf.mxu2 }
 0x244   : > { %v2026_v41 = vadd.f32 %v2025_v19, %v1937_v34  ;;  %1980 = vmatmul.bf16.gmra.mxu1 %v3608_v9  ;;  %v881_v19 = vpack.c.bf16 %v744_v13, %v743_v24 }
 0x245   : > { %v2114_v38 = vpop.f32.mrf.mxu3 }
 0x246   : > { %v2115_v31 = vadd.f32 %v2114_v38, %v2026_v41 }
 0x247   : > { %v2208_v40 = vpop.f32.mrf.mxu0 }
 0x248   : > { %v2204_v2 = vadd.f32 %v2203_v16, %v2115_v31  ;;  %v3855_v31 = vld [vmem:[#allocation14_spill] sm:$0xff] }
 0x249   : > { %v1943_v49 = vpop.f32.mrf.mxu1 }
 0x24a   : > { %2274 = vst [vmem:[%s3721_s10 + $0x30] sm:$0xff] %v2204_v2  ;;  %2247 = vmatmul.bf16.gmra.mxu0 %v3624_v12  ;;  %v1944_v32 = vadd.f32 %v1943_v49, %v3854_v63 }
 0x24b   : > { %v2027_v60 = vpop.f32.mrf.mxu2 }
 0x24c   : > { %v2028_v46 = vadd.f32 %v2027_v60, %v1939_v0  ;;  %v3856_v60 = vld [vmem:[#allocation16_spill] sm:$0xff] }
 0x24d   : > { %v2116_v48 = vpop.f32.mrf.mxu3 }
 0x24e   : > { %v2117_v29 = vadd.f32 %v2116_v48, %v2028_v46  ;;  %v3857_v48 = vld [vmem:[#allocation15_spill] sm:$0xff] }
 0x24f   : > { %v2210_v1 = vpop.f32.mrf.mxu0 }
 0x250   : > { %v2206_v15 = vadd.f32 %v2205_v62, %v2117_v29  ;;  %2069 = vmatmul.bf16.gmra.mxu2 %v3610_v7 }
 0x251   : > { %v1946_v9 = vpop.f32.mrf.mxu1 }
 0x252   : > { %2275 = vst [vmem:[%s3721_s10 + $0x38] sm:$0xff] %v2206_v15  ;;  %2158 = vmatmul.bf16.gmra.mxu3 %v3853_v14  ;;  %v1947_v62 = vadd.f32 %v1946_v9, %v3620_v23  ;;  %v746_v15 = vld [vmem:[#allocation2 + $0x1a2] sm:$0xff] }
 0x253   : > { %v2030_v59 = vpop.f32.mrf.mxu2 }
 0x254   : > { %v2031_v50 = vadd.f32 %v2030_v59, %v1942_v33  ;;  %1985 = vmatmul.bf16.gmra.mxu1 %v3624_v12 }
 0x255   : > { %v2119_v5 = vpop.f32.mrf.mxu3 }
 0x256   : > { %v2120_v8 = vadd.f32 %v2119_v5, %v2031_v50 }
 0x257   : > { %v2213_v21 = vpop.f32.mrf.mxu0 }
 0x258   : > { %v2209_v16 = vadd.f32 %v2208_v40, %v2120_v8 }
 0x259   : > { %v1948_v56 = vpop.f32.mrf.mxu1 }
 0x25a   : > { %2276 = vst [vmem:[%s3721_s10 + $0x40] sm:$0xff] %v2209_v16  ;;  %2252 = vmatmul.bf16.gmra.mxu0 %v3640_v44  ;;  %v1949_v40 = vadd.f32 %v1948_v56, %v3855_v31  ;;  %v713_v16 = vld [vmem:[#allocation2 + $0x199] sm:$0xff]  ;;  %v714_v56 = vld [vmem:[#allocation2 + $0x1a1] sm:$0xff] }
 0x25b   : > { %v2032_v7 = vpop.f32.mrf.mxu2 }
 0x25c   : > { %v2033_v26 = vadd.f32 %v2032_v7, %v1944_v32  ;;  %v2820_v32 = vld [vmem:[#allocation2] sm:$0xff] }
 0x25d   : > { %v2121_v43 = vpop.f32.mrf.mxu3  ;;  %v888_v7 = vpack.c.bf16 %v2820_v32, %v2820_v32 }
 0x25e   : > { %v2122_v52 = vadd.f32 %v2121_v43, %v2033_v26 }
 0x25f   : > { %v2215_v51 = vpop.f32.mrf.mxu0 }
 0x260   : > { %v2211_v6 = vadd.f32 %v2210_v1, %v2122_v52  ;;  %2074 = vmatmul.bf16.gmra.mxu2 %v3626_v39  ;;  %v745_v1 = vld [vmem:[#allocation2 + $0x19a] sm:$0xff]  ;;  %v889_v52 = vpack.c.bf16 %v714_v56, %v713_v16 }
 0x261   : > { %v1951_v12 = vpop.f32.mrf.mxu1  ;;  %v890_v14 = vpack.c.bf16 %v746_v15, %v745_v1 }
 0x262   : > { %2277 = vst [vmem:[%s3721_s10 + $0x48] sm:$0xff] %v2211_v6  ;;  %2163 = vmatmul.bf16.gmra.mxu3 %v3618_v27  ;;  %v1952_v46 = vadd.f32 %v1951_v12, %v3856_v60 }
 0x263   : > { %v2035_v30 = vpop.f32.mrf.mxu2 }
 0x264   : > { %v2036_v11 = vadd.f32 %v2035_v30, %v1947_v62  ;;  %1990 = vmatmul.bf16.gmra.mxu1 %v3640_v44  ;;  %v3859_v62 = vld [vmem:[#allocation18_spill] sm:$0xff] }
 0x265   : > { %v2124_v34 = vpop.f32.mrf.mxu3 }
 0x266   : > { %v2125_v22 = vadd.f32 %v2124_v34, %v2036_v11 }
 0x267   : > { %v2218_v41 = vpop.f32.mrf.mxu0 }
 0x268   : > { %v2214_v38 = vadd.f32 %v2213_v21, %v2125_v22 }
 0x269   : > { %v1953_v39 = vpop.f32.mrf.mxu1 }
 0x26a   : > { %2278 = vst [vmem:[%s3721_s10 + $0x50] sm:$0xff] %v2214_v38  ;;  %2257 = vmatmul.bf16.gmra.mxu0 %v881_v19 }
 0x26b   : > { %v2037_v23 = vpop.f32.mrf.mxu2 }
 0x26c   : > { %v2038_v2 = vadd.f32 %v2037_v23, %v1949_v40 }
 0x26d   : > { %v2126_v27 = vpop.f32.mrf.mxu3 }
 0x26e   : > { %v2127_v49 = vadd.f32 %v2126_v27, %v2038_v2 }
 0x26f   : > { %v2220_v4 = vpop.f32.mrf.mxu0 }
 0x270   : > { %v2216_v0 = vadd.f32 %v2215_v51, %v2127_v49  ;;  %2079 = vmatmul.bf16.gmra.mxu2 %v3642_v58  ;;  %v3858_v58 = vld [vmem:[#allocation17_spill] sm:$0xff] }
 0x271   : > { %v1956_v44 = vpop.f32.mrf.mxu1  ;;  %v1954_v8 = vadd.f32 %v1953_v39, %v3858_v58 }
 0x272   : > { %2279 = vst [vmem:[%s3721_s10 + $0x58] sm:$0xff] %v2216_v0  ;;  %2168 = vmatmul.bf16.gmra.mxu3 %v3857_v48  ;;  %v1957_v30 = vadd.f32 %v1956_v44, %v3859_v62 }
 0x273   : > { %v2040_v29 = vpop.f32.mrf.mxu2 }
 0x274   : > { %v2041_v9 = vadd.f32 %v2040_v29, %v1952_v46  ;;  %1995 = vmatmul.bf16.gmra.mxu1 %v881_v19 }
 0x275   : > { %v2129_v18 = vpop.f32.mrf.mxu3 }
 0x276   : > { %v2130_v33 = vadd.f32 %v2129_v18, %v2041_v9 }
 0x277   : > { %v2223_v59 = vpop.f32.mrf.mxu0 }
 0x278   : > { %v2219_v50 = vadd.f32 %v2218_v41, %v2130_v33 }
 0x279   : > { %v1958_v5 = vpop.f32.mrf.mxu1 }
 0x27a   : > { %2280 = vst [vmem:[%s3721_s10 + $0x60] sm:$0xff] %v2219_v50  ;;  %2262 = vmatmul.bf16.gmra.mxu0 %v890_v14  ;;  %v1959_v38 = vadd.f32 %v1958_v5, %v3654_v35 }
 0x27b   : > { %v2042_v21 = vpop.f32.mrf.mxu2 }
 0x27c   : > { %v2043_v63 = vadd.f32 %v2042_v21, %v1954_v8 }
 0x27d   : > { %v2131_v26 = vpop.f32.mrf.mxu3 }
 0x27e   : > { %v2132_v43 = vadd.f32 %v2131_v26, %v2043_v63 }
 0x27f   : > { %v2225_v51 = vpop.f32.mrf.mxu0 }
 0x280   : > { %v2221_v6 = vadd.f32 %v2220_v4, %v2132_v43  ;;  %2084 = vmatmul.bf16.gmra.mxu2 %v888_v7 }
 0x281   : > { %v1961_v12 = vpop.f32.mrf.mxu1 }
 0x282   : > { %2281 = vst [vmem:[%s3721_s10 + $0x68] sm:$0xff] %v2221_v6  ;;  %2173 = vmatmul.bf16.gmra.mxu3 %v889_v52  ;;  %v1962_v4 = vadd.f32 %v1961_v12, %v3657_v28 }
 0x283   : > { %v2045_v24 = vpop.f32.mrf.mxu2 }
 0x284   : > { %v2046_v13 = vadd.f32 %v2045_v24, %v1957_v30 }
 0x285   : > { %v2134_v11 = vpop.f32.mrf.mxu3 }
 0x286   : > { %v2135_v34 = vadd.f32 %v2134_v11, %v2046_v13 }
 0x287   : > { %v2228_v22 = vpop.f32.mrf.mxu0 }
 0x288   : > { %v2224_v19 = vadd.f32 %v2223_v59, %v2135_v34 }
 0x289   : > { %v1963_v41 = vpop.f32.mrf.mxu1 }
 0x28a   : > { %2282 = vst [vmem:[%s3721_s10 + $0x70] sm:$0xff] %v2224_v19  ;;  %v1964_v35 = vadd.f32 %v1963_v41, %v3661_v54 }
 0x28b   : > { %v2047_v39 = vpop.f32.mrf.mxu2 }
 0x28c   : > { %v2048_v31 = vadd.f32 %v2047_v39, %v1959_v38 }
 0x28d   : > { %v2136_v40 = vpop.f32.mrf.mxu3 }
 0x28e   : > { %v2137_v23 = vadd.f32 %v2136_v40, %v2048_v31 }
 0x28f   : > { %v2230_v2 = vpop.f32.mrf.mxu0 }
 0x290   : > { %v2226_v27 = vadd.f32 %v2225_v51, %v2137_v23 }
 0x291   : > { %v1966_v49 = vpop.f32.mrf.mxu1 }
 0x292   : > { %2283 = vst [vmem:[%s3721_s10 + $0x78] sm:$0xff] %v2226_v27  ;;  %v1967_v28 = vadd.f32 %v1966_v49, %v3664_v3 }
 0x293   : > { %v2050_v0 = vpop.f32.mrf.mxu2 }
 0x294   : > { %v2051_v44 = vadd.f32 %v2050_v0, %v1962_v4 }
 0x295   : > { %v2139_v60 = vpop.f32.mrf.mxu3 }
 0x296   : > { %v2140_v46 = vadd.f32 %v2139_v60, %v2051_v44 }
 0x297   : > { %v2233_v48 = vpop.f32.mrf.mxu0 }
 0x298   : > { %v2229_v29 = vadd.f32 %v2228_v22, %v2140_v46 }
 0x299   : > { %v1968_v1 = vpop.f32.mrf.mxu1 }
 0x29a   : > { %2284 = vst [vmem:[%s3721_s10 + $0x80] sm:$0xff] %v2229_v29  ;;  %v1969_v54 = vadd.f32 %v1968_v1, %v3668_v61 }
 0x29b   : > { %v2052_v15 = vpop.f32.mrf.mxu2 }
 0x29c   : > { %v2053_v9 = vadd.f32 %v2052_v15, %v1964_v35 }
 0x29d   : > { %v2141_v18 = vpop.f32.mrf.mxu3 }
 0x29e   : > { %v2142_v33 = vadd.f32 %v2141_v18, %v2053_v9 }
 0x29f   : > { %v2235_v14 = vpop.f32.mrf.mxu0 }
 0x2a0   : > { %v2231_v59 = vadd.f32 %v2230_v2, %v2142_v33 }
 0x2a1   : > { %v1971_v50 = vpop.f32.mrf.mxu1 }
 0x2a2   : > { %2285 = vst [vmem:[%s3721_s10 + $0x88] sm:$0xff] %v2231_v59  ;;  %v1972_v3 = vadd.f32 %v1971_v50, %v3671_v53 }
 0x2a3   : > { %v2055_v5 = vpop.f32.mrf.mxu2 }
 0x2a4   : > { %v2056_v58 = vadd.f32 %v2055_v5, %v1967_v28 }
 0x2a5   : > { %v2144_v8 = vpop.f32.mrf.mxu3 }
 0x2a6   : > { %v2145_v21 = vadd.f32 %v2144_v8, %v2056_v58 }
 0x2a7   : > { %v2238_v16 = vpop.f32.mrf.mxu0 }
 0x2a8   : > { %v2234_v56 = vadd.f32 %v2233_v48, %v2145_v21 }
 0x2a9   : > { %v1973_v63 = vpop.f32.mrf.mxu1 }
 0x2aa   : > { %2286 = vst [vmem:[%s3721_s10 + $0x90] sm:$0xff] %v2234_v56  ;;  %v1974_v61 = vadd.f32 %v1973_v63, %v3675_v37 }
 0x2ab   : > { %v2057_v32 = vpop.f32.mrf.mxu2 }
 0x2ac   : > { %v2058_v7 = vadd.f32 %v2057_v32, %v1969_v54 }
 0x2ad   : > { %v2146_v26 = vpop.f32.mrf.mxu3 }
 0x2ae   : > { %v2147_v43 = vadd.f32 %v2146_v26, %v2058_v7 }
 0x2af   : > { %v2240_v52 = vpop.f32.mrf.mxu0 }
 0x2b0   : > { %v2236_v51 = vadd.f32 %v2235_v14, %v2147_v43 }
 0x2b1   : > { %v1976_v6 = vpop.f32.mrf.mxu1 }
 0x2b2   : > { %2287 = vst [vmem:[%s3721_s10 + $0x98] sm:$0xff] %v2236_v51  ;;  %v1977_v53 = vadd.f32 %v1976_v6, %v3678_v36 }
 0x2b3   : > { %v2060_v12 = vpop.f32.mrf.mxu2 }
 0x2b4   : > { %v2061_v62 = vadd.f32 %v2060_v12, %v1972_v3 }
 0x2b5   : > { %v2149_v30 = vpop.f32.mrf.mxu3 }
 0x2b6   : > { %v2150_v24 = vadd.f32 %v2149_v30, %v2061_v62 }
 0x2b7   : > { %v2243_v13 = vpop.f32.mrf.mxu0 }
 0x2b8   : > { %v2239_v11 = vadd.f32 %v2238_v16, %v2150_v24 }
 0x2b9   : > { %v1978_v34 = vpop.f32.mrf.mxu1 }
 0x2ba   : > { %2288 = vst [vmem:[%s3721_s10 + $0xa0] sm:$0xff] %v2239_v11  ;;  %v1979_v37 = vadd.f32 %v1978_v34, %v3682_v25 }
 0x2bb   : > { %v2062_v22 = vpop.f32.mrf.mxu2 }
 0x2bc   : > { %v2063_v19 = vadd.f32 %v2062_v22, %v1974_v61 }
 0x2bd   : > { %v2151_v41 = vpop.f32.mrf.mxu3 }
 0x2be   : > { %v2152_v38 = vadd.f32 %v2151_v41, %v2063_v19 }
 0x2bf   : > { %v2245_v39 = vpop.f32.mrf.mxu0 }
 0x2c0   : > { %v2241_v31 = vadd.f32 %v2240_v52, %v2152_v38 }
 0x2c1   : > { %v1981_v40 = vpop.f32.mrf.mxu1 }
 0x2c2   : > { %2289 = vst [vmem:[%s3721_s10 + $0xa8] sm:$0xff] %v2241_v31  ;;  %v1982_v35 = vadd.f32 %v1981_v40, %v3685_v45 }
 0x2c3   : > { %v2065_v23 = vpop.f32.mrf.mxu2 }
 0x2c4   : > { %v2066_v2 = vadd.f32 %v2065_v23, %v1977_v53 }
 0x2c5   : > { %v2154_v27 = vpop.f32.mrf.mxu3 }
 0x2c6   : > { %v2155_v49 = vadd.f32 %v2154_v27, %v2066_v2 }
 0x2c7   : > { %v2248_v0 = vpop.f32.mrf.mxu0 }
 0x2c8   : > { %v2244_v4 = vadd.f32 %v2243_v13, %v2155_v49 }
 0x2c9   : > { %v1983_v60 = vpop.f32.mrf.mxu1 }
 0x2ca   : > { %2290 = vst [vmem:[%s3721_s10 + $0xb0] sm:$0xff] %v2244_v4  ;;  %v1984_v25 = vadd.f32 %v1983_v60, %v3689_v55 }
 0x2cb   : > { %v2067_v44 = vpop.f32.mrf.mxu2 }
 0x2cc   : > { %v2068_v46 = vadd.f32 %v2067_v44, %v1979_v37 }
 0x2cd   : > { %v2156_v48 = vpop.f32.mrf.mxu3 }
 0x2ce   : > { %v2157_v29 = vadd.f32 %v2156_v48, %v2068_v46 }
 0x2cf   : > { %v2250_v15 = vpop.f32.mrf.mxu0 }
 0x2d0   : > { %v2246_v1 = vadd.f32 %v2245_v39, %v2157_v29 }
 0x2d1   : > { %v1986_v33 = vpop.f32.mrf.mxu1 }
 0x2d2   : > { %2291 = vst [vmem:[%s3721_s10 + $0xb8] sm:$0xff] %v2246_v1  ;;  %v1987_v45 = vadd.f32 %v1986_v33, %v3692_v42 }
 0x2d3   : > { %v2070_v36 = vpop.f32.mrf.mxu2 }
 0x2d4   : > { %v2071_v9 = vadd.f32 %v2070_v36, %v1982_v35 }
 0x2d5   : > { %v2159_v18 = vpop.f32.mrf.mxu3 }
 0x2d6   : > { %v2160_v14 = vadd.f32 %v2159_v18, %v2071_v9 }
 0x2d7   : > { %v2253_v58 = vpop.f32.mrf.mxu0 }
 0x2d8   : > { %v2249_v59 = vadd.f32 %v2248_v0, %v2160_v14 }
 0x2d9   : > { %v1988_v21 = vpop.f32.mrf.mxu1 }
 0x2da   : > { %2292 = vst [vmem:[%s3721_s10 + $0xc0] sm:$0xff] %v2249_v59  ;;  %v1989_v55 = vadd.f32 %v1988_v21, %v3696_v20 }
 0x2db   : > { %v2072_v50 = vpop.f32.mrf.mxu2 }
 0x2dc   : > { %v2073_v28 = vadd.f32 %v2072_v50, %v1984_v25 }
 0x2dd   : > { %v2161_v5 = vpop.f32.mrf.mxu3 }
 0x2de   : > { %v2162_v8 = vadd.f32 %v2161_v5, %v2073_v28 }
 0x2df   : > { %v2255_v7 = vpop.f32.mrf.mxu0 }
 0x2e0   : > { %v2251_v16 = vadd.f32 %v2250_v15, %v2162_v8 }
 0x2e1   : > { %v1991_v43 = vpop.f32.mrf.mxu1 }
 0x2e2   : > { %2293 = vst [vmem:[%s3721_s10 + $0xc8] sm:$0xff] %v2251_v16  ;;  %v1992_v42 = vadd.f32 %v1991_v43, %v3699_v57 }
 0x2e3   : > { %v2075_v56 = vpop.f32.mrf.mxu2 }
 0x2e4   : > { %v2076_v63 = vadd.f32 %v2075_v56, %v1987_v45 }
 0x2e5   : > { %v2164_v54 = vpop.f32.mrf.mxu3 }
 0x2e6   : > { %v2165_v32 = vadd.f32 %v2164_v54, %v2076_v63 }
 0x2e7   : > { %v2258_v62 = vpop.f32.mrf.mxu0 }
 0x2e8   : > { %v2254_v26 = vadd.f32 %v2253_v58, %v2165_v32 }
 0x2e9   : > { %v1993_v24 = vpop.f32.mrf.mxu1 }
 0x2ea   : > { %2294 = vst [vmem:[%s3721_s10 + $0xd0] sm:$0xff] %v2254_v26  ;;  %v1994_v22 = vadd.f32 %v1993_v24, %v3703_v17 }
 0x2eb   : > { %v2077_v52 = vpop.f32.mrf.mxu2 }
 0x2ec   : > { %v2078_v51 = vadd.f32 %v2077_v52, %v1989_v55 }
 0x2ed   : > { %v2166_v6 = vpop.f32.mrf.mxu3 }
 0x2ee   : > { %v2167_v3 = vadd.f32 %v2166_v6, %v2078_v51 }
 0x2ef   : > { %v2260_v20 = vpop.f32.mrf.mxu0 }
 0x2f0   : > { %v2256_v12 = vadd.f32 %v2255_v7, %v2167_v3 }
 0x2f1   : > { %v1996_v39 = vpop.f32.mrf.mxu1 }
 0x2f2   : > { %2295 = vst [vmem:[%s3721_s10 + $0xd8] sm:$0xff] %v2256_v12  ;;  %v1997_v57 = vadd.f32 %v1996_v39, %v3708_v10 }
 0x2f3   : > { %v2080_v30 = vpop.f32.mrf.mxu2 }
 0x2f4   : > { %v2081_v13 = vadd.f32 %v2080_v30, %v1992_v42 }
 0x2f5   : > { %v2169_v11 = vpop.f32.mrf.mxu3 }
 0x2f6   : > { %v2170_v34 = vadd.f32 %v2169_v11, %v2081_v13 }
 0x2f7   : > { %v2263_v2 = vpop.f32.mrf.mxu0 }
 0x2f8   : > { %v2259_v61 = vadd.f32 %v2258_v62, %v2170_v34 }
 0x2f9   : > { %v1998_v4 = vpop.f32.mrf.mxu1 }
 0x2fa   : > { %2296 = vst [vmem:[%s3721_s10 + $0xe0] sm:$0xff] %v2259_v61  ;;  %v1999_v17 = vadd.f32 %v1998_v4, %v3712_v47 }
 0x2fb   : > { %v2082_v19 = vpop.f32.mrf.mxu2 }
 0x2fc   : > { %v2083_v41 = vadd.f32 %v2082_v19, %v1994_v22 }
 0x2fd   : > { %v2171_v38 = vpop.f32.mrf.mxu3 }
 0x2fe   : > { %v2172_v31 = vadd.f32 %v2171_v38, %v2083_v41 }
 0x2ff   : > { %v2265_v48 = vpop.f32.mrf.mxu0 }
 0x300   : > { %v2261_v40 = vadd.f32 %v2260_v20, %v2172_v31 }
 0x302   : > { %2297 = vst [vmem:[%s3721_s10 + $0xe8] sm:$0xff] %v2261_v40 }
 0x303   : > { %v2085_v53 = vpop.f32.mrf.mxu2 }
 0x304   : > { %v2086_v23 = vadd.f32 %v2085_v53, %v1997_v57 }
 0x305   : > { %v2174_v27 = vpop.f32.mrf.mxu3 }
 0x306   : > { %v2175_v49 = vadd.f32 %v2174_v27, %v2086_v23 }
 0x308   : > { %v2264_v0 = vadd.f32 %v2263_v2, %v2175_v49 }
 0x30a   : > { %2298 = vst [vmem:[%s3721_s10 + $0xf0] sm:$0xff] %v2264_v0 }
 0x30b   : > { %v2087_v37 = vpop.f32.mrf.mxu2 }
 0x30c   : > { %v2088_v44 = vadd.f32 %v2087_v37, %v1999_v17 }
 0x30d   : > { %v2176_v60 = vpop.f32.mrf.mxu3 }
 0x30e   : > { %v2177_v46 = vadd.f32 %v2176_v60, %v2088_v44 }
 0x310   : > { %v2266_v29 = vadd.f32 %v2265_v48, %v2177_v46 }
 0x312   : > { %2299 = vst [vmem:[%s3721_s10 + $0xf8] sm:$0xff] %v2266_v29 }
 0x313 PF: > { %s14_s17 = sadd.s32 1, %s2843_s17   ;;  %s3860_s15 = smov %s2839_s16 }
 0x314   : > { %p11_p5 = scmp.ge.s32.totalorder %s14_s17, 4   ;;  %s3861_s16 = smov %s3863_s18 }
 0x316   :  { %13 = sbr.rel (!%p11_p5) target bundleno = 2 (0x2), region = 71 }

// kernel: standard_block_forward.3
= control target key start
LH: loop header
LB: loop body
LE: loop exit
PB: predicated region body
PF: predicated region fallthrough
CT: control target
= control target key end

     0   :  { %s2095_s21 = smov 0   ;;  %s2097_s22 = smov 0   ;;  %s2613_s0 = inlined_call_operand.vmem [shape: f32[2,8,8,128], index: 0, kind: input, shape index: {}]   ;;  %s2614_s1 = inlined_call_operand.vmem [shape: f32[1,128], index: 1, kind: input, shape index: {}]   ;;  %s2615_s2 = inlined_call_operand.vmem [shape: f32[1,128], index: 2, kind: input, shape index: {}]   ;;  %s2616_s3 = inlined_call_operand.vmem [shape: bf16[1152,128], index: 3, kind: input, shape index: {}]   ;;  %s2617_s4 = inlined_call_operand.vmem [shape: f32[2,8,8,128], index: 4, kind: input, shape index: {}]   ;;  %s2618_s5 = inlined_call_operand.vmem [shape: bf16[128,128], index: 5, kind: input, shape index: {}]   ;;  %s2619_s6 = inlined_call_operand.vmem [shape: f32[2,8,8,128], index: 6, kind: output, shape index: {}]  }
   0x1   :  { %s2099_s23 = smov 0  }
   0x2 LB: > { %s28_s24 = sadd.s32 1, %s2053_s22  ;;  %p1580_p0 = scmp.ge.s32.totalorder %s2057_s23, 1  ;;  %s2057_s23 = sphi %s2099_s23, %s16_s23   ;;  %s2053_s22 = sphi %s2097_s22, %s2621_s22   ;;  %s2049_s21 = sphi %s2095_s21, %s2620_s21  }
   0x3   : > { %p30_p1 = scmp.ge.s32.totalorder %s28_s24, 2  ;;  %p254_p2 = scmp.lt.s32.totalorder %s2057_s23, 3 }
   0x5   : > { %s2623_s24 = smov (%p30_p1, %s28_s24), 0  ;;  %p255_p3 = pnand %p1580_p0, %p254_p2 }
   0x6   : > { %p300_p4 = scmp.lt.s32.totalorder (!%p255_p3), %s2049_s21, 1 }
   0x7   : > { %258 = sbr.rel (%p255_p3) target bundleno = 337 (0x151), region = 44 }
   0xc   : > { %v1991_v0 = vld [vmem:[%s2618_s5 + $0x38] sm:$0xff]  ;;  %v2059_v2 = vmov 0.0   ;;  %v1990_v3 = vld [vmem:[%s2618_s5 + $0x30] sm:$0xff]  ;;  %s2625_s21 = smov (!%p300_p4, %s2049_s21), 1  ;;  %v2140_v5 = vld [vmem:[%s2614_s1] ss:$0 sm:$0xff] }
   0xd   : > { %v1919_v1 = vld [vmem:[%s2616_s3 + $0x38] sm:$0xff]  ;;  %374 = vst [vmem:[#allocation2 + $0x40] sm:$0xff] %v2059_v2  ;;  %1992 = vmatpush.bf16.msra.mxu2 %v1991_v0  ;;  %v1918_v4 = vld [vmem:[%s2616_s3 + $0x30] sm:$0xff]  ;;  %724 = vmatpush.bf16.msra.mxu0 %v1991_v0  ;;  %s2128_s9 = sshll.u32 %s2625_s21, 6  ;;  %v1989_v6 = vld [vmem:[%s2618_s5 + $0x28] sm:$0xff] }
   0xe   : > { %2000 = vmatpush.bf16.msra.mxu3 %v1919_v1  ;;  %375 = vst [vmem:[#allocation2 + $0x48] sm:$0x3] %v2059_v2  ;;  %1185 = vmatpush.bf16.msra.mxu1 %v1919_v1  ;;  %s2135_s12 = scalar_lea.vmem %s2613_s0, %s2128_s9  ;;  %v1917_v7 = vld [vmem:[%s2616_s3 + $0x28] sm:$0xff]  ;;  %v2161_v14 = vld [vmem:[%s2615_s2] ss:$0 sm:$0xff]  ;;  %v1987_v27 = vld [vmem:[%s2618_s5 + $0x18] sm:$0xff]  ;;  %s2229_s20 = scalar_lea.vmem %s2617_s4, %s2128_s9 }
   0xf   : > { %376 = vst [vmem:[#allocation2 + $0x50] sm:$0xff] %v2059_v2  ;;  %v329_v8 = vld [vmem:[%s2135_s12 + $0x18] sm:$0xff]  ;;  %v330_v9 = vld [vmem:[%s2135_s12 + $0x20] sm:$0xff]  ;;  %v331_v13 = vld [vmem:[%s2135_s12 + $0x28] sm:$0xff]  ;;  %s2576_s21 = scalar_lea.vmem %s2619_s6, %s2128_s9 }
  0x10   : > { %377 = vst [vmem:[#allocation2 + $0x58] sm:$0x3] %v2059_v2  ;;  %v326_v10 = vld [vmem:[%s2135_s12] sm:$0xff]  ;;  %v341_v11 = vmul.f32 %v2140_v5, %v329_v8  ;;  %v342_v12 = vmul.f32 %v2140_v5, %v330_v9  ;;  %v332_v17 = vld [vmem:[%s2135_s12 + $0x30] sm:$0xff]  ;;  %v327_v18 = vld [vmem:[%s2135_s12 + $0x8] sm:$0xff]  ;;  %v343_v23 = vmul.f32 %v2140_v5, %v331_v13 }
  0x11   : > { %366 = vst [vmem:[#allocation2] sm:$0xff] %v2059_v2  ;;  %1993 = vmatpush.bf16.msra.mxu2 %v1990_v3  ;;  %725 = vmatpush.bf16.msra.mxu0 %v1990_v3  ;;  %v1988_v15 = vld [vmem:[%s2618_s5 + $0x20] sm:$0xff]  ;;  %v338_v19 = vmul.f32 %v2140_v5, %v326_v10  ;;  %v328_v22 = vld [vmem:[%s2135_s12 + $0x10] sm:$0xff]  ;;  %v344_v24 = vmul.f32 %v2140_v5, %v332_v17  ;;  %v1915_v28 = vld [vmem:[%s2616_s3 + $0x18] sm:$0xff] }
  0x12   : > { %2001 = vmatpush.bf16.msra.mxu3 %v1918_v4  ;;  %367 = vst [vmem:[#allocation2 + $0x8] sm:$0x3] %v2059_v2  ;;  %1186 = vmatpush.bf16.msra.mxu1 %v1918_v4  ;;  %v1916_v16 = vld [vmem:[%s2616_s3 + $0x20] sm:$0xff]  ;;  %v353_v20 = vadd.f32 %v2161_v14, %v341_v11  ;;  %v354_v21 = vadd.f32 %v2161_v14, %v342_v12  ;;  %v1986_v34 = vld [vmem:[%s2618_s5 + $0x10] sm:$0xff]  ;;  %v1985_v41 = vld [vmem:[%s2618_s5 + $0x8] sm:$0xff] }
  0x13   : > { %368 = vst [vmem:[#allocation2 + $0x10] sm:$0xff] %v2059_v2  ;;  %v339_v29 = vmul.f32 %v2140_v5, %v327_v18  ;;  %v340_v30 = vmul.f32 %v2140_v5, %v328_v22  ;;  %v350_v31 = vadd.f32 %v2161_v14, %v338_v19  ;;  %v355_v32 = vadd.f32 %v2161_v14, %v343_v23  ;;  %v1914_v35 = vld [vmem:[%s2616_s3 + $0x10] sm:$0xff]  ;;  %v1913_v42 = vld [vmem:[%s2616_s3 + $0x8] sm:$0xff]  ;;  %v1984_v45 = vld [vmem:[%s2618_s5] sm:$0xff] }
  0x14   : > { %369 = vst [vmem:[#allocation2 + $0x18] sm:$0x3] %v2059_v2  ;;  %v2181_v25 = vmax.f32 %v353_v20, 0.0  ;;  %v2183_v26 = vmax.f32 %v354_v21, 0.0  ;;  %v356_v33 = vadd.f32 %v2161_v14, %v344_v24  ;;  %v1912_v46 = vld [vmem:[%s2616_s3] sm:$0xff]  ;;  %v653_v48 = vld [vmem:[%s2229_s20 + $0x28] sm:$0xff] }
  0x15   : > { %370 = vst [vmem:[#allocation2 + $0x20] sm:$0xff] %v2059_v2  ;;  %1994 = vmatpush.bf16.msra.mxu2 %v1989_v6  ;;  %726 = vmatpush.bf16.msra.mxu0 %v1989_v6  ;;  %v351_v36 = vadd.f32 %v2161_v14, %v339_v29  ;;  %v2210_v37 = vmax.f32 %v350_v31, 0.0  ;;  %v352_v38 = vadd.f32 %v2161_v14, %v340_v30  ;;  %v2214_v39 = vmax.f32 %v355_v32, 0.0  ;;  %v652_v47 = vld [vmem:[%s2229_s20 + $0x20] sm:$0xff]  ;;  %v649_v52 = vld [vmem:[%s2229_s20 + $0x8] sm:$0xff]  ;;  %v1927_v53 = vld [vmem:[%s2616_s3 + $0x78] sm:$0xff] }
  0x16   : > { %2002 = vmatpush.bf16.msra.mxu3 %v1917_v7  ;;  %371 = vst [vmem:[#allocation2 + $0x28] sm:$0x3] %v2059_v2  ;;  %1187 = vmatpush.bf16.msra.mxu1 %v1917_v7  ;;  %v2217_v40 = vmax.f32 %v356_v33, 0.0  ;;  %v648_v51 = vld [vmem:[%s2229_s20] sm:$0xff]  ;;  %v1935_v54 = vld [vmem:[%s2616_s3 + $0xb8] sm:$0xff]  ;;  %v658_v55 = vpack.c.bf16 %v653_v48, %v652_v47  ;;  %v1926_v62 = vld [vmem:[%s2616_s3 + $0x70] sm:$0xff]  ;;  %v2354_v32 = vpack.c.bf16 %v2183_v26, %v2181_v25 }
  0x17   : > { %372 = vst [vmem:[#allocation2 + $0x30] sm:$0xff] %v2059_v2  ;;  %v2232_v43 = vmax.f32 %v351_v36, 0.0  ;;  %v2235_v44 = vmax.f32 %v352_v38, 0.0  ;;  %v656_v57 = vpack.c.bf16 %v649_v52, %v648_v51  ;;  %v1943_v60 = vld [vmem:[%s2616_s3 + $0xf8] sm:$0xff]  ;;  %v1934_v63 = vld [vmem:[%s2616_s3 + $0xb0] sm:$0xff]  ;;  %v1933_v3 = vld [vmem:[%s2616_s3 + $0xa8] sm:$0xff] }
  0x18   : > { %373 = vst [vmem:[#allocation2 + $0x38] sm:$0x3] %v2059_v2  ;;  %v1951_v61 = vld [vmem:[%s2616_s3 + $0x138] sm:$0xff]  ;;  %v1942_v0 = vld [vmem:[%s2616_s3 + $0xf0] sm:$0xff]  ;;  %v1941_v4 = vld [vmem:[%s2616_s3 + $0xe8] sm:$0xff] }
  0x19   : > { %378 = vst [vmem:[#allocation2 + $0x60] sm:$0xff] %v2059_v2  ;;  %1995 = vmatpush.bf16.msra.mxu2 %v1988_v15  ;;  %727 = vmatpush.bf16.msra.mxu0 %v1988_v15  ;;  %v1950_v1 = vld [vmem:[%s2616_s3 + $0x130] sm:$0xff]  ;;  %v1949_v6 = vld [vmem:[%s2616_s3 + $0x128] sm:$0xff]  ;;  %v1924_v7 = vld [vmem:[%s2616_s3 + $0x60] sm:$0xff] }
  0x1a   : > { %2003 = vmatpush.bf16.msra.mxu3 %v1916_v16  ;;  %379 = vst [vmem:[#allocation2 + $0x68] sm:$0x3] %v2059_v2  ;;  %1188 = vmatpush.bf16.msra.mxu1 %v1916_v16  ;;  %v1932_v8 = vld [vmem:[%s2616_s3 + $0xa0] sm:$0xff]  ;;  %v654_v10 = vld [vmem:[%s2229_s20 + $0x30] sm:$0xff]  ;;  %v655_v11 = vld [vmem:[%s2229_s20 + $0x38] sm:$0xff] }
  0x1b   : > { %390 = vst [vmem:[#allocation2 + $0x41] sm:$0xff] %v2181_v25  ;;  %v1940_v9 = vld [vmem:[%s2616_s3 + $0xe0] sm:$0xff]  ;;  %v650_v16 = vld [vmem:[%s2229_s20 + $0x10] sm:$0xff]  ;;  %v651_v17 = vld [vmem:[%s2229_s20 + $0x18] sm:$0xff]  ;;  %v659_v22 = vpack.c.bf16 %v655_v11, %v654_v10 }
  0x1c   : > { %391 = vst [vmem:[#allocation2 + $0x51] sm:$0xff] %v2183_v26  ;;  %v1948_v12 = vld [vmem:[%s2616_s3 + $0x120] sm:$0xff]  ;;  %v1923_v20 = vld [vmem:[%s2616_s3 + $0x58] sm:$0xff]  ;;  %v657_v24 = vpack.c.bf16 %v651_v17, %v650_v16  ;;  %v1922_v30 = vld [vmem:[%s2616_s3 + $0x50] sm:$0xff] }
  0x1d   : > { %380 = vst [vmem:[#allocation2 + $0x70] sm:$0xff] %v2059_v2  ;;  %1996 = vmatpush.bf16.msra.mxu2 %v1987_v27  ;;  %728 = vmatpush.bf16.msra.mxu0 %v1987_v27  ;;  %v1931_v21 = vld [vmem:[%s2616_s3 + $0x98] sm:$0xff]  ;;  %v1930_v31 = vld [vmem:[%s2616_s3 + $0x90] sm:$0xff]  ;;  %v1929_v36 = vld [vmem:[%s2616_s3 + $0x88] sm:$0xff] }
  0x1e   : > { %2004 = vmatpush.bf16.msra.mxu3 %v1915_v28  ;;  %381 = vst [vmem:[#allocation2 + $0x78] sm:$0x3] %v2059_v2  ;;  %1189 = vmatpush.bf16.msra.mxu1 %v1915_v28  ;;  %v1939_v28 = vld [vmem:[%s2616_s3 + $0xd8] sm:$0xff]  ;;  %v1938_v33 = vld [vmem:[%s2616_s3 + $0xd0] sm:$0xff]  ;;  %v1937_v38 = vld [vmem:[%s2616_s3 + $0xc8] sm:$0xff] }
  0x1f   : > { %382 = vst [vmem:[#allocation2 + $0x80] sm:$0xff] %v2059_v2  ;;  %v1947_v29 = vld [vmem:[%s2616_s3 + $0x118] sm:$0xff]  ;;  %v403_v48 = vld [vmem:[#allocation2 + $0x1] sm:$0xff] }
  0x20   : > { %383 = vst [vmem:[#allocation2 + $0x88] sm:$0x3] %v2059_v2  ;;  %v1967_v47 = vld [vmem:[%s2616_s3 + $0x1b8] sm:$0xff]  ;;  %v411_v51 = vld [vmem:[#allocation2 + $0x2] sm:$0xff] }
  0x21   : > { %384 = vst [vmem:[#allocation2 + $0x90] sm:$0xff] %v2059_v2  ;;  %1997 = vmatpush.bf16.msra.mxu2 %v1986_v34  ;;  %729 = vmatpush.bf16.msra.mxu0 %v1986_v34  ;;  %v1946_v34 = vld [vmem:[%s2616_s3 + $0x110] sm:$0xff]  ;;  %v1956_v10 = vld [vmem:[%s2616_s3 + $0x160] sm:$0xff] }
  0x22   : > { %2005 = vmatpush.bf16.msra.mxu3 %v1914_v35  ;;  %385 = vst [vmem:[#allocation2 + $0x98] sm:$0x3] %v2059_v2  ;;  %1190 = vmatpush.bf16.msra.mxu1 %v1914_v35  ;;  %v2247_v49 = vld [vmem:[#allocation2 + $0x40] sm:$0xff]  ;;  %v1921_v35 = vld [vmem:[%s2616_s3 + $0x48] sm:$0xff] }
  0x23   : > { %387 = vst [vmem:[#allocation2 + $0x11] sm:$0xff] %v2210_v37  ;;  %v2249_v50 = vld [vmem:[#allocation2 + $0x50] sm:$0xff]  ;;  %v1964_v11 = vld [vmem:[%s2616_s3 + $0x1a0] sm:$0xff] }
  0x24   : > { %392 = vst [vmem:[#allocation2 + $0x61] sm:$0xff] %v2214_v39  ;;  %v2263_v56 = vpack.c.bf16 %v2249_v50, %v2247_v49  ;;  %v1972_v16 = vld [vmem:[%s2616_s3 + $0x1e0] sm:$0xff] }
  0x25   : > { %393 = vst [vmem:[#allocation2 + $0x71] sm:$0xff] %v2217_v40  ;;  %1998 = vmatpush.bf16.msra.mxu2 %v1985_v41  ;;  %730 = vmatpush.bf16.msra.mxu0 %v1985_v41  ;;  %v1945_v41 = vld [vmem:[%s2616_s3 + $0x108] sm:$0xff] }
  0x26   : > { %2006 = vmatpush.bf16.msra.mxu3 %v1913_v42  ;;  %388 = vst [vmem:[#allocation2 + $0x21] sm:$0xff] %v2232_v43  ;;  %1191 = vmatpush.bf16.msra.mxu1 %v1913_v42  ;;  %v1920_v42 = vld [vmem:[%s2616_s3 + $0x40] sm:$0xff] }
  0x27   : > { %389 = vst [vmem:[#allocation2 + $0x31] sm:$0xff] %v2235_v44 }
  0x29   : > { %1999 = vmatpush.bf16.msra.mxu2 %v1984_v45  ;;  %731 = vmatpush.bf16.msra.mxu0 %v1984_v45  ;;  %v1928_v45 = vld [vmem:[%s2616_s3 + $0x80] sm:$0xff] }
  0x2a   : > { %2007 = vmatpush.bf16.msra.mxu3 %v1912_v46  ;;  %v2265_v58 = vld [vmem:[#allocation2 + $0x10] sm:$0xff]  ;;  %1192 = vmatpush.bf16.msra.mxu1 %v1912_v46  ;;  %v1959_v46 = vld [vmem:[%s2616_s3 + $0x178] sm:$0xff] }
  0x2b   : > { %v468_v59 = vpack.c.bf16 %v2265_v58, %v2059_v2  ;;  %v1925_v2 = vld [vmem:[%s2616_s3 + $0x68] sm:$0xff]  ;;  %v2314_v13 = vld [vmem:[#allocation2 + $0x60] sm:$0xff]  ;;  %v2386_v52 = vld [vmem:[#allocation2 + $0x12] sm:$0xff] }
  0x2c   : > { %742 = vmatmul.bf16.vlgmr.msra.gmra.mxu2 %v658_v55  ;;  %732 = vmatmul.bf16.vlgmr.msra.gmra.mxu0 %v656_v57  ;;  %v2316_v15 = vld [vmem:[#allocation2 + $0x70] sm:$0xff]  ;;  %v1975_v55 = vld [vmem:[%s2616_s3 + $0x1f8] sm:$0xff] }
  0x2d   : > { %1214 = vmatpush.bf16.msrb.mxu2 %v1927_v53  ;;  %1203 = vmatmul.bf16.vlgmr.msra.gmra.mxu3 %v2263_v56  ;;  %v2320_v18 = vld [vmem:[#allocation2 + $0x20] sm:$0xff]  ;;  %v2332_v23 = vpack.c.bf16 %v2316_v15, %v2314_v13  ;;  %v1983_v57 = vld [vmem:[%s2616_s3 + $0x238] sm:$0xff] }
  0x2e   : > { %1243 = vmatpush.bf16.msrb.mxu3 %v1935_v54  ;;  %1193 = vmatmul.bf16.vlgmr.msra.gmra.mxu1 %v468_v59  ;;  %v2322_v19 = vld [vmem:[#allocation2 + $0x30] sm:$0xff]  ;;  %v1936_v53 = vld [vmem:[%s2616_s3 + $0xc0] sm:$0xff]  ;;  %v469_v59 = vpack.c.bf16 %v2210_v37, %v403_v48 }
  0x2f   : > { %1272 = vmatpush.bf16.msrb.mxu0 %v1943_v60  ;;  %1301 = vmatpush.bf16.msrb.mxu1 %v1951_v61  ;;  %v2336_v27 = vpack.c.bf16 %v2322_v19, %v2320_v18  ;;  %v1944_v54 = vld [vmem:[%s2616_s3 + $0x100] sm:$0xff]  ;;  %v470_v60 = vpack.c.bf16 %v2386_v52, %v411_v51  ;;  %v333_v61 = vld [vmem:[%s2135_s12 + $0x38] sm:$0xff] }
  0x30   : > { %v2454_v17 = vld [vmem:[#allocation2 + $0x22] sm:$0xff] }
  0x31   : > { %1215 = vmatpush.bf16.msrb.mxu2 %v1926_v62  ;;  %v471_v62 = vpack.c.bf16 %v2320_v18, %v2265_v58  ;;  %v345_v58 = vmul.f32 %v2140_v5, %v333_v61  ;;  %v1965_v5 = vld [vmem:[%s2616_s3 + $0x1a8] sm:$0xff]  ;;  %v2456_v18 = vld [vmem:[#allocation2 + $0x32] sm:$0xff]  ;;  %v1976_v48 = vld [vmem:[%s2616_s3 + $0x200] sm:$0xff] }
  0x32   : > { %1244 = vmatpush.bf16.msrb.mxu3 %v1934_v63  ;;  %v472_v63 = vpack.c.bf16 %v2232_v43, %v2210_v37  ;;  %v1982_v37 = vld [vmem:[%s2616_s3 + $0x230] sm:$0xff]  ;;  %v417_v51 = vld [vmem:[#allocation2 + $0x62] sm:$0xff] }
  0x33   : > { %1273 = vmatpush.bf16.msrb.mxu0 %v1942_v0  ;;  %1302 = vmatpush.bf16.msrb.mxu1 %v1950_v1  ;;  %v1958_v0 = vld [vmem:[%s2616_s3 + $0x170] sm:$0xff] }
  0x34   : > { %v1966_v1 = vld [vmem:[%s2616_s3 + $0x1b0] sm:$0xff] }
  0x35   : > { %1216 = vmatpush.bf16.msrb.mxu2 %v1925_v2  ;;  %v1974_v2 = vld [vmem:[%s2616_s3 + $0x1f0] sm:$0xff] }
  0x36   : > { %1245 = vmatpush.bf16.msrb.mxu3 %v1933_v3  ;;  %v490_v3 = vpack.c.bf16 %v2214_v39, %v2183_v26 }
  0x37   : > { %1274 = vmatpush.bf16.msrb.mxu0 %v1941_v4  ;;  %1303 = vmatpush.bf16.msrb.mxu1 %v1949_v6  ;;  %v2424_v4 = vpack.c.bf16 %v2217_v40, %v2214_v39  ;;  %v1957_v6 = vld [vmem:[%s2616_s3 + $0x168] sm:$0xff] }
  0x39   : > { %1217 = vmatpush.bf16.msrb.mxu2 %v1924_v7  ;;  %v1973_v7 = vld [vmem:[%s2616_s3 + $0x1e8] sm:$0xff] }
  0x3a   : > { %1246 = vmatpush.bf16.msrb.mxu3 %v1932_v8  ;;  %v1981_v8 = vld [vmem:[%s2616_s3 + $0x228] sm:$0xff] }
  0x3b   : > { %1275 = vmatpush.bf16.msrb.mxu0 %v1940_v9  ;;  %1304 = vmatpush.bf16.msrb.mxu1 %v1948_v12  ;;  %v357_v9 = vadd.f32 %v2161_v14, %v345_v58  ;;  %v1980_v14 = vld [vmem:[%s2616_s3 + $0x220] sm:$0xff] }
  0x3c   : > { %747 = vmatmul.bf16.gmra.mxu2 %v659_v22  ;;  %737 = vmatmul.bf16.gmra.mxu0 %v657_v24  ;;  %v1971_v22 = vld [vmem:[%s2616_s3 + $0x1d8] sm:$0xff] }
  0x3d   : > { %1218 = vmatpush.bf16.msrb.mxu2 %v1923_v20  ;;  %1208 = vmatmul.bf16.gmra.mxu3 %v2332_v23  ;;  %v2445_v12 = vmax.f32 %v357_v9, 0.0  ;;  %v1955_v20 = vld [vmem:[%s2616_s3 + $0x158] sm:$0xff] }
  0x3e   : > { %1247 = vmatpush.bf16.msrb.mxu3 %v1931_v21  ;;  %1198 = vmatmul.bf16.gmra.mxu1 %v2336_v27  ;;  %v1963_v21 = vld [vmem:[%s2616_s3 + $0x198] sm:$0xff] }
  0x3f   : > { %1276 = vmatpush.bf16.msrb.mxu0 %v1939_v28  ;;  %1305 = vmatpush.bf16.msrb.mxu1 %v1947_v29  ;;  %394 = vst [vmem:[#allocation2 + $0x81] sm:$0xff] %v2445_v12  ;;  %v1979_v24 = vld [vmem:[%s2616_s3 + $0x218] sm:$0xff]  ;;  %v478_v28 = vpack.c.bf16 %v2235_v44, %v2232_v43  ;;  %v479_v29 = vpack.c.bf16 %v2456_v18, %v2454_v17  ;;  %v1978_v43 = vld [vmem:[%s2616_s3 + $0x210] sm:$0xff] }
  0x41   : > { %1219 = vmatpush.bf16.msrb.mxu2 %v1922_v30  ;;  %v480_v30 = vpack.c.bf16 %v2247_v49, %v2322_v19  ;;  %v1961_v49 = vld [vmem:[%s2616_s3 + $0x188] sm:$0xff] }
  0x42   : > { %1248 = vmatpush.bf16.msrb.mxu3 %v1930_v31  ;;  %v481_v31 = vpack.c.bf16 %v2181_v25, %v2235_v44  ;;  %v1970_v25 = vld [vmem:[%s2616_s3 + $0x1d0] sm:$0xff]  ;;  %v1953_v44 = vld [vmem:[%s2616_s3 + $0x148] sm:$0xff] }
  0x43   : > { %1277 = vmatpush.bf16.msrb.mxu0 %v1938_v33  ;;  %1306 = vmatpush.bf16.msrb.mxu1 %v1946_v34  ;;  %v1954_v33 = vld [vmem:[%s2616_s3 + $0x150] sm:$0xff]  ;;  %v1969_v19 = vld [vmem:[%s2616_s3 + $0x1c8] sm:$0xff] }
  0x44   : > { %v1962_v34 = vld [vmem:[%s2616_s3 + $0x190] sm:$0xff] }
  0x45   : > { %1220 = vmatpush.bf16.msrb.mxu2 %v1921_v35  ;;  %v1977_v35 = vld [vmem:[%s2616_s3 + $0x208] sm:$0xff] }
  0x46   : > { %1249 = vmatpush.bf16.msrb.mxu3 %v1929_v36  ;;  %v1952_v36 = vld [vmem:[%s2616_s3 + $0x140] sm:$0xff] }
  0x47   : > { %1278 = vmatpush.bf16.msrb.mxu0 %v1937_v38  ;;  %1307 = vmatpush.bf16.msrb.mxu1 %v1945_v41  ;;  %v1960_v38 = vld [vmem:[%s2616_s3 + $0x180] sm:$0xff] }
  0x48   : > { %v1968_v41 = vld [vmem:[%s2616_s3 + $0x1c0] sm:$0xff] }
  0x49   : > { %1221 = vmatpush.bf16.msrb.mxu2 %v1920_v42  ;;  %v415_v42 = vld [vmem:[#allocation2 + $0x42] sm:$0xff] }
  0x4a   : > { %1250 = vmatpush.bf16.msrb.mxu3 %v1928_v45  ;;  %v416_v45 = vld [vmem:[#allocation2 + $0x52] sm:$0xff]  ;;  %v482_v26 = vpack.c.bf16 %v415_v42, %v2456_v18 }
  0x4b   : > { %1279 = vmatpush.bf16.msrb.mxu0 %v1936_v53  ;;  %1308 = vmatpush.bf16.msrb.mxu1 %v1944_v54  ;;  %v418_v53 = vld [vmem:[#allocation2 + $0x72] sm:$0xff]  ;;  %v426_v54 = vld [vmem:[#allocation2 + $0x80] sm:$0xff]  ;;  %v491_v39 = vpack.c.bf16 %v417_v51, %v416_v45 }
  0x4c   : > { %1222 = vmatmul.bf16.vlgmr.msrb.gmra.mxu2 %v469_v59 }
  0x4d   : > { %1330 = vmatpush.bf16.msra.mxu2 %v1959_v46  ;;  %1251 = vmatmul.bf16.vlgmr.msrb.gmra.mxu3 %v470_v60  ;;  %v488_v46 = vpack.c.bf16 %v416_v45, %v415_v42 }
  0x4e   : > { %1359 = vmatpush.bf16.msra.mxu3 %v1967_v47  ;;  %1280 = vmatmul.bf16.vlgmr.msrb.gmra.mxu0 %v471_v62  ;;  %v489_v47 = vpack.c.bf16 %v2314_v13, %v2249_v50  ;;  %v499_v50 = vpack.c.bf16 %v2445_v12, %v2217_v40  ;;  %v473_v13 = vpack.c.bf16 %v2454_v17, %v2386_v52 }
  0x4f   : > { %1388 = vmatpush.bf16.msra.mxu0 %v1975_v55  ;;  %1417 = vmatpush.bf16.msra.mxu1 %v1983_v57  ;;  %v497_v55 = vpack.c.bf16 %v418_v53, %v417_v51  ;;  %v498_v57 = vpack.c.bf16 %v426_v54, %v2316_v15 }
  0x50   : > { %1309 = vmatmul.bf16.vlgmr.msrb.gmra.mxu1 %v472_v63  ;;  %v459_v63 = vld [vmem:[#allocation2 + $0x91] sm:$0xff] }
  0x51   : > { %1331 = vmatpush.bf16.msra.mxu2 %v1958_v0  ;;  %v467_v0 = vld [vmem:[#allocation2 + $0x92] sm:$0xff] }
  0x52   : > { %1360 = vmatpush.bf16.msra.mxu3 %v1966_v1 }
  0x53   : > { %1389 = vmatpush.bf16.msra.mxu0 %v1974_v2  ;;  %1418 = vmatpush.bf16.msra.mxu1 %v1982_v37 }
  0x55   : > { %1332 = vmatpush.bf16.msra.mxu2 %v1957_v6 }
  0x56   : > { %1361 = vmatpush.bf16.msra.mxu3 %v1965_v5 }
  0x57   : > { %1390 = vmatpush.bf16.msra.mxu0 %v1973_v7  ;;  %1419 = vmatpush.bf16.msra.mxu1 %v1981_v8 }
  0x59   : > { %1333 = vmatpush.bf16.msra.mxu2 %v1956_v10 }
  0x5a   : > { %1362 = vmatpush.bf16.msra.mxu3 %v1964_v11 }
  0x5b   : > { %1391 = vmatpush.bf16.msra.mxu0 %v1972_v16  ;;  %1420 = vmatpush.bf16.msra.mxu1 %v1980_v14 }
  0x5c   : > { %1227 = vmatmul.bf16.gmra.mxu2 %v478_v28 }
  0x5d   : > { %1334 = vmatpush.bf16.msra.mxu2 %v1955_v20  ;;  %1256 = vmatmul.bf16.gmra.mxu3 %v479_v29 }
  0x5e   : > { %1363 = vmatpush.bf16.msra.mxu3 %v1963_v21  ;;  %1285 = vmatmul.bf16.gmra.mxu0 %v480_v30 }
  0x5f   : > { %1392 = vmatpush.bf16.msra.mxu0 %v1971_v22  ;;  %1421 = vmatpush.bf16.msra.mxu1 %v1979_v24 }
  0x60   : > { %1314 = vmatmul.bf16.gmra.mxu1 %v481_v31 }
  0x61   : > { %1335 = vmatpush.bf16.msra.mxu2 %v1954_v33 }
  0x62   : > { %1364 = vmatpush.bf16.msra.mxu3 %v1962_v34 }
  0x63   : > { %1393 = vmatpush.bf16.msra.mxu0 %v1970_v25  ;;  %1422 = vmatpush.bf16.msra.mxu1 %v1978_v43 }
  0x65   : > { %1336 = vmatpush.bf16.msra.mxu2 %v1953_v44 }
  0x66   : > { %1365 = vmatpush.bf16.msra.mxu3 %v1961_v49 }
  0x67   : > { %1394 = vmatpush.bf16.msra.mxu0 %v1969_v19  ;;  %1423 = vmatpush.bf16.msra.mxu1 %v1977_v35 }
  0x69   : > { %1337 = vmatpush.bf16.msra.mxu2 %v1952_v36 }
  0x6a   : > { %1366 = vmatpush.bf16.msra.mxu3 %v1960_v38 }
  0x6b   : > { %1395 = vmatpush.bf16.msra.mxu0 %v1968_v41  ;;  %1424 = vmatpush.bf16.msra.mxu1 %v1976_v48 }
  0x6c   : > { %1232 = vmatmul.bf16.gmra.mxu2 %v2354_v32 }
  0x6d   : > { %1261 = vmatmul.bf16.gmra.mxu3 %v488_v46 }
  0x6e   : > { %1290 = vmatmul.bf16.gmra.mxu0 %v489_v47 }
  0x70   : > { %1319 = vmatmul.bf16.gmra.mxu1 %v490_v3  ;;  %v501_v3 = vpack.c.bf16 0.0, %v426_v54 }
  0x7c   : > { %1237 = vmatmul.bf16.gmra.mxu2 %v2424_v4 }
  0x7d   : > { %1266 = vmatmul.bf16.gmra.mxu3 %v497_v55 }
  0x7e   : > { %1295 = vmatmul.bf16.gmra.mxu0 %v498_v57 }
  0x80   : > { %1324 = vmatmul.bf16.gmra.mxu1 %v499_v50 }
  0x8c   : > { %1338 = vmatmul.bf16.vlgmr.msra.gmra.mxu2 %v473_v13 }
  0x8d   : > { %1367 = vmatmul.bf16.vlgmr.msra.gmra.mxu3 %v2336_v27 }
  0x8e   : > { %1396 = vmatmul.bf16.vlgmr.msra.gmra.mxu0 %v478_v28 }
  0x90   : > { %1425 = vmatmul.bf16.vlgmr.msra.gmra.mxu1 %v479_v29 }
  0x9c   : > { %1343 = vmatmul.bf16.gmra.mxu2 %v482_v26 }
  0x9d   : > { %1372 = vmatmul.bf16.gmra.mxu3 %v2263_v56 }
  0x9e   : > { %1401 = vmatmul.bf16.gmra.mxu0 %v2354_v32  ;;  %v442_v32 = vld [vmem:[#allocation2 + $0x82] sm:$0xff] }
  0x9f   : > { %v500_v58 = vpack.c.bf16 %v442_v32, %v418_v53 }
  0xa0   : > { %1430 = vmatmul.bf16.gmra.mxu1 %v488_v46 }
  0xa9   : > { %v733_v40 = vpop.f32.mrf.mxu0 }
  0xab   : > { %v1194_v15 = vpop.f32.mrf.mxu1 }
  0xac   : > { %v2530_v59 = vadd.f32 %v1194_v15, %v733_v40  ;;  %1348 = vmatmul.bf16.gmra.mxu2 %v491_v39 }
  0xad   : > { %1377 = vmatmul.bf16.gmra.mxu3 %v2332_v23  ;;  %v502_v23 = vpack.c.bf16 %v459_v63, %v2445_v12 }
  0xae   : > { %1406 = vmatmul.bf16.gmra.mxu0 %v2424_v4  ;;  %v503_v4 = vpack.c.bf16 %v467_v0, %v442_v32 }
  0xaf   : > { %v743_v27 = vpop.f32.mrf.mxu2 }
  0xb0   : > { %1435 = vmatmul.bf16.gmra.mxu1 %v497_v55  ;;  %v1204_v52 = vpop.f32.mrf.mxu3 }
  0xb1   : > { %v2534_v60 = vadd.f32 %v1204_v52, %v743_v27  ;;  %v735_v61 = vpop.f32.mrf.mxu0 }
  0xb3   : > { %v1196_v56 = vpop.f32.mrf.mxu1 }
  0xb4   : > { %v1197_v62 = vadd.f32 %v1196_v56, %v735_v61 }
  0xb7   : > { %v745_v1 = vpop.f32.mrf.mxu2 }
  0xb8   : > { %v1206_v2 = vpop.f32.mrf.mxu3 }
  0xb9   : > { %v2536_v37 = vadd.f32 %v1206_v2, %v745_v1  ;;  %v738_v6 = vpop.f32.mrf.mxu0 }
  0xbb   : > { %v1199_v5 = vpop.f32.mrf.mxu1 }
  0xbc   : > { %v1200_v7 = vadd.f32 %v1199_v5, %v738_v6  ;;  %1353 = vmatmul.bf16.gmra.mxu2 %v500_v58 }
  0xbd   : > { %1382 = vmatmul.bf16.gmra.mxu3 %v501_v3 }
  0xbe   : > { %1411 = vmatmul.bf16.gmra.mxu0 %v502_v23 }
  0xbf   : > { %v748_v8 = vpop.f32.mrf.mxu2 }
  0xc0   : > { %1440 = vmatmul.bf16.gmra.mxu1 %v503_v4  ;;  %v1209_v9 = vpop.f32.mrf.mxu3 }
  0xc1   : > { %v2539_v10 = vadd.f32 %v1209_v9, %v748_v8  ;;  %v740_v11 = vpop.f32.mrf.mxu0 }
  0xc3   : > { %v1201_v16 = vpop.f32.mrf.mxu1 }
  0xc4   : > { %v1202_v14 = vadd.f32 %v1201_v16, %v740_v11 }
  0xc7   : > { %v750_v17 = vpop.f32.mrf.mxu2 }
  0xc8   : > { %v1211_v18 = vpop.f32.mrf.mxu3 }
  0xc9   : > { %v2541_v20 = vadd.f32 %v1211_v18, %v750_v17 }
  0xcb   : > { %v1281_v12 = vpop.f32.mrf.mxu0 }
  0xcd   : > { %v1310_v21 = vpop.f32.mrf.mxu1 }
  0xcf   : > { %v1223_v22 = vpop.f32.mrf.mxu2 }
  0xd0   : > { %v1252_v24 = vpop.f32.mrf.mxu3  ;;  %v1224_v57 = vadd.f32 %v1223_v22, %v2530_v59 }
  0xd2   : > { %v1253_v26 = vadd.f32 %v1252_v24, %v1224_v57 }
  0xd3   : > { %v1283_v28 = vpop.f32.mrf.mxu0 }
  0xd4   : > { %v1282_v15 = vadd.f32 %v1281_v12, %v1253_v26 }
  0xd5   : > { %v1312_v29 = vpop.f32.mrf.mxu1 }
  0xd6   : > { %v1311_v32 = vadd.f32 %v1310_v21, %v1282_v15 }
  0xd7   : > { %v1225_v30 = vpop.f32.mrf.mxu2 }
  0xd8   : > { %v1254_v31 = vpop.f32.mrf.mxu3  ;;  %v1226_v27 = vadd.f32 %v1225_v30, %v1197_v62 }
  0xda   : > { %v1255_v56 = vadd.f32 %v1254_v31, %v1226_v27 }
  0xdb   : > { %v1286_v33 = vpop.f32.mrf.mxu0 }
  0xdc   : > { %v1284_v59 = vadd.f32 %v1283_v28, %v1255_v56 }
  0xdd   : > { %v1315_v34 = vpop.f32.mrf.mxu1 }
  0xde   : > { %v1313_v5 = vadd.f32 %v1312_v29, %v1284_v59 }
  0xdf   : > { %v1228_v25 = vpop.f32.mrf.mxu2 }
  0xe0   : > { %v1257_v43 = vpop.f32.mrf.mxu3  ;;  %v1229_v2 = vadd.f32 %v1228_v25, %v1200_v7 }
  0xe2   : > { %v1258_v62 = vadd.f32 %v1257_v43, %v1229_v2 }
  0xe3   : > { %v1288_v44 = vpop.f32.mrf.mxu0 }
  0xe4   : > { %v1287_v16 = vadd.f32 %v1286_v33, %v1258_v62 }
  0xe5   : > { %v2543_v49 = vpop.f32.mrf.mxu1 }
  0xe6   : > { %v1316_v28 = vadd.f32 %v1315_v34, %v1287_v16 }
  0xe7   : > { %v1230_v19 = vpop.f32.mrf.mxu2 }
  0xe8   : > { %v1259_v35 = vpop.f32.mrf.mxu3  ;;  %v1231_v7 = vadd.f32 %v1230_v19, %v1202_v14 }
  0xea   : > { %v1260_v22 = vadd.f32 %v1259_v35, %v1231_v7 }
  0xeb   : > { %v2545_v36 = vpop.f32.mrf.mxu0 }
  0xec   : > { %v1289_v29 = vadd.f32 %v1288_v44, %v1260_v22 }
  0xed   : > { %v2547_v38 = vpop.f32.mrf.mxu1 }
  0xee   : > { %v1318_v27 = vadd.f32 %v2543_v49, %v1289_v29 }
  0xef   : > { %v1233_v41 = vpop.f32.mrf.mxu2 }
  0xf0   : > { %v1262_v42 = vpop.f32.mrf.mxu3  ;;  %v1234_v43 = vadd.f32 %v1233_v41, %v2534_v60 }
  0xf2   : > { %v1263_v14 = vadd.f32 %v1262_v42, %v1234_v43 }
  0xf3   : > { %v2549_v45 = vpop.f32.mrf.mxu0 }
  0xf5   : > { %v2551_v46 = vpop.f32.mrf.mxu1 }
  0xf7   : > { %v1235_v47 = vpop.f32.mrf.mxu2 }
  0xf8   : > { %v2553_v48 = vpop.f32.mrf.mxu3  ;;  %v1236_v56 = vadd.f32 %v1235_v47, %v2536_v37 }
  0xfa   : > { %v1265_v41 = vadd.f32 %v2553_v48, %v1236_v56 }
  0xfb   : > { %v2555_v51 = vpop.f32.mrf.mxu0 }
  0xfc   : > { %v1294_v2 = vadd.f32 %v2549_v45, %v1265_v41 }
  0xfd   : > { %v2557_v53 = vpop.f32.mrf.mxu1 }
  0xff   : > { %v2559_v54 = vpop.f32.mrf.mxu2 }
 0x100   : > { %v2561_v55 = vpop.f32.mrf.mxu3 }
 0x103   : > { %v2564_v50 = vpop.f32.mrf.mxu0 }
 0x105   : > { %v2566_v13 = vpop.f32.mrf.mxu1 }
 0x107   : > { %v2568_v39 = vpop.f32.mrf.mxu2 }
 0x108   : > { %v2570_v40 = vpop.f32.mrf.mxu3  ;;  %v1241_v45 = vadd.f32 %v2568_v39, %v2541_v20 }
 0x10b   : > { %v1397_v52 = vpop.f32.mrf.mxu0 }
 0x10d   : > { %v1426_v61 = vpop.f32.mrf.mxu1 }
 0x10f   : > { %v1339_v63 = vpop.f32.mrf.mxu2 }
 0x110   : > { %v1368_v0 = vpop.f32.mrf.mxu3  ;;  %v1340_v1 = vadd.f32 %v1339_v63, %v1311_v32 }
 0x112   : > { %v1369_v58 = vadd.f32 %v1368_v0, %v1340_v1 }
 0x113   : > { %v1399_v3 = vpop.f32.mrf.mxu0 }
 0x114   : > { %v1398_v4 = vadd.f32 %v1397_v52, %v1369_v58 }
 0x115   : > { %v1428_v23 = vpop.f32.mrf.mxu1 }
 0x116   : > { %v1427_v6 = vadd.f32 %v1426_v61, %v1398_v4  ;;  %v1292_v61 = vadd.f32 %v2545_v36, %v1263_v14  ;;  %v1239_v36 = vadd.f32 %v2559_v54, %v2539_v10 }
 0x117   : > { %v1341_v8 = vpop.f32.mrf.mxu2 }
 0x118   : > { %v1370_v9 = vpop.f32.mrf.mxu3  ;;  %1446 = vst [vmem:[%s2576_s21] sm:$0xff] %v1427_v6  ;;  %v1342_v11 = vadd.f32 %v1341_v8, %v1313_v5  ;;  %v1321_v42 = vadd.f32 %v2547_v38, %v1292_v61  ;;  %v1268_v58 = vadd.f32 %v2561_v55, %v1239_v36  ;;  %v1270_v55 = vadd.f32 %v2570_v40, %v1241_v45 }
 0x11a   : > { %v1371_v17 = vadd.f32 %v1370_v9, %v1342_v11  ;;  %v1297_v5 = vadd.f32 %v2555_v51, %v1268_v58 }
 0x11b   : > { %v1402_v18 = vpop.f32.mrf.mxu0 }
 0x11c   : > { %v1400_v21 = vadd.f32 %v1399_v3, %v1371_v17  ;;  %v1326_v9 = vadd.f32 %v2557_v53, %v1297_v5  ;;  %v1299_v17 = vadd.f32 %v2564_v50, %v1270_v55 }
 0x11d   : > { %v1431_v12 = vpop.f32.mrf.mxu1 }
 0x11e   : > { %v1429_v24 = vadd.f32 %v1428_v23, %v1400_v21  ;;  %v1323_v23 = vadd.f32 %v2551_v46, %v1294_v2  ;;  %v1328_v39 = vadd.f32 %v2566_v13, %v1299_v17 }
 0x11f   : > { %v1344_v30 = vpop.f32.mrf.mxu2 }
 0x120   : > { %v1373_v31 = vpop.f32.mrf.mxu3  ;;  %1447 = vst [vmem:[%s2576_s21 + $0x8] sm:$0xff] %v1429_v24  ;;  %v1345_v25 = vadd.f32 %v1344_v30, %v1316_v28 }
 0x122   : > { %v1374_v57 = vadd.f32 %v1373_v31, %v1345_v25 }
 0x123   : > { %v1404_v26 = vpop.f32.mrf.mxu0 }
 0x124   : > { %v1403_v15 = vadd.f32 %v1402_v18, %v1374_v57 }
 0x125   : > { %v1433_v33 = vpop.f32.mrf.mxu1 }
 0x126   : > { %v1432_v19 = vadd.f32 %v1431_v12, %v1403_v15 }
 0x127   : > { %v1346_v35 = vpop.f32.mrf.mxu2 }
 0x128   : > { %v1375_v52 = vpop.f32.mrf.mxu3  ;;  %1448 = vst [vmem:[%s2576_s21 + $0x10] sm:$0xff] %v1432_v19  ;;  %v1347_v34 = vadd.f32 %v1346_v35, %v1318_v27 }
 0x12a   : > { %v1376_v44 = vadd.f32 %v1375_v52, %v1347_v34 }
 0x12b   : > { %v1407_v60 = vpop.f32.mrf.mxu0 }
 0x12c   : > { %v1405_v32 = vadd.f32 %v1404_v26, %v1376_v44 }
 0x12d   : > { %v1436_v0 = vpop.f32.mrf.mxu1 }
 0x12e   : > { %v1434_v63 = vadd.f32 %v1433_v33, %v1405_v32 }
 0x12f   : > { %v1349_v49 = vpop.f32.mrf.mxu2 }
 0x130   : > { %v1378_v1 = vpop.f32.mrf.mxu3  ;;  %1449 = vst [vmem:[%s2576_s21 + $0x18] sm:$0xff] %v1434_v63  ;;  %v1350_v59 = vadd.f32 %v1349_v49, %v1321_v42 }
 0x132   : > { %v1379_v37 = vadd.f32 %v1378_v1, %v1350_v59 }
 0x133   : > { %v1409_v48 = vpop.f32.mrf.mxu0 }
 0x134   : > { %v1408_v47 = vadd.f32 %v1407_v60, %v1379_v37 }
 0x135   : > { %v1438_v6 = vpop.f32.mrf.mxu1 }
 0x136   : > { %v1437_v3 = vadd.f32 %v1436_v0, %v1408_v47 }
 0x137   : > { %v1351_v4 = vpop.f32.mrf.mxu2 }
 0x138   : > { %v1380_v38 = vpop.f32.mrf.mxu3  ;;  %1450 = vst [vmem:[%s2576_s21 + $0x20] sm:$0xff] %v1437_v3  ;;  %v1352_v62 = vadd.f32 %v1351_v4, %v1323_v23 }
 0x13a   : > { %v1381_v10 = vadd.f32 %v1380_v38, %v1352_v62 }
 0x13b   : > { %v1412_v7 = vpop.f32.mrf.mxu0 }
 0x13c   : > { %v1410_v54 = vadd.f32 %v1409_v48, %v1381_v10 }
 0x13d   : > { %v1441_v18 = vpop.f32.mrf.mxu1 }
 0x13e   : > { %v1439_v8 = vadd.f32 %v1438_v6, %v1410_v54 }
 0x13f   : > { %v1354_v11 = vpop.f32.mrf.mxu2 }
 0x140   : > { %v1383_v46 = vpop.f32.mrf.mxu3  ;;  %1451 = vst [vmem:[%s2576_s21 + $0x28] sm:$0xff] %v1439_v8  ;;  %v1355_v16 = vadd.f32 %v1354_v11, %v1326_v9 }
 0x142   : > { %v1384_v51 = vadd.f32 %v1383_v46, %v1355_v16 }
 0x143   : > { %v1414_v53 = vpop.f32.mrf.mxu0 }
 0x144   : > { %v1413_v12 = vadd.f32 %v1412_v7, %v1384_v51 }
 0x145   : > { %v1443_v30 = vpop.f32.mrf.mxu1 }
 0x146   : > { %v1442_v20 = vadd.f32 %v1441_v18, %v1413_v12 }
 0x147   : > { %v1356_v21 = vpop.f32.mrf.mxu2 }
 0x148   : > { %1452 = vst [vmem:[%s2576_s21 + $0x30] sm:$0xff] %v1442_v20  ;;  %v1357_v40 = vadd.f32 %v1356_v21, %v1328_v39  ;;  %v1385_v22 = vpop.f32.mrf.mxu3 }
 0x14a   : > { %v1386_v24 = vadd.f32 %v1385_v22, %v1357_v40 }
 0x14c   : > { %v1415_v28 = vadd.f32 %v1414_v53, %v1386_v24 }
 0x14e   : > { %v1444_v31 = vadd.f32 %v1443_v30, %v1415_v28 }
 0x150   : > { %1453 = vst [vmem:[%s2576_s21 + $0x38] sm:$0xff] %v1444_v31 }
 0x151 PF: > { %s16_s23 = sadd.s32 1, %s2057_s23   ;;  %s2620_s21 = smov %s2053_s22 }
 0x152   : > { %p13_p5 = scmp.ge.s32.totalorder %s16_s23, 4   ;;  %s2621_s22 = smov %s2623_s24 }
 0x154   :  { %15 = sbr.rel (!%p13_p5) target bundleno = 2 (0x2), region = 85 }

</bundles_post_ra>
